<compile_context>
chip_gen: v5e
topology: v5e:2x2
jax: 0.10.0
libtpu: 0.0.40
codegen_flags: <defaults>
</compile_context>

<pallas_src>
import functools

import jax
import jax.numpy as jnp
import numpy as np
from jax.experimental import pallas as pl
from jax.experimental.pallas import tpu as pltpu

CP = 128  # lane width used for all in-VMEM channel-padded tiles


# ----------------------------------------------------------------------------
# Fused Pallas kernel: DoubleConv (conv3x3 -> GN -> ReLU, x2) + scSE
# ----------------------------------------------------------------------------
def _up_fused_kernel(x_ref, wp_ref, mats_ref, r1_ref, pvec_ref,
                     o_ref, hb_ref, *, H, W, PAD, Cin, Cmid, Cout):
    HW = H * W

    # --- zero the halo rows once per grid step (rows [0,PAD) and bottom) ---
    zero_rows = jnp.zeros((PAD, CP), jnp.float32)
    hb_ref[0:PAD, :] = zero_rows
    hb_ref[PAD + HW:PAD + HW + PAD, :] = zero_rows

    # --- geometry: only the ox=+-1 column-wrap masks are needed -------------
    ww = jax.lax.broadcasted_iota(jnp.int32, (HW, 1), 0) % W
    col_ok = {-1: ww >= 1, 0: None, 1: ww < (W - 1)}
    lane = jax.lax.broadcasted_iota(jnp.int32, (1, CP), 1)
    offs = [(oy, ox) for oy in (-1, 0, 1) for ox in (-1, 0, 1)]

    # --- small per-channel parameter rows (one consolidated (8,128) input) --
    g1 = pvec_ref[0:1, :]
    b1 = pvec_ref[1:2, :]
    g2 = pvec_ref[2:3, :]
    b2 = pvec_ref[3:4, :]
    fc1b = pvec_ref[4:5, :]
    fc2b = pvec_ref[5:6, :]
    ssew = pvec_ref[6:7, :]
    # sseb sits at lane 0 of row 7 (rest zero) -> recover it with a lane sum.
    sseb = jnp.sum(pvec_ref[7:8, :], axis=-1, keepdims=True)      # (1, 1)

    def conv3x3_packed(x_rep, w_bf16, c):
        # x_rep: (HW, 128) f32 with the conv input channels replicated at
        # lanes [k*c + ch] for every tap k.  Store once into the zero-halo
        # scratch, read the 9 taps as shifted slices (no rolls), select each
        # tap's lane group into the K-packed im2col LHS, then ONE matmul.
        hb_ref[PAD:PAD + HW, :] = x_rep
        lhs = jnp.zeros((HW, CP), jnp.float32)
        for k, (oy, ox) in enumerate(offs):
            s = oy * W + ox
            tap = hb_ref[PAD + s:PAD + s + HW, :]                 # (HW, 128)
            gsel = (lane >= k * c) & (lane < (k + 1) * c)         # (1, 128)
            cm = col_ok[ox]                                       # (HW,1)|None
            m = gsel if cm is None else (gsel & cm)
            lhs = jnp.where(m, tap, lhs)
        return jnp.dot(lhs.astype(jnp.bfloat16), w_bf16,          # one bf16 cast
                       preferred_element_type=jnp.float32)        # (HW, 128)

    def gn_relu(y, gamma, beta):
        # GroupNorm(4, C) + ReLU; group stats via a group-averaging matmul.
        # Two-pass (centered) variance; padded lanes stay exactly zero.
        gmat = mats_ref[0]
        ch_mean = jnp.mean(y, axis=0, keepdims=True)              # (1, CP)
        g_mean = jnp.dot(ch_mean, gmat, preferred_element_type=jnp.float32)
        d = y - g_mean
        ch_var = jnp.mean(d * d, axis=0, keepdims=True)
        g_var = jnp.dot(ch_var, gmat, preferred_element_type=jnp.float32)
        yn = d * jax.lax.rsqrt(g_var + 1e-5)
        return jnp.maximum(yn * gamma + beta, 0.0)

    # --- conv1 -> GN -> ReLU ------------------------------------------------
    x = x_ref[0]                                                  # (HW, Cin)
    xr1 = jnp.dot(x, r1_ref[...], preferred_element_type=jnp.float32)
    y1 = gn_relu(conv3x3_packed(xr1, wp_ref[0], Cin), g1, b1)

    # --- conv2 -> GN -> ReLU ------------------------------------------------
    xr2 = jnp.dot(y1, mats_ref[1], preferred_element_type=jnp.float32)
    y2 = gn_relu(conv3x3_packed(xr2, wp_ref[1], Cmid), g2, b2)

    # --- scSE: channel-SE / spatial-SE / elementwise max ---------------------
    sq = jnp.mean(y2, axis=0, keepdims=True)                      # (1, CP)
    h1 = jnp.dot(sq, mats_ref[2], preferred_element_type=jnp.float32)
    h1 = jnp.maximum(h1 + fc1b, 0.0)
    ch = jnp.dot(h1, mats_ref[3], preferred_element_type=jnp.float32)
    ch = jax.nn.sigmoid(ch + fc2b)                                # (1, CP)
    cse = y2 * ch

    s = jnp.sum(y2 * ssew, axis=-1, keepdims=True) + sseb         # (HW, 1)
    sse = y2 * jax.nn.sigmoid(s)

    # Unpadded (HW, Cout) store: 16x less HBM write traffic than 128 lanes.
    o_ref[0] = jnp.maximum(cse, sse)[:, :Cout]


def up_block_fused(x, wp, mats, r1, pvec, *, H, W, Cin, Cmid, Cout):
    N = x.shape[0]
    HW = H * W
    PAD = ((W + 1 + 7) // 8) * 8          # halo rows (>= W+1, sublane-aligned)
    kernel = functools.partial(_up_fused_kernel, H=H, W=W, PAD=PAD,
                               Cin=Cin, Cmid=Cmid, Cout=Cout)
    return pl.pallas_call(
        kernel,
        out_shape=jax.ShapeDtypeStruct((N, HW, Cout), jnp.float32),
        grid=(N,),
        in_specs=[
            pl.BlockSpec((1, HW, Cin), lambda n: (n, 0, 0)),      # x, unpadded
            pl.BlockSpec((2, CP, CP), lambda n: (0, 0, 0)),       # packed conv w
            pl.BlockSpec((4, CP, CP), lambda n: (0, 0, 0)),       # gmat/rep2/fc
            pl.BlockSpec((Cin, CP), lambda n: (0, 0)),            # rep1
            pl.BlockSpec((8, CP), lambda n: (0, 0)),              # vectors+sseb
        ],
        out_specs=pl.BlockSpec((1, HW, Cout), lambda n: (n, 0, 0)),
        scratch_shapes=[pltpu.VMEM((HW + 2 * PAD, CP), jnp.float32)],  # halo buf
        compiler_params=pltpu.CompilerParams(
            dimension_semantics=("parallel",),
            vmem_limit_bytes=32 * 1024 * 1024),
    )(x, wp, mats, r1, pvec)


# ----------------------------------------------------------------------------
# Plain-JAX glue
# ----------------------------------------------------------------------------
def bilinear_upsample_x2_align_corners(x):
    # TODO(synk): upsample is gather/interp glue, not a Pallas kernel.
    N, C, H, W = x.shape
    Ho, Wo = 2 * H, 2 * W

    def coords(n_in, n_out):
        src = jnp.arange(n_out, dtype=jnp.float32) * (n_in - 1) / (n_out - 1)
        i0 = jnp.clip(jnp.floor(src).astype(jnp.int32), 0, n_in - 1)
        i1 = jnp.clip(i0 + 1, 0, n_in - 1)
        w = src - i0.astype(jnp.float32)
        return i0, i1, w

    h0, h1, wh = coords(H, Ho)
    w0, w1, ww = coords(W, Wo)
    xa = x[:, :, h0, :]
    xb = x[:, :, h1, :]
    xh = xa * (1.0 - wh)[None, None, :, None] + xb * wh[None, None, :, None]
    ya = xh[:, :, :, w0]
    yb = xh[:, :, :, w1]
    return ya * (1.0 - ww)[None, None, None, :] + yb * ww[None, None, None, :]


def group_avg_matrix(C, G):
    Cg = C // G
    gidx = jnp.arange(C) // Cg
    return (gidx[:, None] == gidx[None, :]).astype(jnp.float32) / Cg


def _pad_to(a, shape, dtype=jnp.float32):
    z = jnp.zeros(shape, dtype)
    return z.at[tuple(slice(0, s) for s in a.shape)].set(a.astype(dtype))


def _rep_matrix(C, rows):
    # R[c, k*C + c] = 1 for the 9 taps: dot(x, R) replicates the C channels
    # into 9 contiguous lane groups (tap-major / channel-minor).
    r = np.zeros((rows, CP), np.float32)
    for k in range(9):
        for c in range(C):
            r[c, k * C + c] = 1.0
    return jnp.asarray(r)


# ----------------------------------------------------------------------------
# Up.forward (Pallas path)
# ----------------------------------------------------------------------------
@functools.partial(jax.jit, static_argnames=("groups",))
def up_forward_pallas(x1, x2, params, groups=4):
    N, C1, _, _ = x1.shape
    _, C2, H, W = x2.shape
    Cin = C1 + C2
    Cmid = params["w1"].shape[-1]
    Cout = params["w2"].shape[-1]
    assert Cmid == Cout                      # DoubleConv default
    assert Cout % groups == 0
    assert 9 * Cin <= CP and 9 * Cmid <= CP  # K-packing fits one MXU tile
    assert (H * W) % 8 == 0
    HW = H * W

    xu = bilinear_upsample_x2_align_corners(x1)
    x = jnp.concatenate([xu, x2], axis=1)                        # (N, Cin, H, W)
    x = jnp.transpose(x, (0, 2, 3, 1)).reshape(N, HW, Cin)       # unpadded chans

    # Packed conv weights: rows = tap-major/channel-minor, cols = out channels.
    w1p = _pad_to(params["w1"].reshape(9 * Cin, Cmid), (CP, CP), jnp.bfloat16)
    w2p = _pad_to(params["w2"].reshape(9 * Cmid, Cout), (CP, CP), jnp.bfloat16)
    wp = jnp.stack([w1p, w2p])                                   # (2,128,128) bf16

    gmat = _pad_to(group_avg_matrix(Cout, groups), (CP, CP))
    rep2 = _rep_matrix(Cmid, CP)
    fc1w = _pad_to(params["fc1w"], (CP, CP))
    fc2w = _pad_to(params["fc2w"], (CP, CP))
    mats = jnp.stack([gmat, rep2, fc1w, fc2w])                   # (4,128,128) f32

    r1 = _rep_matrix(Cin, Cin)                                   # (Cin,128) f32

    def row(v):
        return _pad_to(v.reshape(1, -1), (1, CP))

    pvec = jnp.concatenate([
        row(params["g1"]), row(params["b1"]),
        row(params["g2"]), row(params["b2"]),
        row(params["fc1b"]), row(params["fc2b"]),
        row(params["ssew"]),
        _pad_to(params["sseb"].reshape(1, 1), (1, CP)),          # sseb at lane 0
    ], axis=0)                                                   # (8,128) f32

    out = up_block_fused(x, wp, mats, r1, pvec,
                         H=H, W=W, Cin=Cin, Cmid=Cmid, Cout=Cout)
    out = out.reshape(N, H, W, Cout)
    return jnp.transpose(out, (0, 3, 1, 2))                      # back to NCHW


# ----------------------------------------------------------------------------
# Pure-JAX reference (independent formulation, NCHW) for sanity checking
# ----------------------------------------------------------------------------
def up_forward_ref(x1, x2, params, groups=4):
    xu = bilinear_upsample_x2_align_corners(x1)
    x = jnp.concatenate([xu, x2], axis=1)

    def conv3(x, w_hwio):
        w_oihw = jnp.transpose(w_hwio, (3, 2, 0, 1))
        return jax.lax.conv_general_dilated(
            x, w_oihw, window_strides=(1, 1), padding=((1, 1), (1, 1)),
            dimension_numbers=("NCHW", "OIHW", "NCHW"))

    def gn_relu(x, gamma, beta):
        N, C, H, W = x.shape
        Cg = C // groups
        xg = x.reshape(N, groups, Cg, H, W)
        mean = xg.mean(axis=(2, 3, 4), keepdims=True)
        var = xg.var(axis=(2, 3, 4), keepdims=True)
        xn = ((xg - mean) / jnp.sqrt(var + 1e-5)).reshape(N, C, H, W)
        return jax.nn.relu(xn * gamma[None, :, None, None]
                           + beta[None, :, None, None])

    y = gn_relu(conv3(x, params["w1"]), params["g1"], params["b1"])
    y = gn_relu(conv3(y, params["w2"]), params["g2"], params["b2"])

    sq = y.mean(axis=(2, 3))
    h = jax.nn.relu(sq @ params["fc1w"] + params["fc1b"])
    ch = jax.nn.sigmoid(h @ params["fc2w"] + params["fc2b"])
    cse = y * ch[:, :, None, None]
    s = jax.nn.sigmoid(jnp.einsum("nchw,c->nhw", y, params["ssew"])
                       + params["sseb"])
    sse = y * s[:, None, :, :]
    return jnp.maximum(cse, sse)


# ----------------------------------------------------------------------------
# Main
# ----------------------------------------------------------------------------
if __name__ == "__main__":
    key = jax.random.PRNGKey(0)
    ks = jax.random.split(key, 16)

    # Shapes: Up(in_channels=8, out_channels=8); x1 is the low-res feature map.
    N, C1, H1, W1 = 2, 4, 8, 8
    C2, H2, W2 = 4, 16, 16
    Cin = C1 + C2        # 8, input to DoubleConv
    Cmid = 8             # mid_channels = out_channels
    Cout = 8             # out_channels (divisible by 4 for GroupNorm(4))
    Cr = Cout // 2       # reduction_ratio = 2

    x1 = jax.random.normal(ks[0], (N, C1, H1, W1), jnp.float32)
    x2 = jax.random.normal(ks[1], (N, C2, H2, W2), jnp.float32)

    params = {
        # conv weights stored as (kh, kw, Cin, Cout)  (HWIO)
        "w1": 0.1 * jax.random.normal(ks[2], (3, 3, Cin, Cmid), jnp.float32),
        "g1": 1.0 + 0.1 * jax.random.normal(ks[3], (Cmid,), jnp.float32),
        "b1": 0.1 * jax.random.normal(ks[4], (Cmid,), jnp.float32),
        "w2": 0.1 * jax.random.normal(ks[5], (3, 3, Cmid, Cout), jnp.float32),
        "g2": 1.0 + 0.1 * jax.random.normal(ks[6], (Cout,), jnp.float32),
        "b2": 0.1 * jax.random.normal(ks[7], (Cout,), jnp.float32),
        # channel-SE: Linear(C, C/2) then Linear(C/2, C)
        "fc1w": 0.2 * jax.random.normal(ks[8], (Cout, Cr), jnp.float32),
        "fc1b": 0.1 * jax.random.normal(ks[9], (Cr,), jnp.float32),
        "fc2w": 0.2 * jax.random.normal(ks[10], (Cr, Cout), jnp.float32),
        "fc2b": 0.1 * jax.random.normal(ks[11], (Cout,), jnp.float32),
        # spatial-SE: 1x1 conv C -> 1 with bias
        "ssew": 0.2 * jax.random.normal(ks[12], (Cout,), jnp.float32),
        "sseb": 0.1 * jax.random.normal(ks[13], (), jnp.float32),
    }

    out = up_forward_pallas(x1, x2, params)
    out = jax.block_until_ready(out)

    ref = jax.block_until_ready(up_forward_ref(x1, x2, params))

    assert out.shape == (N, Cout, H2, W2), out.shape
    assert bool(jnp.all(jnp.isfinite(out)))
    np.testing.assert_allclose(np.asarray(out), np.asarray(ref),
                               rtol=2e-2, atol=2e-2)

    print("KERNEL_OK")
</pallas_src>

<mosaic_0001>
module attributes {stable_mosaic.version = 11 : i64} {
  func.func @_up_fused_kernel(%arg0: i32, %arg1: memref<1x256x8xf32, #tpu.memory_space<vmem>>, %arg2: memref<2x128x128xbf16, #tpu.memory_space<vmem>>, %arg3: memref<4x128x128xf32, #tpu.memory_space<vmem>>, %arg4: memref<8x128xf32, #tpu.memory_space<vmem>>, %arg5: memref<8x128xf32, #tpu.memory_space<vmem>>, %arg6: memref<1x256x8xf32, #tpu.memory_space<vmem>>, %arg7: memref<304x128xf32, #tpu.memory_space<vmem>>) attributes {dimension_semantics = [#tpu.dimension_semantics<parallel>], iteration_bounds = array<i64: 2>, scalar_prefetch = 0 : i64, scratch_operands = 1 : i64, tpu.core_type = #tpu.core_type<tc>, window_params = [{transform_indices = @transform_0, window_bounds = array<i64: 1, 256, 8>}, {pipeline_mode = #tpu.pipeline_mode<synchronous>, transform_indices = @transform_1, window_bounds = array<i64: 2, 128, 128>}, {pipeline_mode = #tpu.pipeline_mode<synchronous>, transform_indices = @transform_2, window_bounds = array<i64: 4, 128, 128>}, {pipeline_mode = #tpu.pipeline_mode<synchronous>, transform_indices = @transform_3, window_bounds = array<i64: 8, 128>}, {pipeline_mode = #tpu.pipeline_mode<synchronous>, transform_indices = @transform_4, window_bounds = array<i64: 8, 128>}, {transform_indices = @transform_5, window_bounds = array<i64: 1, 256, 8>}]} {
    %cst = arith.constant 0.000000e+00 : f32
    %0 = vector.broadcast %cst : f32 to vector<24x128xf32>
    %c0 = arith.constant 0 : index
    %c0_0 = arith.constant 0 : index
    %1 = vector.load %arg7[%c0, %c0_0] : memref<304x128xf32, #tpu.memory_space<vmem>>, vector<24x128xf32>
    tpu.vector_store %arg7[%c0, %c0_0], %0 {strides = array<i32>} : memref<304x128xf32, #tpu.memory_space<vmem>>, vector<24x128xf32>,
    %c280 = arith.constant 280 : index
    %c0_1 = arith.constant 0 : index
    %2 = vector.load %arg7[%c280, %c0_1] : memref<304x128xf32, #tpu.memory_space<vmem>>, vector<24x128xf32>
    tpu.vector_store %arg7[%c280, %c0_1], %0 {strides = array<i32>} : memref<304x128xf32, #tpu.memory_space<vmem>>, vector<24x128xf32>,
    %3 = tpu.iota {dimensions = array<i32: 0>} : vector<256x1xi32>
    %c16_i32 = arith.constant 16 : i32
    %c0_i32 = arith.constant 0 : i32
    %4 = arith.cmpi eq, %c16_i32, %c0_i32 : i32
    %c1_i32 = arith.constant 1 : i32
    %5 = arith.select %4, %c1_i32, %c16_i32 : i32
    %6 = vector.broadcast %5 : i32 to vector<256x1xi32>
    %7 = arith.remsi %3, %6 : vector<256x1xi32>
    %c0_i32_2 = arith.constant 0 : i32
    %8 = vector.broadcast %c0_i32_2 : i32 to vector<256x1xi32>
    %9 = arith.cmpi ne, %7, %8 : vector<256x1xi32>
    %c0_i32_3 = arith.constant 0 : i32
    %10 = vector.broadcast %c0_i32_3 : i32 to vector<256x1xi32>
    %11 = arith.cmpi slt, %7, %10 : vector<256x1xi32>
    %c0_i32_4 = arith.constant 0 : i32
    %12 = arith.cmpi slt, %5, %c0_i32_4 : i32
    %13 = vector.broadcast %12 : i1 to vector<256x1xi1>
    %14 = vector.broadcast %13 : vector<256x1xi1> to vector<256x1xi1>
    %15 = arith.xori %11, %14 : vector<256x1xi1>
    %16 = arith.andi %15, %9 : vector<256x1xi1>
    %17 = vector.broadcast %5 : i32 to vector<256x1xi32>
    %18 = arith.addi %7, %17 : vector<256x1xi32>
    %19 = arith.select %16, %18, %7 : vector<256x1xi1>, vector<256x1xi32>
    %c1_i32_5 = arith.constant 1 : i32
    %20 = vector.broadcast %c1_i32_5 : i32 to vector<256x1xi32>
    %21 = arith.cmpi sge, %19, %20 : vector<256x1xi32>
    %c15_i32 = arith.constant 15 : i32
    %22 = vector.broadcast %c15_i32 : i32 to vector<256x1xi32>
    %23 = arith.cmpi slt, %19, %22 : vector<256x1xi32>
    %24 = tpu.iota {dimensions = array<i32: 1>} : vector<1x128xi32>
    %c0_6 = arith.constant 0 : index
    %c0_7 = arith.constant 0 : index
    %25 = vector.load %arg5[%c0_6, %c0_7] : memref<8x128xf32, #tpu.memory_space<vmem>>, vector<1x128xf32>
    %c1 = arith.constant 1 : index
    %c0_8 = arith.constant 0 : index
    %26 = vector.load %arg5[%c1, %c0_8] : memref<8x128xf32, #tpu.memory_space<vmem>>, vector<1x128xf32>
    %c2 = arith.constant 2 : index
    %c0_9 = arith.constant 0 : index
    %27 = vector.load %arg5[%c2, %c0_9] : memref<8x128xf32, #tpu.memory_space<vmem>>, vector<1x128xf32>
    %c3 = arith.constant 3 : index
    %c0_10 = arith.constant 0 : index
    %28 = vector.load %arg5[%c3, %c0_10] : memref<8x128xf32, #tpu.memory_space<vmem>>, vector<1x128xf32>
    %c4 = arith.constant 4 : index
    %c0_11 = arith.constant 0 : index
    %29 = vector.load %arg5[%c4, %c0_11] : memref<8x128xf32, #tpu.memory_space<vmem>>, vector<1x128xf32>
    %c5 = arith.constant 5 : index
    %c0_12 = arith.constant 0 : index
    %30 = vector.load %arg5[%c5, %c0_12] : memref<8x128xf32, #tpu.memory_space<vmem>>, vector<1x128xf32>
    %c6 = arith.constant 6 : index
    %c0_13 = arith.constant 0 : index
    %31 = vector.load %arg5[%c6, %c0_13] : memref<8x128xf32, #tpu.memory_space<vmem>>, vector<1x128xf32>
    %c7 = arith.constant 7 : index
    %c0_14 = arith.constant 0 : index
    %32 = vector.load %arg5[%c7, %c0_14] : memref<8x128xf32, #tpu.memory_space<vmem>>, vector<1x128xf32>
    %cst_15 = arith.constant dense<0.000000e+00> : vector<1xf32>
    %33 = vector.multi_reduction <add>, %32, %cst_15 [1] : vector<1x128xf32> to vector<1xf32>
    %34 = vector.shape_cast %33 : vector<1xf32> to vector<1x1xf32>
    %c0_16 = arith.constant 0 : index
    %c0_17 = arith.constant 0 : index
    %c0_18 = arith.constant 0 : index
    %35 = vector.load %arg1[%c0_16, %c0_17, %c0_18] : memref<1x256x8xf32, #tpu.memory_space<vmem>>, vector<1x256x8xf32>
    %36 = vector.shape_cast %35 : vector<1x256x8xf32> to vector<256x8xf32>
    %c0_19 = arith.constant 0 : index
    %c0_20 = arith.constant 0 : index
    %37 = vector.load %arg4[%c0_19, %c0_20] : memref<8x128xf32, #tpu.memory_space<vmem>>, vector<8x128xf32>
    %cst_21 = arith.constant dense<0.000000e+00> : vector<256x128xf32>
    %38 = tpu.matmul %36, %37, %cst_21 {dimension_numbers = #tpu.dot_dimension_numbers<[1], [0], [0], [1], [0, 0, 1, 1], [], []>} : vector<256x8xf32>, vector<8x128xf32>, vector<256x128xf32> -> vector<256x128xf32>
    %c0_22 = arith.constant 0 : index
    %c0_23 = arith.constant 0 : index
    %c0_24 = arith.constant 0 : index
    %39 = vector.load %arg2[%c0_22, %c0_23, %c0_24] : memref<2x128x128xbf16, #tpu.memory_space<vmem>>, vector<1x128x128xbf16>
    %40 = vector.shape_cast %39 : vector<1x128x128xbf16> to vector<128x128xbf16>
    %c24 = arith.constant 24 : index
    %c0_25 = arith.constant 0 : index
    %41 = vector.load %arg7[%c24, %c0_25] : memref<304x128xf32, #tpu.memory_space<vmem>>, vector<256x128xf32>
    tpu.vector_store %arg7[%c24, %c0_25], %38 {strides = array<i32>} : memref<304x128xf32, #tpu.memory_space<vmem>>, vector<256x128xf32>,
    %cst_26 = arith.constant 0.000000e+00 : f32
    %42 = vector.broadcast %cst_26 : f32 to vector<256x128xf32>
    %c7_27 = arith.constant 7 : index
    %c0_28 = arith.constant 0 : index
    %43 = vector.load %arg7[%c7_27, %c0_28] : memref<304x128xf32, #tpu.memory_space<vmem>>, vector<256x128xf32>
    %c0_i32_29 = arith.constant 0 : i32
    %44 = vector.broadcast %c0_i32_29 : i32 to vector<1x128xi32>
    %45 = arith.cmpi sge, %24, %44 : vector<1x128xi32>
    %c8_i32 = arith.constant 8 : i32
    %46 = vector.broadcast %c8_i32 : i32 to vector<1x128xi32>
    %47 = arith.cmpi slt, %24, %46 : vector<1x128xi32>
    %48 = arith.andi %45, %47 : vector<1x128xi1>
    %49 = vector.broadcast %48 : vector<1x128xi1> to vector<256x128xi1>
    %50 = vector.broadcast %21 : vector<256x1xi1> to vector<256x128xi1>
    %51 = arith.andi %49, %50 : vector<256x128xi1>
    %52 = arith.select %51, %43, %42 : vector<256x128xi1>, vector<256x128xf32>
    %c8 = arith.constant 8 : index
    %c0_30 = arith.constant 0 : index
    %53 = vector.load %arg7[%c8, %c0_30] : memref<304x128xf32, #tpu.memory_space<vmem>>, vector<256x128xf32>
    %c8_i32_31 = arith.constant 8 : i32
    %54 = vector.broadcast %c8_i32_31 : i32 to vector<1x128xi32>
    %55 = arith.cmpi sge, %24, %54 : vector<1x128xi32>
    %c16_i32_32 = arith.constant 16 : i32
    %56 = vector.broadcast %c16_i32_32 : i32 to vector<1x128xi32>
    %57 = arith.cmpi slt, %24, %56 : vector<1x128xi32>
    %58 = arith.andi %55, %57 : vector<1x128xi1>
    %59 = vector.shape_cast %58 : vector<1x128xi1> to vector<1x128xi1>
    %60 = vector.broadcast %59 : vector<1x128xi1> to vector<256x128xi1>
    %61 = arith.select %60, %53, %52 : vector<256x128xi1>, vector<256x128xf32>
    %c9 = arith.constant 9 : index
    %c0_33 = arith.constant 0 : index
    %62 = vector.load %arg7[%c9, %c0_33] : memref<304x128xf32, #tpu.memory_space<vmem>>, vector<256x128xf32>
    %c16_i32_34 = arith.constant 16 : i32
    %63 = vector.broadcast %c16_i32_34 : i32 to vector<1x128xi32>
    %64 = arith.cmpi sge, %24, %63 : vector<1x128xi32>
    %c24_i32 = arith.constant 24 : i32
    %65 = vector.broadcast %c24_i32 : i32 to vector<1x128xi32>
    %66 = arith.cmpi slt, %24, %65 : vector<1x128xi32>
    %67 = arith.andi %64, %66 : vector<1x128xi1>
    %68 = vector.broadcast %67 : vector<1x128xi1> to vector<256x128xi1>
    %69 = vector.broadcast %23 : vector<256x1xi1> to vector<256x128xi1>
    %70 = arith.andi %68, %69 : vector<256x128xi1>
    %71 = arith.select %70, %62, %61 : vector<256x128xi1>, vector<256x128xf32>
    %c23 = arith.constant 23 : index
    %c0_35 = arith.constant 0 : index
    %72 = vector.load %arg7[%c23, %c0_35] : memref<304x128xf32, #tpu.memory_space<vmem>>, vector<256x128xf32>
    %c24_i32_36 = arith.constant 24 : i32
    %73 = vector.broadcast %c24_i32_36 : i32 to vector<1x128xi32>
    %74 = arith.cmpi sge, %24, %73 : vector<1x128xi32>
    %c32_i32 = arith.constant 32 : i32
    %75 = vector.broadcast %c32_i32 : i32 to vector<1x128xi32>
    %76 = arith.cmpi slt, %24, %75 : vector<1x128xi32>
    %77 = arith.andi %74, %76 : vector<1x128xi1>
    %78 = vector.broadcast %77 : vector<1x128xi1> to vector<256x128xi1>
    %79 = vector.broadcast %21 : vector<256x1xi1> to vector<256x128xi1>
    %80 = arith.andi %78, %79 : vector<256x128xi1>
    %81 = arith.select %80, %72, %71 : vector<256x128xi1>, vector<256x128xf32>
    %c24_37 = arith.constant 24 : index
    %c0_38 = arith.constant 0 : index
    %82 = vector.load %arg7[%c24_37, %c0_38] : memref<304x128xf32, #tpu.memory_space<vmem>>, vector<256x128xf32>
    %c32_i32_39 = arith.constant 32 : i32
    %83 = vector.broadcast %c32_i32_39 : i32 to vector<1x128xi32>
    %84 = arith.cmpi sge, %24, %83 : vector<1x128xi32>
    %c40_i32 = arith.constant 40 : i32
    %85 = vector.broadcast %c40_i32 : i32 to vector<1x128xi32>
    %86 = arith.cmpi slt, %24, %85 : vector<1x128xi32>
    %87 = arith.andi %84, %86 : vector<1x128xi1>
    %88 = vector.shape_cast %87 : vector<1x128xi1> to vector<1x128xi1>
    %89 = vector.broadcast %88 : vector<1x128xi1> to vector<256x128xi1>
    %90 = arith.select %89, %82, %81 : vector<256x128xi1>, vector<256x128xf32>
    %c25 = arith.constant 25 : index
    %c0_40 = arith.constant 0 : index
    %91 = vector.load %arg7[%c25, %c0_40] : memref<304x128xf32, #tpu.memory_space<vmem>>, vector<256x128xf32>
    %c40_i32_41 = arith.constant 40 : i32
    %92 = vector.broadcast %c40_i32_41 : i32 to vector<1x128xi32>
    %93 = arith.cmpi sge, %24, %92 : vector<1x128xi32>
    %c48_i32 = arith.constant 48 : i32
    %94 = vector.broadcast %c48_i32 : i32 to vector<1x128xi32>
    %95 = arith.cmpi slt, %24, %94 : vector<1x128xi32>
    %96 = arith.andi %93, %95 : vector<1x128xi1>
    %97 = vector.broadcast %96 : vector<1x128xi1> to vector<256x128xi1>
    %98 = vector.broadcast %23 : vector<256x1xi1> to vector<256x128xi1>
    %99 = arith.andi %97, %98 : vector<256x128xi1>
    %100 = arith.select %99, %91, %90 : vector<256x128xi1>, vector<256x128xf32>
    %c39 = arith.constant 39 : index
    %c0_42 = arith.constant 0 : index
    %101 = vector.load %arg7[%c39, %c0_42] : memref<304x128xf32, #tpu.memory_space<vmem>>, vector<256x128xf32>
    %c48_i32_43 = arith.constant 48 : i32
    %102 = vector.broadcast %c48_i32_43 : i32 to vector<1x128xi32>
    %103 = arith.cmpi sge, %24, %102 : vector<1x128xi32>
    %c56_i32 = arith.constant 56 : i32
    %104 = vector.broadcast %c56_i32 : i32 to vector<1x128xi32>
    %105 = arith.cmpi slt, %24, %104 : vector<1x128xi32>
    %106 = arith.andi %103, %105 : vector<1x128xi1>
    %107 = vector.broadcast %106 : vector<1x128xi1> to vector<256x128xi1>
    %108 = vector.broadcast %21 : vector<256x1xi1> to vector<256x128xi1>
    %109 = arith.andi %107, %108 : vector<256x128xi1>
    %110 = arith.select %109, %101, %100 : vector<256x128xi1>, vector<256x128xf32>
    %c40 = arith.constant 40 : index
    %c0_44 = arith.constant 0 : index
    %111 = vector.load %arg7[%c40, %c0_44] : memref<304x128xf32, #tpu.memory_space<vmem>>, vector<256x128xf32>
    %c56_i32_45 = arith.constant 56 : i32
    %112 = vector.broadcast %c56_i32_45 : i32 to vector<1x128xi32>
    %113 = arith.cmpi sge, %24, %112 : vector<1x128xi32>
    %c64_i32 = arith.constant 64 : i32
    %114 = vector.broadcast %c64_i32 : i32 to vector<1x128xi32>
    %115 = arith.cmpi slt, %24, %114 : vector<1x128xi32>
    %116 = arith.andi %113, %115 : vector<1x128xi1>
    %117 = vector.shape_cast %116 : vector<1x128xi1> to vector<1x128xi1>
    %118 = vector.broadcast %117 : vector<1x128xi1> to vector<256x128xi1>
    %119 = arith.select %118, %111, %110 : vector<256x128xi1>, vector<256x128xf32>
    %c41 = arith.constant 41 : index
    %c0_46 = arith.constant 0 : index
    %120 = vector.load %arg7[%c41, %c0_46] : memref<304x128xf32, #tpu.memory_space<vmem>>, vector<256x128xf32>
    %c64_i32_47 = arith.constant 64 : i32
    %121 = vector.broadcast %c64_i32_47 : i32 to vector<1x128xi32>
    %122 = arith.cmpi sge, %24, %121 : vector<1x128xi32>
    %c72_i32 = arith.constant 72 : i32
    %123 = vector.broadcast %c72_i32 : i32 to vector<1x128xi32>
    %124 = arith.cmpi slt, %24, %123 : vector<1x128xi32>
    %125 = arith.andi %122, %124 : vector<1x128xi1>
    %126 = vector.broadcast %125 : vector<1x128xi1> to vector<256x128xi1>
    %127 = vector.broadcast %23 : vector<256x1xi1> to vector<256x128xi1>
    %128 = arith.andi %126, %127 : vector<256x128xi1>
    %129 = arith.select %128, %120, %119 : vector<256x128xi1>, vector<256x128xf32>
    %130 = arith.truncf %129 : vector<256x128xf32> to vector<256x128xbf16>
    %cst_48 = arith.constant dense<0.000000e+00> : vector<256x128xf32>
    %131 = tpu.matmul %130, %40, %cst_48 {dimension_numbers = #tpu.dot_dimension_numbers<[1], [0], [0], [1], [0, 0, 1, 1], [], []>} : vector<256x128xbf16>, vector<128x128xbf16>, vector<256x128xf32> -> vector<256x128xf32>
    %c0_49 = arith.constant 0 : index
    %c0_50 = arith.constant 0 : index
    %c0_51 = arith.constant 0 : index
    %132 = vector.load %arg3[%c0_49, %c0_50, %c0_51] : memref<4x128x128xf32, #tpu.memory_space<vmem>>, vector<1x128x128xf32>
    %133 = vector.shape_cast %132 : vector<1x128x128xf32> to vector<128x128xf32>
    %cst_52 = arith.constant dense<0.000000e+00> : vector<128xf32>
    %134 = vector.multi_reduction <add>, %131, %cst_52 [0] : vector<256x128xf32> to vector<128xf32>
    %135 = vector.shape_cast %134 : vector<128xf32> to vector<1x128xf32>
    %cst_53 = arith.constant 2.560000e+02 : f32
    %136 = vector.broadcast %cst_53 : f32 to vector<1x128xf32>
    %137 = arith.divf %135, %136 : vector<1x128xf32>
    %cst_54 = arith.constant dense<0.000000e+00> : vector<1x128xf32>
    %138 = tpu.matmul %137, %133, %cst_54 {dimension_numbers = #tpu.dot_dimension_numbers<[1], [0], [0], [1], [0, 0, 1, 1], [], []>} : vector<1x128xf32>, vector<128x128xf32>, vector<1x128xf32> -> vector<1x128xf32>
    %139 = vector.broadcast %138 : vector<1x128xf32> to vector<256x128xf32>
    %140 = arith.subf %131, %139 : vector<256x128xf32>
    %141 = arith.mulf %140, %140 : vector<256x128xf32>
    %cst_55 = arith.constant dense<0.000000e+00> : vector<128xf32>
    %142 = vector.multi_reduction <add>, %141, %cst_55 [0] : vector<256x128xf32> to vector<128xf32>
    %143 = vector.shape_cast %142 : vector<128xf32> to vector<1x128xf32>
    %cst_56 = arith.constant 2.560000e+02 : f32
    %144 = vector.broadcast %cst_56 : f32 to vector<1x128xf32>
    %145 = arith.divf %143, %144 : vector<1x128xf32>
    %cst_57 = arith.constant dense<0.000000e+00> : vector<1x128xf32>
    %146 = tpu.matmul %145, %133, %cst_57 {dimension_numbers = #tpu.dot_dimension_numbers<[1], [0], [0], [1], [0, 0, 1, 1], [], []>} : vector<1x128xf32>, vector<128x128xf32>, vector<1x128xf32> -> vector<1x128xf32>
    %cst_58 = arith.constant 9.99999974E-6 : f32
    %147 = vector.broadcast %cst_58 : f32 to vector<1x128xf32>
    %148 = arith.addf %146, %147 : vector<1x128xf32>
    %149 = math.rsqrt %148 : vector<1x128xf32>
    %150 = vector.broadcast %149 : vector<1x128xf32> to vector<256x128xf32>
    %151 = arith.mulf %140, %150 : vector<256x128xf32>
    %152 = vector.broadcast %25 : vector<1x128xf32> to vector<256x128xf32>
    %153 = arith.mulf %151, %152 : vector<256x128xf32>
    %154 = vector.broadcast %26 : vector<1x128xf32> to vector<256x128xf32>
    %155 = arith.addf %153, %154 : vector<256x128xf32>
    %cst_59 = arith.constant 0.000000e+00 : f32
    %156 = vector.broadcast %cst_59 : f32 to vector<256x128xf32>
    %157 = arith.maximumf %155, %156 : vector<256x128xf32>
    %c1_60 = arith.constant 1 : index
    %c0_61 = arith.constant 0 : index
    %c0_62 = arith.constant 0 : index
    %158 = vector.load %arg3[%c1_60, %c0_61, %c0_62] : memref<4x128x128xf32, #tpu.memory_space<vmem>>, vector<1x128x128xf32>
    %159 = vector.shape_cast %158 : vector<1x128x128xf32> to vector<128x128xf32>
    %cst_63 = arith.constant dense<0.000000e+00> : vector<256x128xf32>
    %160 = tpu.matmul %157, %159, %cst_63 {dimension_numbers = #tpu.dot_dimension_numbers<[1], [0], [0], [1], [0, 0, 1, 1], [], []>} : vector<256x128xf32>, vector<128x128xf32>, vector<256x128xf32> -> vector<256x128xf32>
    %c1_64 = arith.constant 1 : index
    %c0_65 = arith.constant 0 : index
    %c0_66 = arith.constant 0 : index
    %161 = vector.load %arg2[%c1_64, %c0_65, %c0_66] : memref<2x128x128xbf16, #tpu.memory_space<vmem>>, vector<1x128x128xbf16>
    %162 = vector.shape_cast %161 : vector<1x128x128xbf16> to vector<128x128xbf16>
    %c24_67 = arith.constant 24 : index
    %c0_68 = arith.constant 0 : index
    %163 = vector.load %arg7[%c24_67, %c0_68] : memref<304x128xf32, #tpu.memory_space<vmem>>, vector<256x128xf32>
    tpu.vector_store %arg7[%c24_67, %c0_68], %160 {strides = array<i32>} : memref<304x128xf32, #tpu.memory_space<vmem>>, vector<256x128xf32>,
    %cst_69 = arith.constant 0.000000e+00 : f32
    %164 = vector.broadcast %cst_69 : f32 to vector<256x128xf32>
    %c7_70 = arith.constant 7 : index
    %c0_71 = arith.constant 0 : index
    %165 = vector.load %arg7[%c7_70, %c0_71] : memref<304x128xf32, #tpu.memory_space<vmem>>, vector<256x128xf32>
    %c0_i32_72 = arith.constant 0 : i32
    %166 = vector.broadcast %c0_i32_72 : i32 to vector<1x128xi32>
    %167 = arith.cmpi sge, %24, %166 : vector<1x128xi32>
    %c8_i32_73 = arith.constant 8 : i32
    %168 = vector.broadcast %c8_i32_73 : i32 to vector<1x128xi32>
    %169 = arith.cmpi slt, %24, %168 : vector<1x128xi32>
    %170 = arith.andi %167, %169 : vector<1x128xi1>
    %171 = vector.broadcast %170 : vector<1x128xi1> to vector<256x128xi1>
    %172 = vector.broadcast %21 : vector<256x1xi1> to vector<256x128xi1>
    %173 = arith.andi %171, %172 : vector<256x128xi1>
    %174 = arith.select %173, %165, %164 : vector<256x128xi1>, vector<256x128xf32>
    %c8_74 = arith.constant 8 : index
    %c0_75 = arith.constant 0 : index
    %175 = vector.load %arg7[%c8_74, %c0_75] : memref<304x128xf32, #tpu.memory_space<vmem>>, vector<256x128xf32>
    %c8_i32_76 = arith.constant 8 : i32
    %176 = vector.broadcast %c8_i32_76 : i32 to vector<1x128xi32>
    %177 = arith.cmpi sge, %24, %176 : vector<1x128xi32>
    %c16_i32_77 = arith.constant 16 : i32
    %178 = vector.broadcast %c16_i32_77 : i32 to vector<1x128xi32>
    %179 = arith.cmpi slt, %24, %178 : vector<1x128xi32>
    %180 = arith.andi %177, %179 : vector<1x128xi1>
    %181 = vector.shape_cast %180 : vector<1x128xi1> to vector<1x128xi1>
    %182 = vector.broadcast %181 : vector<1x128xi1> to vector<256x128xi1>
    %183 = arith.select %182, %175, %174 : vector<256x128xi1>, vector<256x128xf32>
    %c9_78 = arith.constant 9 : index
    %c0_79 = arith.constant 0 : index
    %184 = vector.load %arg7[%c9_78, %c0_79] : memref<304x128xf32, #tpu.memory_space<vmem>>, vector<256x128xf32>
    %c16_i32_80 = arith.constant 16 : i32
    %185 = vector.broadcast %c16_i32_80 : i32 to vector<1x128xi32>
    %186 = arith.cmpi sge, %24, %185 : vector<1x128xi32>
    %c24_i32_81 = arith.constant 24 : i32
    %187 = vector.broadcast %c24_i32_81 : i32 to vector<1x128xi32>
    %188 = arith.cmpi slt, %24, %187 : vector<1x128xi32>
    %189 = arith.andi %186, %188 : vector<1x128xi1>
    %190 = vector.broadcast %189 : vector<1x128xi1> to vector<256x128xi1>
    %191 = vector.broadcast %23 : vector<256x1xi1> to vector<256x128xi1>
    %192 = arith.andi %190, %191 : vector<256x128xi1>
    %193 = arith.select %192, %184, %183 : vector<256x128xi1>, vector<256x128xf32>
    %c23_82 = arith.constant 23 : index
    %c0_83 = arith.constant 0 : index
    %194 = vector.load %arg7[%c23_82, %c0_83] : memref<304x128xf32, #tpu.memory_space<vmem>>, vector<256x128xf32>
    %c24_i32_84 = arith.constant 24 : i32
    %195 = vector.broadcast %c24_i32_84 : i32 to vector<1x128xi32>
    %196 = arith.cmpi sge, %24, %195 : vector<1x128xi32>
    %c32_i32_85 = arith.constant 32 : i32
    %197 = vector.broadcast %c32_i32_85 : i32 to vector<1x128xi32>
    %198 = arith.cmpi slt, %24, %197 : vector<1x128xi32>
    %199 = arith.andi %196, %198 : vector<1x128xi1>
    %200 = vector.broadcast %199 : vector<1x128xi1> to vector<256x128xi1>
    %201 = vector.broadcast %21 : vector<256x1xi1> to vector<256x128xi1>
    %202 = arith.andi %200, %201 : vector<256x128xi1>
    %203 = arith.select %202, %194, %193 : vector<256x128xi1>, vector<256x128xf32>
    %c24_86 = arith.constant 24 : index
    %c0_87 = arith.constant 0 : index
    %204 = vector.load %arg7[%c24_86, %c0_87] : memref<304x128xf32, #tpu.memory_space<vmem>>, vector<256x128xf32>
    %c32_i32_88 = arith.constant 32 : i32
    %205 = vector.broadcast %c32_i32_88 : i32 to vector<1x128xi32>
    %206 = arith.cmpi sge, %24, %205 : vector<1x128xi32>
    %c40_i32_89 = arith.constant 40 : i32
    %207 = vector.broadcast %c40_i32_89 : i32 to vector<1x128xi32>
    %208 = arith.cmpi slt, %24, %207 : vector<1x128xi32>
    %209 = arith.andi %206, %208 : vector<1x128xi1>
    %210 = vector.shape_cast %209 : vector<1x128xi1> to vector<1x128xi1>
    %211 = vector.broadcast %210 : vector<1x128xi1> to vector<256x128xi1>
    %212 = arith.select %211, %204, %203 : vector<256x128xi1>, vector<256x128xf32>
    %c25_90 = arith.constant 25 : index
    %c0_91 = arith.constant 0 : index
    %213 = vector.load %arg7[%c25_90, %c0_91] : memref<304x128xf32, #tpu.memory_space<vmem>>, vector<256x128xf32>
    %c40_i32_92 = arith.constant 40 : i32
    %214 = vector.broadcast %c40_i32_92 : i32 to vector<1x128xi32>
    %215 = arith.cmpi sge, %24, %214 : vector<1x128xi32>
    %c48_i32_93 = arith.constant 48 : i32
    %216 = vector.broadcast %c48_i32_93 : i32 to vector<1x128xi32>
    %217 = arith.cmpi slt, %24, %216 : vector<1x128xi32>
    %218 = arith.andi %215, %217 : vector<1x128xi1>
    %219 = vector.broadcast %218 : vector<1x128xi1> to vector<256x128xi1>
    %220 = vector.broadcast %23 : vector<256x1xi1> to vector<256x128xi1>
    %221 = arith.andi %219, %220 : vector<256x128xi1>
    %222 = arith.select %221, %213, %212 : vector<256x128xi1>, vector<256x128xf32>
    %c39_94 = arith.constant 39 : index
    %c0_95 = arith.constant 0 : index
    %223 = vector.load %arg7[%c39_94, %c0_95] : memref<304x128xf32, #tpu.memory_space<vmem>>, vector<256x128xf32>
    %c48_i32_96 = arith.constant 48 : i32
    %224 = vector.broadcast %c48_i32_96 : i32 to vector<1x128xi32>
    %225 = arith.cmpi sge, %24, %224 : vector<1x128xi32>
    %c56_i32_97 = arith.constant 56 : i32
    %226 = vector.broadcast %c56_i32_97 : i32 to vector<1x128xi32>
    %227 = arith.cmpi slt, %24, %226 : vector<1x128xi32>
    %228 = arith.andi %225, %227 : vector<1x128xi1>
    %229 = vector.broadcast %228 : vector<1x128xi1> to vector<256x128xi1>
    %230 = vector.broadcast %21 : vector<256x1xi1> to vector<256x128xi1>
    %231 = arith.andi %229, %230 : vector<256x128xi1>
    %232 = arith.select %231, %223, %222 : vector<256x128xi1>, vector<256x128xf32>
    %c40_98 = arith.constant 40 : index
    %c0_99 = arith.constant 0 : index
    %233 = vector.load %arg7[%c40_98, %c0_99] : memref<304x128xf32, #tpu.memory_space<vmem>>, vector<256x128xf32>
    %c56_i32_100 = arith.constant 56 : i32
    %234 = vector.broadcast %c56_i32_100 : i32 to vector<1x128xi32>
    %235 = arith.cmpi sge, %24, %234 : vector<1x128xi32>
    %c64_i32_101 = arith.constant 64 : i32
    %236 = vector.broadcast %c64_i32_101 : i32 to vector<1x128xi32>
    %237 = arith.cmpi slt, %24, %236 : vector<1x128xi32>
    %238 = arith.andi %235, %237 : vector<1x128xi1>
    %239 = vector.shape_cast %238 : vector<1x128xi1> to vector<1x128xi1>
    %240 = vector.broadcast %239 : vector<1x128xi1> to vector<256x128xi1>
    %241 = arith.select %240, %233, %232 : vector<256x128xi1>, vector<256x128xf32>
    %c41_102 = arith.constant 41 : index
    %c0_103 = arith.constant 0 : index
    %242 = vector.load %arg7[%c41_102, %c0_103] : memref<304x128xf32, #tpu.memory_space<vmem>>, vector<256x128xf32>
    %c64_i32_104 = arith.constant 64 : i32
    %243 = vector.broadcast %c64_i32_104 : i32 to vector<1x128xi32>
    %244 = arith.cmpi sge, %24, %243 : vector<1x128xi32>
    %c72_i32_105 = arith.constant 72 : i32
    %245 = vector.broadcast %c72_i32_105 : i32 to vector<1x128xi32>
    %246 = arith.cmpi slt, %24, %245 : vector<1x128xi32>
    %247 = arith.andi %244, %246 : vector<1x128xi1>
    %248 = vector.broadcast %247 : vector<1x128xi1> to vector<256x128xi1>
    %249 = vector.broadcast %23 : vector<256x1xi1> to vector<256x128xi1>
    %250 = arith.andi %248, %249 : vector<256x128xi1>
    %251 = arith.select %250, %242, %241 : vector<256x128xi1>, vector<256x128xf32>
    %252 = arith.truncf %251 : vector<256x128xf32> to vector<256x128xbf16>
    %cst_106 = arith.constant dense<0.000000e+00> : vector<256x128xf32>
    %253 = tpu.matmul %252, %162, %cst_106 {dimension_numbers = #tpu.dot_dimension_numbers<[1], [0], [0], [1], [0, 0, 1, 1], [], []>} : vector<256x128xbf16>, vector<128x128xbf16>, vector<256x128xf32> -> vector<256x128xf32>
    %c0_107 = arith.constant 0 : index
    %c0_108 = arith.constant 0 : index
    %c0_109 = arith.constant 0 : index
    %254 = vector.load %arg3[%c0_107, %c0_108, %c0_109] : memref<4x128x128xf32, #tpu.memory_space<vmem>>, vector<1x128x128xf32>
    %255 = vector.shape_cast %254 : vector<1x128x128xf32> to vector<128x128xf32>
    %cst_110 = arith.constant dense<0.000000e+00> : vector<128xf32>
    %256 = vector.multi_reduction <add>, %253, %cst_110 [0] : vector<256x128xf32> to vector<128xf32>
    %257 = vector.shape_cast %256 : vector<128xf32> to vector<1x128xf32>
    %cst_111 = arith.constant 2.560000e+02 : f32
    %258 = vector.broadcast %cst_111 : f32 to vector<1x128xf32>
    %259 = arith.divf %257, %258 : vector<1x128xf32>
    %cst_112 = arith.constant dense<0.000000e+00> : vector<1x128xf32>
    %260 = tpu.matmul %259, %255, %cst_112 {dimension_numbers = #tpu.dot_dimension_numbers<[1], [0], [0], [1], [0, 0, 1, 1], [], []>} : vector<1x128xf32>, vector<128x128xf32>, vector<1x128xf32> -> vector<1x128xf32>
    %261 = vector.broadcast %260 : vector<1x128xf32> to vector<256x128xf32>
    %262 = arith.subf %253, %261 : vector<256x128xf32>
    %263 = arith.mulf %262, %262 : vector<256x128xf32>
    %cst_113 = arith.constant dense<0.000000e+00> : vector<128xf32>
    %264 = vector.multi_reduction <add>, %263, %cst_113 [0] : vector<256x128xf32> to vector<128xf32>
    %265 = vector.shape_cast %264 : vector<128xf32> to vector<1x128xf32>
    %cst_114 = arith.constant 2.560000e+02 : f32
    %266 = vector.broadcast %cst_114 : f32 to vector<1x128xf32>
    %267 = arith.divf %265, %266 : vector<1x128xf32>
    %cst_115 = arith.constant dense<0.000000e+00> : vector<1x128xf32>
    %268 = tpu.matmul %267, %255, %cst_115 {dimension_numbers = #tpu.dot_dimension_numbers<[1], [0], [0], [1], [0, 0, 1, 1], [], []>} : vector<1x128xf32>, vector<128x128xf32>, vector<1x128xf32> -> vector<1x128xf32>
    %cst_116 = arith.constant 9.99999974E-6 : f32
    %269 = vector.broadcast %cst_116 : f32 to vector<1x128xf32>
    %270 = arith.addf %268, %269 : vector<1x128xf32>
    %271 = math.rsqrt %270 : vector<1x128xf32>
    %272 = vector.broadcast %271 : vector<1x128xf32> to vector<256x128xf32>
    %273 = arith.mulf %262, %272 : vector<256x128xf32>
    %274 = vector.broadcast %27 : vector<1x128xf32> to vector<256x128xf32>
    %275 = arith.mulf %273, %274 : vector<256x128xf32>
    %276 = vector.broadcast %28 : vector<1x128xf32> to vector<256x128xf32>
    %277 = arith.addf %275, %276 : vector<256x128xf32>
    %cst_117 = arith.constant 0.000000e+00 : f32
    %278 = vector.broadcast %cst_117 : f32 to vector<256x128xf32>
    %279 = arith.maximumf %277, %278 : vector<256x128xf32>
    %cst_118 = arith.constant dense<0.000000e+00> : vector<128xf32>
    %280 = vector.multi_reduction <add>, %279, %cst_118 [0] : vector<256x128xf32> to vector<128xf32>
    %281 = vector.shape_cast %280 : vector<128xf32> to vector<1x128xf32>
    %cst_119 = arith.constant 2.560000e+02 : f32
    %282 = vector.broadcast %cst_119 : f32 to vector<1x128xf32>
    %283 = arith.divf %281, %282 : vector<1x128xf32>
    %c2_120 = arith.constant 2 : index
    %c0_121 = arith.constant 0 : index
    %c0_122 = arith.constant 0 : index
    %284 = vector.load %arg3[%c2_120, %c0_121, %c0_122] : memref<4x128x128xf32, #tpu.memory_space<vmem>>, vector<1x128x128xf32>
    %285 = vector.shape_cast %284 : vector<1x128x128xf32> to vector<128x128xf32>
    %cst_123 = arith.constant dense<0.000000e+00> : vector<1x128xf32>
    %286 = tpu.matmul %283, %285, %cst_123 {dimension_numbers = #tpu.dot_dimension_numbers<[1], [0], [0], [1], [0, 0, 1, 1], [], []>} : vector<1x128xf32>, vector<128x128xf32>, vector<1x128xf32> -> vector<1x128xf32>
    %287 = arith.addf %286, %29 : vector<1x128xf32>
    %cst_124 = arith.constant 0.000000e+00 : f32
    %288 = vector.broadcast %cst_124 : f32 to vector<1x128xf32>
    %289 = arith.maximumf %287, %288 : vector<1x128xf32>
    %c3_125 = arith.constant 3 : index
    %c0_126 = arith.constant 0 : index
    %c0_127 = arith.constant 0 : index
    %290 = vector.load %arg3[%c3_125, %c0_126, %c0_127] : memref<4x128x128xf32, #tpu.memory_space<vmem>>, vector<1x128x128xf32>
    %291 = vector.shape_cast %290 : vector<1x128x128xf32> to vector<128x128xf32>
    %cst_128 = arith.constant dense<0.000000e+00> : vector<1x128xf32>
    %292 = tpu.matmul %289, %291, %cst_128 {dimension_numbers = #tpu.dot_dimension_numbers<[1], [0], [0], [1], [0, 0, 1, 1], [], []>} : vector<1x128xf32>, vector<128x128xf32>, vector<1x128xf32> -> vector<1x128xf32>
    %293 = arith.addf %292, %30 : vector<1x128xf32>
    %294 = arith.negf %293 : vector<1x128xf32>
    %295 = math.exp %294 : vector<1x128xf32>
    %cst_129 = arith.constant 1.000000e+00 : f32
    %296 = vector.broadcast %cst_129 : f32 to vector<1x128xf32>
    %297 = arith.addf %296, %295 : vector<1x128xf32>
    %298 = arith.divf %296, %297 : vector<1x128xf32>
    %299 = vector.broadcast %298 : vector<1x128xf32> to vector<256x128xf32>
    %300 = arith.mulf %279, %299 : vector<256x128xf32>
    %301 = vector.broadcast %31 : vector<1x128xf32> to vector<256x128xf32>
    %302 = arith.mulf %279, %301 : vector<256x128xf32>
    %cst_130 = arith.constant dense<0.000000e+00> : vector<256xf32>
    %303 = vector.multi_reduction <add>, %302, %cst_130 [1] : vector<256x128xf32> to vector<256xf32>
    %304 = vector.shape_cast %303 : vector<256xf32> to vector<256x1xf32>
    %305 = vector.broadcast %34 : vector<1x1xf32> to vector<256x1xf32>
    %306 = arith.addf %304, %305 : vector<256x1xf32>
    %307 = arith.negf %306 : vector<256x1xf32>
    %308 = math.exp %307 : vector<256x1xf32>
    %cst_131 = arith.constant 1.000000e+00 : f32
    %309 = vector.broadcast %cst_131 : f32 to vector<256x1xf32>
    %310 = arith.addf %309, %308 : vector<256x1xf32>
    %311 = arith.divf %309, %310 : vector<256x1xf32>
    %312 = vector.broadcast %311 : vector<256x1xf32> to vector<256x128xf32>
    %313 = arith.mulf %279, %312 : vector<256x128xf32>
    %314 = arith.maximumf %300, %313 : vector<256x128xf32>
    %315 = vector.extract_strided_slice %314 {offsets = [0, 0], sizes = [256, 8], strides = [1, 1]} : vector<256x128xf32> to vector<256x8xf32>
    %c0_132 = arith.constant 0 : index
    %c0_133 = arith.constant 0 : index
    %c0_134 = arith.constant 0 : index
    %316 = vector.load %arg6[%c0_132, %c0_133, %c0_134] : memref<1x256x8xf32, #tpu.memory_space<vmem>>, vector<1x256x8xf32>
    %317 = vector.shape_cast %316 : vector<1x256x8xf32> to vector<256x8xf32>
    %318 = vector.shape_cast %315 : vector<256x8xf32> to vector<1x256x8xf32>
    tpu.vector_store %arg6[%c0_132, %c0_133, %c0_134], %318 {strides = array<i32>} : memref<1x256x8xf32, #tpu.memory_space<vmem>>, vector<1x256x8xf32>,
    return
  }
  func.func @transform_0(%arg0: i32) -> (i32, i32, i32) {
    %c0_i32 = arith.constant 0 : i32
    %c0_i32_0 = arith.constant 0 : i32
    %c0_i32_1 = arith.constant 0 : i32
    return %arg0, %c0_i32, %c0_i32_0 : i32, i32, i32
  }
  func.func @transform_1(%arg0: i32) -> (i32, i32, i32) {
    %c0_i32 = arith.constant 0 : i32
    %c0_i32_0 = arith.constant 0 : i32
    %c0_i32_1 = arith.constant 0 : i32
    %c0_i32_2 = arith.constant 0 : i32
    return %c0_i32, %c0_i32_0, %c0_i32_1 : i32, i32, i32
  }
  func.func @transform_2(%arg0: i32) -> (i32, i32, i32) {
    %c0_i32 = arith.constant 0 : i32
    %c0_i32_0 = arith.constant 0 : i32
    %c0_i32_1 = arith.constant 0 : i32
    %c0_i32_2 = arith.constant 0 : i32
    return %c0_i32, %c0_i32_0, %c0_i32_1 : i32, i32, i32
  }
  func.func @transform_3(%arg0: i32) -> (i32, i32) {
    %c0_i32 = arith.constant 0 : i32
    %c0_i32_0 = arith.constant 0 : i32
    %c0_i32_1 = arith.constant 0 : i32
    return %c0_i32, %c0_i32_0 : i32, i32
  }
  func.func @transform_4(%arg0: i32) -> (i32, i32) {
    %c0_i32 = arith.constant 0 : i32
    %c0_i32_0 = arith.constant 0 : i32
    %c0_i32_1 = arith.constant 0 : i32
    return %c0_i32, %c0_i32_0 : i32, i32
  }
  func.func @transform_5(%arg0: i32) -> (i32, i32, i32) {
    %c0_i32 = arith.constant 0 : i32
    %c0_i32_0 = arith.constant 0 : i32
    %c0_i32_1 = arith.constant 0 : i32
    return %arg0, %c0_i32, %c0_i32_0 : i32, i32, i32
  }
}

</mosaic_0001>

<bundles_post_ra>
// kernel: up_forward_pallas.1
= control target key start
LH: loop header
LB: loop body
LE: loop exit
PB: predicated region body
PF: predicated region fallthrough
CT: control target
= control target key end

     0   :  { %s4813_s18 = smov 0   ;;  %s10447_s0 = inlined_call_operand.vmem [shape: f32[2,256,8], index: 0, kind: input, shape index: {}]   ;;  %s10448_s1 = inlined_call_operand.vmem [shape: bf16[2,128,128], index: 1, kind: input, shape index: {}]   ;;  %s10449_s2 = inlined_call_operand.vmem [shape: f32[4,128,128], index: 2, kind: input, shape index: {}]   ;;  %s10450_s3 = inlined_call_operand.vmem [shape: f32[8,128], index: 3, kind: input, shape index: {}]   ;;  %s10451_s4 = inlined_call_operand.vmem [shape: f32[8,128], index: 4, kind: input, shape index: {}]   ;;  %s10452_s5 = inlined_call_operand.vmem [shape: f32[2,256,8], index: 5, kind: output, shape index: {}]  }
   0x1 LB: > { %s4396_s19 = sadd.s32 4294967295, %s4779_s18   ;;  %p4400_p0 = scmp.ge.s32.totalorder %s4779_s18, 1  ;;  %s4779_s18 = sphi %s4813_s18, %s15_s18  }
   0x2   : > { %p187_p1 = scmp.lt.s32.totalorder %s4779_s18, 3 }
   0x4   : > { %p188_p2 = pnand %p4400_p0, %p187_p1 }
   0x6   : > { %191 = sbr.rel (%p188_p2) target bundleno = 2291 (0x8f3), region = 40 }
   0xb   : > { %v758_v0 = vld [vmem:[%s10450_s3] sm:$0xff]  ;;  %p215_p3 = scmp.lt.s32.totalorder %s4396_s19, 1  ;;  %vm10456_vm0 = vcmask 64512   ;;  %v4781_v13 = vmov 0.0   ;;  %v4609_v16 = vld [vmem:[%s10448_s1 + $0x38] sm:$0xff]  ;;  %v4608_v17 = vld [vmem:[%s10448_s1 + $0x30] sm:$0xff]  ;;  %v231_v27 = vlaneseq }
   0xc   : > { %871 = vmatpush.msra.mxu0 %v758_v0  ;;  %225 = vst [vmem:[#allocation2] sm:$0xff] %v4781_v13  ;;  %1842 = vmatpush.bf16.msra.mxu1 %v4609_v16  ;;  %v4607_v19 = vld [vmem:[%s10448_s1 + $0x28] sm:$0xff]  ;;  %v4606_v20 = vld [vmem:[%s10448_s1 + $0x20] sm:$0xff]  ;;  %v4605_v22 = vld [vmem:[%s10448_s1 + $0x18] sm:$0xff]  ;;  %v10705_v37 = vmov 0  ;;  %v10711_v46 = vmov 0 }
   0xd   : > { %s11286_s19 = smov (!%p215_p3, %s4396_s19), 1  ;;  %226 = vst [vmem:[#allocation2 + $0x8] sm:$0xff] %v4781_v13  ;;  %v4604_v23 = vld [vmem:[%s10448_s1 + $0x10] sm:$0xff]  ;;  %v4603_v26 = vld [vmem:[%s10448_s1 + $0x8] sm:$0xff]  ;;  %v4602_v28 = vld [vmem:[%s10448_s1] sm:$0xff]  ;;  %v4899_v31 = vshrl.u32 %v231_v27, 7 }
   0xe   : > { %s4600_s22 = sshll.u32 %s11286_s19, 8  ;;  %227 = vst [vmem:[#allocation2 + $0x10] sm:$0xff] %v4781_v13  ;;  %v4903_v33 = vand.u32 127, %v231_v27 }
   0xf   : > { %s4832_s25 = scalar_lea.vmem %s10447_s0, %s4600_s22  ;;  %228 = vst [vmem:[#allocation2 + $0x118] sm:$0xff] %v4781_v13  ;;  %v268_v32 = vand.u32 15, %v4899_v31  ;;  %v233_v36 = vadd.s32 8, %v4899_v31  ;;  %v234_v54 = vadd.s32 16, %v4899_v31  ;;  %s10148_s13 = scalar_lea.vmem %s10452_s5, %s4600_s22 }
  0x10   : > { %v726_v1 = vld [vmem:[%s4832_s25] sm:$0xff]  ;;  %v727_v2 = vld [vmem:[%s4832_s25 + $0x8] sm:$0xff]  ;;  %v728_v3 = vld [vmem:[%s4832_s25 + $0x10] sm:$0xff]  ;;  %229 = vst [vmem:[#allocation2 + $0x120] sm:$0xff] %v4781_v13  ;;  %1843 = vmatpush.bf16.msra.mxu1 %v4608_v17  ;;  %vm10453_vm2 = vcmp.lt.s32.totalorder %v4903_v33, 8  ;;  %vm1214_vm4 = vcmp.ge.s32.totalorder %v4903_v33, 8 }
  0x11   : > { %4405 = vmatmul.msk.f32.vlgmr.msra.gmra.mxu0 %vm10456_vm0, %v726_v1  ;;  %v729_v4 = vld [vmem:[%s4832_s25 + $0x18] sm:$0xff]  ;;  %v730_v5 = vld [vmem:[%s4832_s25 + $0x20] sm:$0xff]  ;;  %v731_v6 = vld [vmem:[%s4832_s25 + $0x28] sm:$0xff]  ;;  %230 = vst [vmem:[#allocation2 + $0x128] sm:$0xff] %v4781_v13  ;;  %vm4910_vm1 = vcmp.ge.s32.totalorder %v268_v32, 1  ;;  %vm1215_vm5 = vcmp.lt.s32.totalorder %v4903_v33, 16 }
  0x12   : > { %v732_v7 = vld [vmem:[%s4832_s25 + $0x30] sm:$0xff]  ;;  %v733_v8 = vld [vmem:[%s4832_s25 + $0x38] sm:$0xff]  ;;  %v734_v9 = vld [vmem:[%s4832_s25 + $0x40] sm:$0xff]  ;;  %v10706_v37 = vsel %vm4910_vm1, 4294967295, %v10705_v37  ;;  %v275_v40 = vand.u32 15, %v233_v36  ;;  %vm1283_vm6 = vcmp.ge.s32.totalorder %v4903_v33, 16 }
  0x13   : > { %v735_v10 = vld [vmem:[%s4832_s25 + $0x48] sm:$0xff]  ;;  %v736_v11 = vld [vmem:[%s4832_s25 + $0x50] sm:$0xff]  ;;  %v737_v12 = vld [vmem:[%s4832_s25 + $0x58] sm:$0xff]  ;;  %vm1284_vm7 = vcmp.lt.s32.totalorder %v4903_v33, 24  ;;  %vm1418_vm9 = vcmp.ge.s32.totalorder %v4903_v33, 24  ;;  %vm1419_vm10 = vcmp.lt.s32.totalorder %v4903_v33, 32 }
  0x14   : > { %v738_v14 = vld [vmem:[%s4832_s25 + $0x60] sm:$0xff]  ;;  %v739_v15 = vld [vmem:[%s4832_s25 + $0x68] sm:$0xff]  ;;  %v740_v18 = vld [vmem:[%s4832_s25 + $0x70] sm:$0xff]  ;;  %1844 = vmatpush.bf16.msra.mxu1 %v4607_v19  ;;  %vm4940_vm11 = vcmp.lt.s32.totalorder %v275_v40, 15  ;;  %vm1489_vm14 = vcmp.ge.s32.totalorder %v4903_v33, 32  ;;  %vm1490_vm15 = vcmp.lt.s32.totalorder %v4903_v33, 40 }
  0x15   : > { %v741_v21 = vld [vmem:[%s4832_s25 + $0x78] sm:$0xff]  ;;  %v742_v25 = vld [vmem:[%s4832_s25 + $0x80] sm:$0xff]  ;;  %v743_v30 = vld [vmem:[%s4832_s25 + $0x88] sm:$0xff]  ;;  %v10712_v46 = vsel %vm4940_vm11, 4294967295, %v10711_v46  ;;  %v10727_v17 = vmov 0  ;;  %v236_v36 = vadd.s32 32, %v4899_v31 }
  0x16   : > { %v744_v35 = vld [vmem:[%s4832_s25 + $0x90] sm:$0xff]  ;;  %v1017_v38 = vld [vmem:[#allocation2 + $0x7] sm:$0xff]  ;;  %vm4920_vm3 = vmand %vm10453_vm2, %vm4910_vm1 }
  0x17   : > { %v1018_v41 = vld [vmem:[#allocation2 + $0xf] sm:$0xff]  ;;  %v1150_v42 = vsel %vm4920_vm3, %v1017_v38, 0.0  ;;  %vm4930_vm8 = vmand %vm1214_vm4, %vm1215_vm5  ;;  %v745_v45 = vld [vmem:[%s4832_s25 + $0x98] sm:$0xff]  ;;  %vm1599_vm4 = vcmp.ge.s32.totalorder %v4903_v33, 48  ;;  %vm1600_vm5 = vcmp.lt.s32.totalorder %v4903_v33, 56 }
  0x18   : > { %1845 = vmatpush.bf16.msra.mxu1 %v4606_v20  ;;  %v1151_v47 = vsel %vm10453_vm2, %v1018_v41, 0.0  ;;  %vm4946_vm12 = vmand %vm1283_vm6, %vm1284_vm7  ;;  %v4952_v49 = vsel %vm4930_vm8, 0.0, %v1150_v42  ;;  %v1251_v50 = vld [vmem:[#allocation2 + $0x9] sm:$0xff]  ;;  %vm1528_vm7 = vcmp.ge.s32.totalorder %v4903_v33, 40  ;;  %v746_v62 = vld [vmem:[%s4832_s25 + $0xa0] sm:$0xff] }
  0x19   : > { %4406 = vmatmul.msk.f32.gmra.mxu0 %vm10456_vm0, %v727_v2  ;;  %vm4954_vm13 = vmand %vm1418_vm9, %vm1419_vm10  ;;  %v1220_v52 = vsel %vm4930_vm8, 0.0, %v1151_v47  ;;  %v1384_v57 = vsel %vm4946_vm12, %v1251_v50, %v4952_v49  ;;  %vm1529_vm9 = vcmp.lt.s32.totalorder %v4903_v33, 48  ;;  %v282_v2 = vand.u32 15, %v234_v54  ;;  %v747_v20 = vld [vmem:[%s4832_s25 + $0xa8] sm:$0xff]  ;;  %v2750_v48 = vld [vmem:[#allocation2 + $0x11f] sm:$0xff] }
  0x1a   : > { %vm10455_vm3 = vmand %vm4946_vm12, %vm4940_vm11  ;;  %v237_v47 = vadd.s32 40, %v4899_v31  ;;  %v296_v50 = vand.u32 15, %v236_v36 }
  0x1b   : > { %vm10454_vm6 = vmand %vm4954_vm13, %vm4910_vm1 }
  0x1c   : > { %1846 = vmatpush.bf16.msra.mxu1 %v4605_v22  ;;  %vm4979_vm10 = vmand %vm1489_vm14, %vm1490_vm15 }
  0x1d   : > { %vm4988_vm2 = vmand %vm1599_vm4, %vm1600_vm5  ;;  %vm1670_vm4 = vcmp.ge.s32.totalorder %v4903_v33, 56  ;;  %vm1671_vm5 = vcmp.lt.s32.totalorder %v4903_v33, 64 }
  0x1e   : > { %vm5002_vm14 = vmand %vm1528_vm7, %vm1529_vm9  ;;  %vm1709_vm9 = vcmp.ge.s32.totalorder %v4903_v33, 64 }
  0x1f   : > { %vm10458_vm15 = vmand %vm5002_vm14, %vm4940_vm11 }
  0x20   : > { %1847 = vmatpush.bf16.msra.mxu1 %v4604_v23  ;;  %vm10457_vm7 = vmand %vm4988_vm2, %vm4910_vm1 }
  0x21   : > { %4407 = vmatmul.msk.f32.gmra.mxu0 %vm10456_vm0, %v728_v3 }
  0x24   : > { %1848 = vmatpush.bf16.msra.mxu1 %v4603_v26 }
  0x28   : > { %1849 = vmatpush.bf16.msra.mxu1 %v4602_v28  ;;  %v10733_v28 = vmov 0 }
  0x29   : > { %4408 = vmatmul.msk.f32.gmra.mxu0 %vm10456_vm0, %v729_v4 }
  0x31   : > { %4409 = vmatmul.msk.f32.gmra.mxu0 %vm10456_vm0, %v730_v5  ;;  %v235_v5 = vadd.s32 24, %v4899_v31 }
  0x33   : > { %v289_v16 = vand.u32 15, %v235_v5 }
  0x39   : > { %4410 = vmatmul.msk.f32.gmra.mxu0 %vm10456_vm0, %v731_v6 }
  0x41   : > { %4411 = vmatmul.msk.f32.gmra.mxu0 %vm10456_vm0, %v732_v7 }
  0x49   : > { %4412 = vmatmul.msk.f32.gmra.mxu0 %vm10456_vm0, %v733_v8 }
  0x51   : > { %4413 = vmatmul.msk.f32.gmra.mxu0 %vm10456_vm0, %v734_v9 }
  0x59   : > { %4414 = vmatmul.msk.f32.gmra.mxu0 %vm10456_vm0, %v735_v10 }
  0x61   : > { %4415 = vmatmul.msk.f32.gmra.mxu0 %vm10456_vm0, %v736_v11 }
  0x69   : > { %4416 = vmatmul.msk.f32.gmra.mxu0 %vm10456_vm0, %v737_v12 }
  0x71   : > { %4417 = vmatmul.msk.f32.gmra.mxu0 %vm10456_vm0, %v738_v14 }
  0x79   : > { %4418 = vmatmul.msk.f32.gmra.mxu0 %vm10456_vm0, %v739_v15  ;;  %v3009_v15 = vld [vmem:[%s10449_s2 + $0x28] sm:$0xff] }
  0x81   : > { %4419 = vmatmul.msk.f32.gmra.mxu0 %vm10456_vm0, %v740_v18 }
  0x89   : > { %4420 = vmatmul.msk.f32.gmra.mxu0 %vm10456_vm0, %v741_v21 }
  0x8e   : > { %v4884_v24 = vpop.f32.mrf.mxu0 }
  0x8f   : > { %985 = vst [vmem:[#allocation2 + $0x18] sm:$0xff] %v4884_v24 }
  0x91   : > { %4421 = vmatmul.msk.f32.gmra.mxu0 %vm10456_vm0, %v742_v25  ;;  %v10731_v25 = vmov 0 }
  0x96   : > { %v4895_v29 = vpop.f32.mrf.mxu0  ;;  %v1252_v53 = vld [vmem:[#allocation2 + $0x11] sm:$0xff] }
  0x97   : > { %986 = vst [vmem:[#allocation2 + $0x20] sm:$0xff] %v4895_v29  ;;  %v1019_v55 = vld [vmem:[#allocation2 + $0x17] sm:$0xff]  ;;  %v1385_v59 = vsel %vm10455_vm3, %v1252_v53, %v1220_v52  ;;  %vm5038_vm3 = vmand %vm1670_vm4, %vm1671_vm5  ;;  %vm5055_vm4 = vcmp.ge.s32.totalorder %v282_v2, 1 }
  0x98   : > { %v1455_v63 = vsel %vm10454_vm6, %v1019_v55, %v1384_v57  ;;  %vm1710_vm6 = vcmp.lt.s32.totalorder %v4903_v33, 72  ;;  %v10728_v17 = vsel %vm5055_vm4, 4294967295, %v10727_v17 }
  0x99   : > { %4422 = vmatmul.msk.f32.gmra.mxu0 %vm10456_vm0, %v743_v30  ;;  %v1494_v8 = vsel %vm4979_vm10, %v4884_v24, %v1455_v63  ;;  %10729 = vst [vmem:[#allocation3_spill] sm:$0xff] %v10728_v17  ;;  %v303_v63 = vand.u32 15, %v237_v47  ;;  %v10750_v47 = vmov 0 }
  0x9e   : > { %v4905_v34 = vpop.f32.mrf.mxu0  ;;  %v1020_v56 = vld [vmem:[#allocation2 + $0x1f] sm:$0xff] }
  0x9f   : > { %987 = vst [vmem:[#allocation2 + $0x28] sm:$0xff] %v4905_v34  ;;  %v1456_v0 = vsel %vm4954_vm13, %v1020_v56, %v1385_v59  ;;  %v1253_v3 = vld [vmem:[#allocation2 + $0x19] sm:$0xff] }
  0xa0   : > { %v1495_v9 = vsel %vm4979_vm10, %v4895_v29, %v1456_v0  ;;  %v1565_v10 = vsel %vm5002_vm14, %v1253_v3, %v1494_v8  ;;  %v10738_v0 = vmov 0 }
  0xa1   : > { %4423 = vmatmul.msk.f32.gmra.mxu0 %vm10456_vm0, %v744_v35 }
  0xa6   : > { %v4936_v44 = vpop.f32.mrf.mxu0  ;;  %v1254_v4 = vld [vmem:[#allocation2 + $0x21] sm:$0xff] }
  0xa7   : > { %988 = vst [vmem:[#allocation2 + $0x30] sm:$0xff] %v4936_v44  ;;  %v5014_v6 = vld [vmem:[#allocation2 + $0x27] sm:$0xff]  ;;  %v1566_v11 = vsel %vm10458_vm15, %v1254_v4, %v1495_v9  ;;  %vm10736_vm15 = vcmp.lt.s32.totalorder %v4903_v33, 8 }
  0xa8   : > { %v1636_v13 = vsel %vm10457_vm7, %v5014_v6, %v1565_v10  ;;  %vm5094_vm7 = vcmp.lt.s32.totalorder %v289_v16, 15  ;;  %v1153_v35 = vsel %vm10736_vm15, %v1020_v56, 0.0  ;;  %v10742_v10 = vmov 0 }
  0xa9   : > { %4424 = vmatmul.msk.f32.gmra.mxu0 %vm10456_vm0, %v745_v45  ;;  %v1675_v22 = vsel %vm5038_vm3, %v4905_v34, %v1636_v13  ;;  %v10734_v28 = vsel %vm5094_vm7, 4294967295, %v10733_v28  ;;  %vm10465_vm1 = vmand %vm4946_vm12, %vm5094_vm7  ;;  %v1222_v39 = vsel %vm4930_vm8, %v4895_v29, %v1153_v35  ;;  %v748_v45 = vld [vmem:[%s4832_s25 + $0xb0] sm:$0xff] }
  0xaa   : > { %v1387_v41 = vsel %vm10465_vm1, %v1254_v4, %v1222_v39  ;;  %vm10463_vm15 = vmand %vm5002_vm14, %vm5094_vm7  ;;  %v749_v4 = vld [vmem:[%s4832_s25 + $0xb8] sm:$0xff] }
  0xae   : > { %v4992_v61 = vpop.f32.mrf.mxu0  ;;  %v5016_v7 = vld [vmem:[#allocation2 + $0x2f] sm:$0xff] }
  0xaf   : > { %989 = vst [vmem:[#allocation2 + $0x38] sm:$0xff] %v4992_v61  ;;  %v1637_v14 = vsel %vm4988_vm2, %v5016_v7, %v1566_v11  ;;  %v5059_v18 = vld [vmem:[#allocation2 + $0x29] sm:$0xff]  ;;  %v1458_v29 = vsel %vm4954_vm13, %v5016_v7, %v1387_v41 }
  0xb0   : > { %v1676_v23 = vsel %vm5038_vm3, %v4936_v44, %v1637_v14  ;;  %v10745_v14 = vmov 0 }
  0xb1   : > { %4425 = vmatmul.msk.f32.gmra.mxu0 %vm10456_vm0, %v746_v62  ;;  %vm5051_vm0 = vmand %vm1709_vm9, %vm1710_vm6  ;;  %vm10730_vm6 = vcmp.lt.s32.totalorder %v4903_v33, 8 }
  0xb2   : > { %vm10461_vm5 = vmand %vm5051_vm0, %vm4940_vm11  ;;  %v1746_v26 = vsel %vm5051_vm0, %v5059_v18, %v1675_v22 }
  0xb3   : > { %vm5080_vm9 = vmand %vm10730_vm6, %vm5055_vm4  ;;  %vm10735_vm6 = vcmask 64512  }
  0xb4   : > { %v10732_v25 = vsel %vm5080_vm9, 4294967295, %v10731_v25  ;;  %v1152_v32 = vsel %vm5080_vm9, %v1019_v55, 0.0  ;;  %v1497_v55 = vsel %vm4979_vm10, %v4936_v44, %v1458_v29  ;;  %vm10748_vm9 = vcmask 64512  }
  0xb5   : > { %v1221_v38 = vsel %vm4930_vm8, %v4884_v24, %v1152_v32  ;;  %v750_v32 = vld [vmem:[%s4832_s25 + $0xc0] sm:$0xff] }
  0xb6   : > { %v5065_v19 = vpop.f32.mrf.mxu0  ;;  %v5068_v21 = vld [vmem:[#allocation2 + $0x31] sm:$0xff]  ;;  %v1386_v40 = vsel %vm4946_vm12, %v1253_v3, %v1221_v38 }
  0xb7   : > { %990 = vst [vmem:[#allocation2 + $0x40] sm:$0xff] %v5065_v19  ;;  %v1747_v27 = vsel %vm10461_vm5, %v5068_v21, %v1676_v23  ;;  %vm10462_vm5 = vmand %vm4954_vm13, %vm5055_vm4  ;;  %v5143_v52 = vld [vmem:[#allocation2 + $0x37] sm:$0xff]  ;;  %v1568_v57 = vsel %vm10463_vm15, %v5068_v21, %v1497_v55  ;;  %v238_v23 = vadd.s32 48, %v4899_v31  ;;  %v751_v55 = vld [vmem:[%s4832_s25 + $0xc8] sm:$0xff] }
  0xb8   : > { %v1778_v30 = vpack.c.bf16 %v1747_v27, %v1746_v26  ;;  %v1457_v24 = vsel %vm10462_vm5, %v5014_v6, %v1386_v40  ;;  %vm10737_vm5 = vcmask 64512   ;;  %vm10469_vm15 = vmand %vm5051_vm0, %vm5094_vm7 }
  0xb9   : > { %4426 = vmatmul.msk.f32.gmra.mxu0 %vm10735_vm6, %v747_v20  ;;  %vm10464_vm6 = vmand %vm4988_vm2, %vm5055_vm4  ;;  %v1496_v54 = vsel %vm4979_vm10, %v4905_v34, %v1457_v24  ;;  %vm5215_vm4 = vcmp.lt.s32.totalorder %v303_v63, 15 }
  0xba   : > { %1850 = vmatmul.bf16.vlgmr.msra.gmra.mxu1 %v1778_v30  ;;  %v1567_v56 = vsel %vm5002_vm14, %v5059_v18, %v1496_v54  ;;  %v10746_v14 = vsel %vm5215_vm4, 4294967295, %v10745_v14 }
  0xbb   : > { %v1638_v59 = vsel %vm10464_vm6, %v5143_v52, %v1567_v56  ;;  %vm10741_vm6 = vcmp.lt.s32.totalorder %v4903_v33, 8  ;;  %10747 = vst [vmem:[#allocation6_spill] sm:$0xff] %v10746_v14 }
  0xbc   : > { %v1677_v8 = vsel %vm5038_vm3, %v4992_v61, %v1638_v59  ;;  %v1155_v20 = vsel %vm10741_vm6, %v5016_v7, 0.0 }
  0xbd   : > { %v1224_v7 = vsel %vm4930_vm8, %v4936_v44, %v1155_v20 }
  0xbe   : > { %v5125_v42 = vpop.f32.mrf.mxu0  ;;  %v5145_v53 = vld [vmem:[#allocation2 + $0x3f] sm:$0xff] }
  0xbf   : > { %991 = vst [vmem:[#allocation2 + $0x48] sm:$0xff] %v5125_v42  ;;  %v1639_v62 = vsel %vm4988_vm2, %v5145_v53, %v1568_v57  ;;  %v5180_v2 = vld [vmem:[#allocation2 + $0x39] sm:$0xff] }
  0xc0   : > { %v1678_v9 = vsel %vm5038_vm3, %v5065_v19, %v1639_v62  ;;  %v1748_v11 = vsel %vm5051_vm0, %v5180_v2, %v1677_v8  ;;  %v10754_v62 = vmov 0  ;;  %v10757_v8 = vmov 0 }
  0xc1   : > { %4427 = vmatmul.msk.f32.gmra.mxu0 %vm10737_vm5, %v748_v45  ;;  %vm5176_vm5 = vcmp.ge.s32.totalorder %v296_v50, 1 }
  0xc2   : > { %v10739_v0 = vsel %vm5176_vm5, 4294967295, %v10738_v0  ;;  %vm5201_vm1 = vmand %vm10741_vm6, %vm5176_vm5 }
  0xc3   : > { %10740 = vst [vmem:[#allocation4_spill] sm:$0xff] %v10739_v0  ;;  %v10743_v10 = vsel %vm5201_vm1, 4294967295, %v10742_v10  ;;  %v1154_v22 = vsel %vm5201_vm1, %v5014_v6, 0.0  ;;  %vm10472_vm7 = vmand %vm4954_vm13, %vm5176_vm5  ;;  %vm10760_vm1 = vcmask 64512  }
  0xc4   : > { %10744 = vst [vmem:[#allocation5_spill] sm:$0xff] %v10743_v10  ;;  %v1223_v6 = vsel %vm4930_vm8, %v4905_v34, %v1154_v22  ;;  %vm10474_vm6 = vmand %vm4988_vm2, %vm5176_vm5 }
  0xc5   : > { %v1388_v26 = vsel %vm4946_vm12, %v5059_v18, %v1223_v6  ;;  %v239_v18 = vadd.s32 56, %v4899_v31 }
  0xc6   : > { %v5186_v3 = vpop.f32.mrf.mxu0  ;;  %v5189_v5 = vld [vmem:[#allocation2 + $0x41] sm:$0xff]  ;;  %v1459_v34 = vsel %vm10472_vm7, %v5143_v52, %v1388_v26  ;;  %vm10749_vm7 = vcmask 64512  }
  0xc7   : > { %992 = vst [vmem:[#allocation2 + $0x50] sm:$0xff] %v5186_v3  ;;  %v1749_v13 = vsel %vm10469_vm15, %v5189_v5, %v1678_v9  ;;  %vm10475_vm15 = vmand %vm4946_vm12, %vm5215_vm4  ;;  %v5268_v35 = vld [vmem:[#allocation2 + $0x47] sm:$0xff]  ;;  %v1498_v38 = vsel %vm4979_vm10, %v4992_v61, %v1459_v34  ;;  %v317_v29 = vand.u32 15, %v239_v18 }
  0xc8   : > { %v1779_v16 = vpack.c.bf16 %v1749_v13, %v1748_v11  ;;  %v1389_v27 = vsel %vm10475_vm15, %v5068_v21, %v1224_v7  ;;  %v310_v21 = vand.u32 15, %v238_v23  ;;  %v1569_v40 = vsel %vm5002_vm14, %v5180_v2, %v1498_v38  ;;  %v752_v7 = vld [vmem:[%s4832_s25 + $0xd0] sm:$0xff] }
  0xc9   : > { %4428 = vmatmul.msk.f32.gmra.mxu0 %vm10748_vm9, %v749_v4  ;;  %v1460_v44 = vsel %vm4954_vm13, %v5145_v53, %v1389_v27  ;;  %vm10473_vm9 = vmand %vm5002_vm14, %vm5215_vm4  ;;  %v1640_v45 = vsel %vm10474_vm6, %v5268_v35, %v1569_v40  ;;  %vm10753_vm6 = vcmp.lt.s32.totalorder %v4903_v33, 8  ;;  %vm5340_vm5 = vcmp.lt.s32.totalorder %v317_v29, 15 }
  0xca   : > { %1855 = vmatmul.bf16.gmra.mxu1 %v1779_v16  ;;  %v1499_v39 = vsel %vm4979_vm10, %v5065_v19, %v1460_v44  ;;  %v1679_v57 = vsel %vm5038_vm3, %v5125_v42, %v1640_v45  ;;  %v10758_v8 = vsel %vm5340_vm5, 4294967295, %v10757_v8  ;;  %v1157_v11 = vsel %vm10753_vm6, %v5145_v53, 0.0  ;;  %v753_v45 = vld [vmem:[%s4832_s25 + $0xd8] sm:$0xff] }
  0xcb   : > { %v1570_v41 = vsel %vm10473_vm9, %v5189_v5, %v1499_v39  ;;  %vm10479_vm9 = vmand %vm5051_vm0, %vm5215_vm4  ;;  %10759 = vst [vmem:[#allocation9_spill] sm:$0xff] %v10758_v8  ;;  %v240_v16 = vadd.s32 64, %v4899_v31  ;;  %v1226_v53 = vsel %vm4930_vm8, %v5065_v19, %v1157_v11  ;;  %v10762_v39 = vmov 0 }
  0xce   : > { %v5250_v30 = vpop.f32.mrf.mxu0  ;;  %v5270_v36 = vld [vmem:[#allocation2 + $0x4f] sm:$0xff] }
  0xcf   : > { %993 = vst [vmem:[#allocation2 + $0x58] sm:$0xff] %v5250_v30  ;;  %v1641_v24 = vsel %vm4988_vm2, %v5270_v36, %v1570_v41  ;;  %v5305_v50 = vld [vmem:[#allocation2 + $0x49] sm:$0xff] }
  0xd0   : > { %v1680_v59 = vsel %vm5038_vm3, %v5186_v3, %v1641_v24  ;;  %v1750_v63 = vsel %vm5051_vm0, %v5305_v50, %v1679_v57  ;;  %v10766_v57 = vmov 0 }
  0xd1   : > { %4429 = vmatmul.msk.f32.gmra.mxu0 %vm10749_vm7, %v750_v32  ;;  %vm5301_vm7 = vcmp.ge.s32.totalorder %v310_v21, 1 }
  0xd2   : > { %v10751_v47 = vsel %vm5301_vm7, 4294967295, %v10750_v47  ;;  %vm5326_vm15 = vmand %vm10753_vm6, %vm5301_vm7 }
  0xd3   : > { %10752 = vst [vmem:[#allocation7_spill] sm:$0xff] %v10751_v47  ;;  %v10755_v62 = vsel %vm5326_vm15, 4294967295, %v10754_v62  ;;  %v1156_v13 = vsel %vm5326_vm15, %v5143_v52, 0.0  ;;  %vm10482_vm4 = vmand %vm4954_vm13, %vm5301_vm7  ;;  %vm10772_vm15 = vcmask 64512  }
  0xd4   : > { %10756 = vst [vmem:[#allocation8_spill] sm:$0xff] %v10755_v62  ;;  %v1225_v52 = vsel %vm4930_vm8, %v4992_v61, %v1156_v13  ;;  %vm10484_vm6 = vmand %vm4988_vm2, %vm5301_vm7 }
  0xd5   : > { %v1390_v20 = vsel %vm4946_vm12, %v5180_v2, %v1225_v52  ;;  %v241_v2 = vadd.s32 72, %v4899_v31 }
  0xd6   : > { %v5311_v54 = vpop.f32.mrf.mxu0  ;;  %v5314_v56 = vld [vmem:[#allocation2 + $0x51] sm:$0xff]  ;;  %v1461_v61 = vsel %vm10482_vm4, %v5268_v35, %v1390_v20  ;;  %vm10761_vm4 = vcmask 64512  }
  0xd7   : > { %994 = vst [vmem:[#allocation2 + $0x60] sm:$0xff] %v5311_v54  ;;  %v1751_v4 = vsel %vm10479_vm9, %v5314_v56, %v1680_v59  ;;  %vm10485_vm9 = vmand %vm4946_vm12, %vm5340_vm5  ;;  %v5393_v6 = vld [vmem:[#allocation2 + $0x57] sm:$0xff]  ;;  %v1500_v27 = vsel %vm4979_vm10, %v5125_v42, %v1461_v61  ;;  %v331_v38 = vand.u32 15, %v241_v2 }
  0xd8   : > { %v1780_v9 = vpack.c.bf16 %v1751_v4, %v1750_v63  ;;  %v1391_v22 = vsel %vm10485_vm9, %v5189_v5, %v1226_v53  ;;  %v324_v5 = vand.u32 15, %v240_v16  ;;  %v1571_v34 = vsel %vm5002_vm14, %v5305_v50, %v1500_v27 }
  0xd9   : > { %4430 = vmatmul.msk.f32.gmra.mxu0 %vm10760_vm1, %v751_v55  ;;  %v1462_v19 = vsel %vm4954_vm13, %v5270_v36, %v1391_v22  ;;  %vm10483_vm1 = vmand %vm5002_vm14, %vm5340_vm5  ;;  %v1642_v18 = vsel %vm10484_vm6, %v5393_v6, %v1571_v34  ;;  %vm10765_vm6 = vcmp.lt.s32.totalorder %v4903_v33, 8  ;;  %vm5465_vm7 = vcmp.lt.s32.totalorder %v331_v38, 15  ;;  %v754_v22 = vld [vmem:[%s4832_s25 + $0xe0] sm:$0xff] }
  0xda   : > { %1860 = vmatmul.bf16.gmra.mxu1 %v1780_v9  ;;  %v1501_v32 = vsel %vm4979_vm10, %v5186_v3, %v1462_v19  ;;  %v1681_v29 = vsel %vm5038_vm3, %v5250_v30, %v1642_v18  ;;  %v10769_v4 = vmov 0  ;;  %v1159_v11 = vsel %vm10765_vm6, %v5270_v36, 0.0 }
  0xdb   : > { %v1572_v44 = vsel %vm10483_vm1, %v5314_v56, %v1501_v32  ;;  %vm10489_vm1 = vmand %vm5051_vm0, %vm5340_vm5  ;;  %v10770_v4 = vsel %vm5465_vm7, 4294967295, %v10769_v4  ;;  %v242_v16 = vadd.s32 80, %v4899_v31  ;;  %v1228_v36 = vsel %vm4930_vm8, %v5186_v3, %v1159_v11 }
  0xdc   : > { %10771 = vst [vmem:[#allocation12_spill] sm:$0xff] %v10770_v4  ;;  %v10774_v18 = vmov 0 }
  0xde   : > { %v5375_v23 = vpop.f32.mrf.mxu0  ;;  %v5395_v26 = vld [vmem:[#allocation2 + $0x5f] sm:$0xff] }
  0xdf   : > { %995 = vst [vmem:[#allocation2 + $0x68] sm:$0xff] %v5375_v23  ;;  %v1643_v21 = vsel %vm4988_vm2, %v5395_v26, %v1572_v44  ;;  %v5430_v40 = vld [vmem:[#allocation2 + $0x59] sm:$0xff] }
  0xe0   : > { %v1682_v55 = vsel %vm5038_vm3, %v5311_v54, %v1643_v21  ;;  %v1752_v59 = vsel %vm5051_vm0, %v5430_v40, %v1681_v29 }
  0xe1   : > { %4431 = vmatmul.msk.f32.gmra.mxu0 %vm10761_vm4, %v752_v7  ;;  %vm5426_vm4 = vcmp.ge.s32.totalorder %v324_v5, 1 }
  0xe2   : > { %v10763_v39 = vsel %vm5426_vm4, 4294967295, %v10762_v39  ;;  %vm5451_vm9 = vmand %vm10765_vm6, %vm5426_vm4 }
  0xe3   : > { %10764 = vst [vmem:[#allocation10_spill] sm:$0xff] %v10763_v39  ;;  %v10767_v57 = vsel %vm5451_vm9, 4294967295, %v10766_v57  ;;  %v1158_v13 = vsel %vm5451_vm9, %v5268_v35, 0.0  ;;  %vm10492_vm5 = vmand %vm4954_vm13, %vm5426_vm4  ;;  %vm10784_vm9 = vcmask 64512  }
  0xe4   : > { %10768 = vst [vmem:[#allocation11_spill] sm:$0xff] %v10767_v57  ;;  %v1227_v35 = vsel %vm4930_vm8, %v5125_v42, %v1158_v13  ;;  %vm10494_vm6 = vmand %vm4988_vm2, %vm5426_vm4  ;;  %v10781_v13 = vmov 0 }
  0xe5   : > { %v1392_v53 = vsel %vm4946_vm12, %v5305_v50, %v1227_v35  ;;  %v243_v50 = vadd.s32 88, %v4899_v31 }
  0xe6   : > { %v5436_v41 = vpop.f32.mrf.mxu0  ;;  %v5439_v24 = vld [vmem:[#allocation2 + $0x61] sm:$0xff]  ;;  %v1463_v42 = vsel %vm10492_vm5, %v5393_v6, %v1392_v53  ;;  %vm10773_vm5 = vcmask 64512   ;;  %v244_v53 = vadd.s32 96, %v4899_v31 }
  0xe7   : > { %996 = vst [vmem:[#allocation2 + $0x70] sm:$0xff] %v5436_v41  ;;  %v1753_v63 = vsel %vm10489_vm1, %v5439_v24, %v1682_v55  ;;  %vm10495_vm1 = vmand %vm4946_vm12, %vm5465_vm7  ;;  %v5518_v7 = vld [vmem:[#allocation2 + $0x67] sm:$0xff]  ;;  %v1502_v19 = vsel %vm4979_vm10, %v5250_v30, %v1463_v42  ;;  %v345_v44 = vand.u32 15, %v243_v50 }
  0xe8   : > { %v1781_v9 = vpack.c.bf16 %v1753_v63, %v1752_v59  ;;  %v1393_v52 = vsel %vm10495_vm1, %v5314_v56, %v1228_v36  ;;  %v338_v56 = vand.u32 15, %v242_v16  ;;  %v1573_v5 = vsel %vm5002_vm14, %v5430_v40, %v1502_v19 }
  0xe9   : > { %4432 = vmatmul.msk.f32.gmra.mxu0 %vm10772_vm15, %v753_v45  ;;  %v1464_v3 = vsel %vm4954_vm13, %v5395_v26, %v1393_v52  ;;  %vm10493_vm15 = vmand %vm5002_vm14, %vm5465_vm7  ;;  %v1644_v32 = vsel %vm10494_vm6, %v5518_v7, %v1573_v5  ;;  %v755_v45 = vld [vmem:[%s4832_s25 + $0xe8] sm:$0xff]  ;;  %vm10777_vm6 = vcmp.lt.s32.totalorder %v4903_v33, 8  ;;  %v10778_v63 = vmov 0 }
  0xea   : > { %1865 = vmatmul.bf16.gmra.mxu1 %v1781_v9  ;;  %v1503_v2 = vsel %vm4979_vm10, %v5311_v54, %v1464_v3  ;;  %v1683_v55 = vsel %vm5038_vm3, %v5375_v23, %v1644_v32  ;;  %vm5590_vm4 = vcmp.lt.s32.totalorder %v345_v44, 15  ;;  %v1161_v36 = vsel %vm10777_vm6, %v5395_v26, 0.0  ;;  %v756_v3 = vld [vmem:[%s4832_s25 + $0xf0] sm:$0xff] }
  0xeb   : > { %v1574_v27 = vsel %vm10493_vm15, %v5439_v24, %v1503_v2  ;;  %vm10499_vm15 = vmand %vm5051_vm0, %vm5465_vm7  ;;  %v10782_v13 = vsel %vm5590_vm4, 4294967295, %v10781_v13  ;;  %v1230_v26 = vsel %vm4930_vm8, %v5311_v54, %v1161_v36 }
  0xec   : > { %10783 = vst [vmem:[#allocation15_spill] sm:$0xff] %v10782_v13 }
  0xee   : > { %v5500_v20 = vpop.f32.mrf.mxu0  ;;  %v5520_v61 = vld [vmem:[#allocation2 + $0x6f] sm:$0xff] }
  0xef   : > { %997 = vst [vmem:[#allocation2 + $0x78] sm:$0xff] %v5500_v20  ;;  %v1645_v34 = vsel %vm4988_vm2, %v5520_v61, %v1574_v27  ;;  %v5555_v21 = vld [vmem:[#allocation2 + $0x69] sm:$0xff] }
  0xf0   : > { %v1684_v59 = vsel %vm5038_vm3, %v5436_v41, %v1645_v34  ;;  %v1754_v9 = vsel %vm5051_vm0, %v5555_v21, %v1683_v55 }
  0xf1   : > { %4433 = vmatmul.msk.f32.gmra.mxu0 %vm10773_vm5, %v754_v22  ;;  %vm5551_vm5 = vcmp.ge.s32.totalorder %v338_v56, 1 }
  0xf2   : > { %v10775_v18 = vsel %vm5551_vm5, 4294967295, %v10774_v18  ;;  %vm5576_vm1 = vmand %vm10777_vm6, %vm5551_vm5 }
  0xf3   : > { %10776 = vst [vmem:[#allocation13_spill] sm:$0xff] %v10775_v18  ;;  %v10779_v63 = vsel %vm5576_vm1, 4294967295, %v10778_v63  ;;  %v1160_v35 = vsel %vm5576_vm1, %v5393_v6, 0.0  ;;  %vm10502_vm7 = vmand %vm4954_vm13, %vm5551_vm5  ;;  %vm10796_vm1 = vcmask 64512  }
  0xf4   : > { %10780 = vst [vmem:[#allocation14_spill] sm:$0xff] %v10779_v63  ;;  %v1229_v6 = vsel %vm4930_vm8, %v5250_v30, %v1160_v35  ;;  %vm10504_vm6 = vmand %vm4988_vm2, %vm5551_vm5  ;;  %v10790_v35 = vmov 0 }
  0xf5   : > { %v1394_v52 = vsel %vm4946_vm12, %v5430_v40, %v1229_v6  ;;  %v245_v40 = vadd.s32 104, %v4899_v31  ;;  %v10793_v6 = vmov 0 }
  0xf6   : > { %v5561_v38 = vpop.f32.mrf.mxu0  ;;  %v5564_v29 = vld [vmem:[#allocation2 + $0x71] sm:$0xff]  ;;  %v1465_v30 = vsel %vm10502_vm7, %v5518_v7, %v1394_v52  ;;  %vm10785_vm7 = vcmask 64512  }
  0xf7   : > { %998 = vst [vmem:[#allocation2 + $0x80] sm:$0xff] %v5561_v38  ;;  %v1755_v11 = vsel %vm10499_vm15, %v5564_v29, %v1684_v59  ;;  %vm10505_vm15 = vmand %vm4946_vm12, %vm5590_vm4  ;;  %v5643_v50 = vld [vmem:[#allocation2 + $0x77] sm:$0xff]  ;;  %v1504_v19 = vsel %vm4979_vm10, %v5375_v23, %v1465_v30  ;;  %v359_v44 = vand.u32 15, %v245_v40  ;;  %v246_v30 = vadd.s32 112, %v4899_v31 }
  0xf8   : > { %v1782_v16 = vpack.c.bf16 %v1755_v11, %v1754_v9  ;;  %v1395_v22 = vsel %vm10505_vm15, %v5439_v24, %v1230_v26  ;;  %v352_v24 = vand.u32 15, %v244_v53  ;;  %v1575_v5 = vsel %vm5002_vm14, %v5555_v21, %v1504_v19  ;;  %v757_v9 = vld [vmem:[%s4832_s25 + $0xf8] sm:$0xff] }
  0xf9   : > { %4434 = vmatmul.msk.f32.gmra.mxu0 %vm10784_vm9, %v755_v45  ;;  %v1466_v54 = vsel %vm4954_vm13, %v5520_v61, %v1395_v22  ;;  %vm10503_vm9 = vmand %vm5002_vm14, %vm5590_vm4  ;;  %v1646_v32 = vsel %vm10504_vm6, %v5643_v50, %v1575_v5  ;;  %v10786_v45 = vmov 0  ;;  %vm10789_vm6 = vcmp.lt.s32.totalorder %v4903_v33, 8 }
  0xfa   : > { %1870 = vmatmul.bf16.gmra.mxu1 %v1782_v16  ;;  %v1505_v2 = vsel %vm4979_vm10, %v5436_v41, %v1466_v54  ;;  %v1685_v16 = vsel %vm5038_vm3, %v5500_v20, %v1646_v32  ;;  %vm5712_vm5 = vcmp.lt.s32.totalorder %v359_v44, 15  ;;  %v1163_v22 = vsel %vm10789_vm6, %v5520_v61, 0.0 }
  0xfb   : > { %v1576_v27 = vsel %vm10503_vm9, %v5564_v29, %v1505_v2  ;;  %vm10509_vm9 = vmand %vm5051_vm0, %vm5590_vm4  ;;  %v10794_v6 = vsel %vm5712_vm5, 4294967295, %v10793_v6  ;;  %v1232_v61 = vsel %vm4930_vm8, %v5436_v41, %v1163_v22 }
  0xfc   : > { %10795 = vst [vmem:[#allocation18_spill] sm:$0xff] %v10794_v6 }
  0xfe   : > { %v5625_v42 = vpop.f32.mrf.mxu0  ;;  %v5645_v56 = vld [vmem:[#allocation2 + $0x7f] sm:$0xff] }
  0xff   : > { %999 = vst [vmem:[#allocation2 + $0x88] sm:$0xff] %v5625_v42  ;;  %v1647_v34 = vsel %vm4988_vm2, %v5645_v56, %v1576_v27  ;;  %v5680_v55 = vld [vmem:[#allocation2 + $0x79] sm:$0xff] }
 0x100   : > { %v1686_v36 = vsel %vm5038_vm3, %v5561_v38, %v1647_v34  ;;  %v1756_v53 = vsel %vm5051_vm0, %v5680_v55, %v1685_v16 }
 0x101   : > { %4435 = vmatmul.msk.f32.gmra.mxu0 %vm10785_vm7, %v756_v3  ;;  %vm5676_vm7 = vcmp.ge.s32.totalorder %v352_v24, 1 }
 0x102   : > { %v10787_v45 = vsel %vm5676_vm7, 4294967295, %v10786_v45  ;;  %vm5699_vm15 = vmand %vm10789_vm6, %vm5676_vm7 }
 0x103   : > { %10788 = vst [vmem:[#allocation16_spill] sm:$0xff] %v10787_v45  ;;  %v10791_v35 = vsel %vm5699_vm15, 4294967295, %v10790_v35  ;;  %v1162_v3 = vsel %vm5699_vm15, %v5518_v7, 0.0  ;;  %vm10512_vm4 = vmand %vm4954_vm13, %vm5676_vm7 }
 0x104   : > { %10792 = vst [vmem:[#allocation17_spill] sm:$0xff] %v10791_v35  ;;  %v1231_v7 = vsel %vm4930_vm8, %v5375_v23, %v1162_v3  ;;  %vm10514_vm6 = vmand %vm4988_vm2, %vm5676_vm7 }
 0x105   : > { %v1396_v54 = vsel %vm4946_vm12, %v5555_v21, %v1231_v7  ;;  %v247_v21 = vadd.s32 120, %v4899_v31 }
 0x106   : > { %v5686_v59 = vpop.f32.mrf.mxu0  ;;  %v1266_v11 = vld [vmem:[#allocation2 + $0x81] sm:$0xff]  ;;  %v1467_v23 = vsel %vm10512_vm4, %v5643_v50, %v1396_v54  ;;  %v10804_v54 = vmov 0 }
 0x107   : > { %1000 = vst [vmem:[#allocation2 + $0x90] sm:$0xff] %v5686_v59  ;;  %v1757_v26 = vsel %vm10509_vm9, %v1266_v11, %v1686_v36  ;;  %vm10515_vm9 = vmand %vm4946_vm12, %vm5712_vm5  ;;  %v5764_v19 = vld [vmem:[#allocation2 + $0x87] sm:$0xff]  ;;  %v1506_v5 = vsel %vm4979_vm10, %v5500_v20, %v1467_v23  ;;  %v373_v16 = vand.u32 15, %v247_v21  ;;  %v10797_v36 = vmov 0 }
 0x108   : > { %v1783_v52 = vpack.c.bf16 %v1757_v26, %v1756_v53  ;;  %v1397_v40 = vsel %vm10515_vm9, %v5564_v29, %v1232_v61  ;;  %v366_v29 = vand.u32 15, %v246_v30  ;;  %v1577_v32 = vsel %vm5002_vm14, %v5680_v55, %v1506_v5 }
 0x109   : > { %4436 = vmatmul.msk.f32.gmra.mxu0 %vm10796_vm1, %v757_v9  ;;  %v1468_v41 = vsel %vm4954_vm13, %v5645_v56, %v1397_v40  ;;  %vm10513_vm1 = vmand %vm5002_vm14, %vm5712_vm5  ;;  %v1648_v44 = vsel %vm10514_vm6, %v5764_v19, %v1577_v32  ;;  %vm10800_vm6 = vcmp.lt.s32.totalorder %v4903_v33, 8  ;;  %v10801_v30 = vmov 0 }
 0x10a   : > { %1875 = vmatmul.bf16.gmra.mxu1 %v1783_v52  ;;  %v1507_v27 = vsel %vm4979_vm10, %v5561_v38, %v1468_v41  ;;  %vm5792_vm4 = vcmp.ge.s32.totalorder %v366_v29, 1  ;;  %v1687_v22 = vsel %vm5038_vm3, %v5625_v42, %v1648_v44  ;;  %vm5827_vm7 = vcmp.lt.s32.totalorder %v373_v16, 15 }
 0x10b   : > { %v1578_v34 = vsel %vm10513_vm1, %v1266_v11, %v1507_v27  ;;  %v10798_v36 = vsel %vm5792_vm4, 4294967295, %v10797_v36  ;;  %vm10520_vm1 = vmand %vm5051_vm0, %vm5712_vm5  ;;  %v10805_v54 = vsel %vm5827_vm7, 4294967295, %v10804_v54  ;;  %v1165_v23 = vsel %vm10800_vm6, %v5645_v56, 0.0 }
 0x10c   : > { %10799 = vst [vmem:[#allocation19_spill] sm:$0xff] %v10798_v36  ;;  %vm5814_vm9 = vmand %vm10800_vm6, %vm5792_vm4  ;;  %v248_v21 = vadd.s32 128, %v4899_v31  ;;  %v1234_v56 = vsel %vm4930_vm8, %v5561_v38, %v1165_v23 }
 0x10d   : > { %v10802_v30 = vsel %vm5814_vm9, 4294967295, %v10801_v30  ;;  %10806 = vst [vmem:[#allocation21_spill] sm:$0xff] %v10805_v54  ;;  %v1164_v41 = vsel %vm5814_vm9, %v5643_v50, 0.0  ;;  %vm10522_vm5 = vmand %vm4946_vm12, %vm5827_vm7 }
 0x10e   : > { %v5747_v24 = vpop.f32.mrf.mxu0  ;;  %v1034_v2 = vld [vmem:[#allocation2 + $0x8f] sm:$0xff]  ;;  %10803 = vst [vmem:[#allocation20_spill] sm:$0xff] %v10802_v30  ;;  %v1233_v50 = vsel %vm4930_vm8, %v5500_v20, %v1164_v41  ;;  %v1399_v5 = vsel %vm10522_vm5, %v1266_v11, %v1234_v56  ;;  %vm10523_vm6 = vmand %vm5002_vm14, %vm5827_vm7  ;;  %v380_v11 = vand.u32 15, %v248_v21 }
 0x10f   : > { %1001 = vst [vmem:[#allocation2 + $0x98] sm:$0xff] %v5747_v24  ;;  %v1649_v9 = vsel %vm4988_vm2, %v1034_v2, %v1578_v34  ;;  %v5796_v53 = vld [vmem:[#allocation2 + $0x89] sm:$0xff]  ;;  %v1398_v29 = vsel %vm4946_vm12, %v5680_v55, %v1233_v50  ;;  %v1470_v20 = vsel %vm4954_vm13, %v1034_v2, %v1399_v5  ;;  %v249_v55 = vadd.s32 136, %v4899_v31 }
 0x110   : > { %v1688_v3 = vsel %vm5038_vm3, %v5686_v59, %v1649_v9  ;;  %v1758_v61 = vsel %vm5051_vm0, %v5796_v53, %v1687_v22  ;;  %v1509_v9 = vsel %vm4979_vm10, %v5686_v59, %v1470_v20  ;;  %vm5907_vm5 = vcmp.ge.s32.totalorder %v380_v11, 1 }
 0x111   : > { %v10814_v20 = vmov 0 }
 0x116   : > { %v5802_v26 = vpop.f32.mrf.mxu0  ;;  %v1268_v52 = vld [vmem:[#allocation2 + $0x91] sm:$0xff] }
 0x117   : > { %1002 = vst [vmem:[#allocation2 + $0xa0] sm:$0xff] %v5802_v26  ;;  %v1759_v7 = vsel %vm10520_vm1, %v1268_v52, %v1688_v3  ;;  %vm10521_vm1 = vmand %vm4954_vm13, %vm5792_vm4  ;;  %v5876_v32 = vld [vmem:[#allocation2 + $0x97] sm:$0xff]  ;;  %v1580_v22 = vsel %vm10523_vm6, %v1268_v52, %v1509_v9  ;;  %v250_v9 = vadd.s32 144, %v4899_v31 }
 0x118   : > { %v1784_v40 = vpack.c.bf16 %v1759_v7, %v1758_v61  ;;  %v1469_v38 = vsel %vm10521_vm1, %v5764_v19, %v1398_v29  ;;  %vm10524_vm1 = vmand %vm4988_vm2, %vm5792_vm4  ;;  %v387_v7 = vand.u32 15, %v249_v55  ;;  %v10811_v29 = vmov 0 }
 0x119   : > { %v1508_v44 = vsel %vm4979_vm10, %v5625_v42, %v1469_v38  ;;  %vm10529_vm6 = vmand %vm5051_vm0, %vm5827_vm7 }
 0x11a   : > { %1880 = vmatmul.bf16.gmra.mxu1 %v1784_v40  ;;  %v1579_v16 = vsel %vm5002_vm14, %v5796_v53, %v1508_v44  ;;  %v10807_v40 = vmov 0  ;;  %vm5942_vm9 = vcmp.lt.s32.totalorder %v387_v7, 15 }
 0x11b   : > { %v1650_v3 = vsel %vm10524_vm1, %v5876_v32, %v1579_v16  ;;  %v10808_v40 = vsel %vm5907_vm5, 4294967295, %v10807_v40  ;;  %vm10810_vm1 = vcmp.lt.s32.totalorder %v4903_v33, 8  ;;  %v10815_v20 = vsel %vm5942_vm9, 4294967295, %v10814_v20  ;;  %vm10531_vm15 = vmand %vm4946_vm12, %vm5942_vm9 }
 0x11c   : > { %10809 = vst [vmem:[#allocation22_spill] sm:$0xff] %v10808_v40  ;;  %v1689_v56 = vsel %vm5038_vm3, %v5747_v24, %v1650_v3  ;;  %vm5929_vm4 = vmand %vm10810_vm1, %vm5907_vm5  ;;  %v1167_v11 = vsel %vm10810_vm1, %v1034_v2, 0.0 }
 0x11d   : > { %v10812_v29 = vsel %vm5929_vm4, 4294967295, %v10811_v29  ;;  %10816 = vst [vmem:[#allocation24_spill] sm:$0xff] %v10815_v20  ;;  %v1166_v44 = vsel %vm5929_vm4, %v5764_v19, 0.0  ;;  %v1236_v2 = vsel %vm4930_vm8, %v5686_v59, %v1167_v11  ;;  %vm10532_vm1 = vmand %vm5002_vm14, %vm5942_vm9 }
 0x11e   : > { %v5860_v27 = vpop.f32.mrf.mxu0  ;;  %v5878_v34 = vld [vmem:[#allocation2 + $0x9f] sm:$0xff]  ;;  %10813 = vst [vmem:[#allocation23_spill] sm:$0xff] %v10812_v29  ;;  %v1235_v19 = vsel %vm4930_vm8, %v5625_v42, %v1166_v44 }
 0x11f   : > { %1003 = vst [vmem:[#allocation2 + $0xa8] sm:$0xff] %v5860_v27  ;;  %v1651_v61 = vsel %vm4988_vm2, %v5878_v34, %v1580_v22  ;;  %v5911_v23 = vld [vmem:[#allocation2 + $0x99] sm:$0xff]  ;;  %v1400_v16 = vsel %vm4946_vm12, %v5796_v53, %v1235_v19  ;;  %v1401_v22 = vsel %vm10531_vm15, %v1268_v52, %v1236_v2  ;;  %v251_v53 = vadd.s32 152, %v4899_v31 }
 0x120   : > { %v1690_v50 = vsel %vm5038_vm3, %v5802_v26, %v1651_v61  ;;  %v1760_v5 = vsel %vm5051_vm0, %v5911_v23, %v1689_v56  ;;  %v1472_v42 = vsel %vm4954_vm13, %v5878_v34, %v1401_v22  ;;  %v394_v52 = vand.u32 15, %v250_v9 }
 0x121   : > { %v401_v44 = vand.u32 15, %v251_v53  ;;  %v10817_v9 = vmov 0 }
 0x122   : > { %vm6022_vm15 = vcmp.ge.s32.totalorder %v394_v52, 1 }
 0x123   : > { %v10818_v9 = vsel %vm6022_vm15, 4294967295, %v10817_v9  ;;  %vm6059_vm4 = vcmp.lt.s32.totalorder %v401_v44, 15 }
 0x124   : > { %10819 = vst [vmem:[#allocation25_spill] sm:$0xff] %v10818_v9  ;;  %v10834_v9 = vmov 0 }
 0x126   : > { %v5917_v41 = vpop.f32.mrf.mxu0  ;;  %v1270_v21 = vld [vmem:[#allocation2 + $0xa1] sm:$0xff] }
 0x127   : > { %1004 = vst [vmem:[#allocation2 + $0xb0] sm:$0xff] %v5917_v41  ;;  %v1761_v38 = vsel %vm10529_vm6, %v1270_v21, %v1690_v50  ;;  %vm10530_vm6 = vmand %vm4954_vm13, %vm5907_vm5  ;;  %v5991_v61 = vld [vmem:[#allocation2 + $0xa7] sm:$0xff]  ;;  %v1511_v50 = vsel %vm4979_vm10, %v5802_v26, %v1472_v42  ;;  %v10821_v42 = vmov 0 }
 0x128   : > { %v1785_v55 = vpack.c.bf16 %v1761_v38, %v1760_v5  ;;  %v1471_v59 = vsel %vm10530_vm6, %v5876_v32, %v1400_v16  ;;  %vm10533_vm6 = vmand %vm4988_vm2, %vm5907_vm5  ;;  %v1582_v38 = vsel %vm10532_vm1, %v1270_v21, %v1511_v50  ;;  %v10824_v50 = vmov 0 }
 0x129   : > { %v1510_v56 = vsel %vm4979_vm10, %v5747_v24, %v1471_v59  ;;  %vm10539_vm1 = vmand %vm5051_vm0, %vm5942_vm9  ;;  %v10825_v50 = vsel %vm6059_vm4, 4294967295, %v10824_v50 }
 0x12a   : > { %1885 = vmatmul.bf16.gmra.mxu1 %v1785_v55  ;;  %v1581_v5 = vsel %vm5002_vm14, %v5911_v23, %v1510_v56  ;;  %10826 = vst [vmem:[#allocation27_spill] sm:$0xff] %v10825_v50  ;;  %vm10541_vm9 = vmand %vm4946_vm12, %vm6059_vm4 }
 0x12b   : > { %v1652_v55 = vsel %vm10533_vm6, %v5991_v61, %v1581_v5  ;;  %vm10820_vm6 = vcmp.lt.s32.totalorder %v4903_v33, 8 }
 0x12c   : > { %v1691_v22 = vsel %vm5038_vm3, %v5860_v27, %v1652_v55  ;;  %vm6044_vm5 = vmand %vm10820_vm6, %vm6022_vm15 }
 0x12d   : > { %v10822_v42 = vsel %vm6044_vm5, 4294967295, %v10821_v42  ;;  %v1168_v55 = vsel %vm6044_vm5, %v5876_v32, 0.0 }
 0x12e   : > { %v5974_v3 = vpop.f32.mrf.mxu0  ;;  %v5993_v7 = vld [vmem:[#allocation2 + $0xaf] sm:$0xff]  ;;  %10823 = vst [vmem:[#allocation26_spill] sm:$0xff] %v10822_v42  ;;  %v1237_v32 = vsel %vm4930_vm8, %v5747_v24, %v1168_v55 }
 0x12f   : > { %1005 = vst [vmem:[#allocation2 + $0xb8] sm:$0xff] %v5974_v3  ;;  %v1653_v11 = vsel %vm4988_vm2, %v5993_v7, %v1582_v38  ;;  %v6026_v2 = vld [vmem:[#allocation2 + $0xa9] sm:$0xff]  ;;  %v1169_v38 = vsel %vm10820_vm6, %v5878_v34, 0.0  ;;  %v1402_v44 = vsel %vm4946_vm12, %v5911_v23, %v1237_v32  ;;  %vm10542_vm6 = vmand %vm5002_vm14, %vm6059_vm4 }
 0x130   : > { %v1692_v59 = vsel %vm5038_vm3, %v5917_v41, %v1653_v11  ;;  %v1762_v52 = vsel %vm5051_vm0, %v6026_v2, %v1691_v22  ;;  %v252_v11 = vadd.s32 160, %v4899_v31  ;;  %v1238_v34 = vsel %vm4930_vm8, %v5802_v26, %v1169_v38 }
 0x131   : > { %v1403_v22 = vsel %vm10541_vm9, %v1270_v21, %v1238_v34  ;;  %v253_v21 = vadd.s32 168, %v4899_v31 }
 0x132   : > { %v1474_v24 = vsel %vm4954_vm13, %v5993_v7, %v1403_v22 }
 0x133   : > { %v1513_v55 = vsel %vm4979_vm10, %v5917_v41, %v1474_v24  ;;  %v415_v22 = vand.u32 15, %v253_v21 }
 0x135   : > { %vm6179_vm5 = vcmp.lt.s32.totalorder %v415_v22, 15  ;;  %v254_v22 = vadd.s32 176, %v4899_v31 }
 0x136   : > { %v6032_v19 = vpop.f32.mrf.mxu0  ;;  %v1272_v16 = vld [vmem:[#allocation2 + $0xb1] sm:$0xff]  ;;  %v10835_v9 = vsel %vm6179_vm5, 4294967295, %v10834_v9 }
 0x137   : > { %1006 = vst [vmem:[#allocation2 + $0xc0] sm:$0xff] %v6032_v19  ;;  %v6049_v53 = vpop.f32.mrf.mxu1  ;;  %v1763_v56 = vsel %vm10539_vm1, %v1272_v16, %v1692_v59  ;;  %vm10540_vm1 = vmand %vm4954_vm13, %vm6022_vm15  ;;  %v1584_v34 = vsel %vm10542_vm6, %v1272_v16, %v1513_v55 }
 0x138   : > { %v1786_v5 = vpack.c.bf16 %v1763_v56, %v1762_v52  ;;  %v1473_v26 = vsel %vm10540_vm1, %v5991_v61, %v1402_v44  ;;  %v408_v52 = vand.u32 15, %v252_v11  ;;  %v6111_v56 = vld [vmem:[#allocation2 + $0xb7] sm:$0xff]  ;;  %vm10543_vm1 = vmand %vm4988_vm2, %vm6022_vm15  ;;  %10836 = vst [vmem:[#allocation30_spill] sm:$0xff] %v10835_v9 }
 0x139   : > { %v1512_v38 = vsel %vm4979_vm10, %v5860_v27, %v1473_v26  ;;  %v10827_v26 = vmov 0  ;;  %vm10556_vm6 = vmand %vm5051_vm0, %vm6059_vm4 }
 0x13a   : > { %1890 = vmatmul.bf16.gmra.mxu1 %v1786_v5  ;;  %v1583_v11 = vsel %vm5002_vm14, %v6026_v2, %v1512_v38  ;;  %vm6142_vm9 = vcmp.ge.s32.totalorder %v408_v52, 1  ;;  %v10831_v52 = vmov 0  ;;  %vm10558_vm4 = vmand %vm4946_vm12, %vm6179_vm5 }
 0x13b   : > { %v1654_v32 = vsel %vm10543_vm1, %v6111_v56, %v1583_v11  ;;  %v10828_v26 = vsel %vm6142_vm9, 4294967295, %v10827_v26  ;;  %vm10830_vm1 = vcmp.lt.s32.totalorder %v4903_v33, 8 }
 0x13c   : > { %10829 = vst [vmem:[#allocation28_spill] sm:$0xff] %v10828_v26  ;;  %v1693_v11 = vsel %vm5038_vm3, %v5974_v3, %v1654_v32  ;;  %vm6164_vm15 = vmand %vm10830_vm1, %vm6142_vm9  ;;  %v1171_v40 = vsel %vm10830_vm1, %v5993_v7, 0.0 }
 0x13d   : > { %v10832_v52 = vsel %vm6164_vm15, 4294967295, %v10831_v52  ;;  %v1170_v20 = vsel %vm6164_vm15, %v5991_v61, 0.0  ;;  %v1240_v7 = vsel %vm4930_vm8, %v5917_v41, %v1171_v40  ;;  %vm10559_vm1 = vmand %vm5002_vm14, %vm6179_vm5 }
 0x13e   : > { %v6092_v59 = vpop.f32.mrf.mxu0  ;;  %v6113_v5 = vld [vmem:[#allocation2 + $0xbf] sm:$0xff]  ;;  %10833 = vst [vmem:[#allocation29_spill] sm:$0xff] %v10832_v52  ;;  %v1239_v61 = vsel %vm4930_vm8, %v5860_v27, %v1170_v20  ;;  %v255_v20 = vadd.s32 184, %v4899_v31  ;;  %v10844_v52 = vmov 0 }
 0x13f   : > { %1007 = vst [vmem:[#allocation2 + $0xc8] sm:$0xff] %v6092_v59  ;;  %v6104_v23 = vpop.f32.mrf.mxu1  ;;  %v1655_v44 = vsel %vm4988_vm2, %v6113_v5, %v1584_v34  ;;  %v6146_v24 = vld [vmem:[#allocation2 + $0xb9] sm:$0xff] }
 0x140   : > { %v1694_v21 = vsel %vm5038_vm3, %v6032_v19, %v1655_v44  ;;  %v1764_v32 = vsel %vm5051_vm0, %v6146_v24, %v1693_v11  ;;  %v1405_v11 = vsel %vm10558_vm4, %v1272_v16, %v1240_v7 }
 0x141   : > { %v1476_v27 = vsel %vm4954_vm13, %v6113_v5, %v1405_v11 }
 0x142   : > { %v1515_v7 = vsel %vm4979_vm10, %v6032_v19, %v1476_v27  ;;  %v10837_v27 = vmov 0 }
 0x146   : > { %v6152_v38 = vpop.f32.mrf.mxu0  ;;  %v1274_v55 = vld [vmem:[#allocation2 + $0xc1] sm:$0xff] }
 0x147   : > { %1008 = vst [vmem:[#allocation2 + $0xd0] sm:$0xff] %v6152_v38  ;;  %v6169_v34 = vpop.f32.mrf.mxu1  ;;  %v1765_v44 = vsel %vm10556_vm6, %v1274_v55, %v1694_v21  ;;  %vm10557_vm6 = vmand %vm4954_vm13, %vm6142_vm9  ;;  %v6231_v16 = vld [vmem:[#allocation2 + $0xc7] sm:$0xff] }
 0x148   : > { %v1787_v42 = vpack.c.bf16 %v1765_v44, %v1764_v32 }
 0x14a   : > { %1895 = vmatmul.bf16.gmra.mxu1 %v1787_v42  ;;  %v1404_v42 = vsel %vm4946_vm12, %v6026_v2, %v1239_v61  ;;  %v422_v2 = vand.u32 15, %v254_v22  ;;  %v1586_v61 = vsel %vm10559_vm1, %v1274_v55, %v1515_v7  ;;  %vm10574_vm1 = vmand %vm5051_vm0, %vm6179_vm5 }
 0x14b   : > { %v1475_v40 = vsel %vm10557_vm6, %v6111_v56, %v1404_v42  ;;  %vm10562_vm6 = vmand %vm4988_vm2, %vm6142_vm9 }
 0x14c   : > { %v1514_v44 = vsel %vm4979_vm10, %v5974_v3, %v1475_v40  ;;  %v429_v40 = vand.u32 15, %v255_v20  ;;  %vm6262_vm4 = vcmp.ge.s32.totalorder %v422_v2, 1  ;;  %v10841_v2 = vmov 0 }
 0x14d   : > { %v1585_v22 = vsel %vm5002_vm14, %v6146_v24, %v1514_v44  ;;  %v10838_v27 = vsel %vm6262_vm4, 4294967295, %v10837_v27 }
 0x14e   : > { %v6212_v21 = vpop.f32.mrf.mxu0  ;;  %v6233_v32 = vld [vmem:[#allocation2 + $0xcf] sm:$0xff]  ;;  %v1656_v42 = vsel %vm10562_vm6, %v6231_v16, %v1585_v22  ;;  %10839 = vst [vmem:[#allocation31_spill] sm:$0xff] %v10838_v27  ;;  %vm10840_vm6 = vcmp.lt.s32.totalorder %v4903_v33, 8  ;;  %vm6299_vm15 = vcmp.lt.s32.totalorder %v429_v40, 15  ;;  %v256_v40 = vadd.s32 192, %v4899_v31 }
 0x14f   : > { %1009 = vst [vmem:[#allocation2 + $0xd8] sm:$0xff] %v6212_v21  ;;  %v6224_v41 = vpop.f32.mrf.mxu1  ;;  %v1657_v11 = vsel %vm4988_vm2, %v6233_v32, %v1586_v61  ;;  %v6266_v44 = vld [vmem:[#allocation2 + $0xc9] sm:$0xff]  ;;  %v1695_v22 = vsel %vm5038_vm3, %v6092_v59, %v1656_v42  ;;  %vm6284_vm9 = vmand %vm10840_vm6, %vm6262_vm4  ;;  %v10845_v52 = vsel %vm6299_vm15, 4294967295, %v10844_v52  ;;  %v1173_v29 = vsel %vm10840_vm6, %v6113_v5, 0.0 }
 0x150   : > { %v1696_v20 = vsel %vm5038_vm3, %v6152_v38, %v1657_v11  ;;  %v10842_v2 = vsel %vm6284_vm9, 4294967295, %v10841_v2  ;;  %v1766_v42 = vsel %vm5051_vm0, %v6266_v44, %v1695_v22  ;;  %10846 = vst [vmem:[#allocation33_spill] sm:$0xff] %v10845_v52  ;;  %v1172_v36 = vsel %vm6284_vm9, %v6111_v56, 0.0  ;;  %vm10576_vm5 = vmand %vm4946_vm12, %vm6299_vm15 }
 0x151   : > { %10843 = vst [vmem:[#allocation32_spill] sm:$0xff] %v10842_v2  ;;  %v1242_v5 = vsel %vm4930_vm8, %v6032_v19, %v1173_v29  ;;  %vm10577_vm6 = vmand %vm5002_vm14, %vm6299_vm15  ;;  %vm10850_vm9 = vcmp.lt.s32.totalorder %v4903_v33, 8 }
 0x152   : > { %v1407_v22 = vsel %vm10576_vm5, %v1274_v55, %v1242_v5 }
 0x156   : > { %v6272_v7 = vpop.f32.mrf.mxu0  ;;  %v1276_v26 = vld [vmem:[#allocation2 + $0xd1] sm:$0xff] }
 0x157   : > { %1010 = vst [vmem:[#allocation2 + $0xe0] sm:$0xff] %v6272_v7  ;;  %v6289_v61 = vpop.f32.mrf.mxu1  ;;  %v1767_v11 = vsel %vm10574_vm1, %v1276_v26, %v1696_v20  ;;  %vm10575_vm1 = vmand %vm4954_vm13, %vm6262_vm4  ;;  %v6351_v55 = vld [vmem:[#allocation2 + $0xd7] sm:$0xff] }
 0x158   : > { %v1788_v50 = vpack.c.bf16 %v1767_v11, %v1766_v42 }
 0x15a   : > { %1900 = vmatmul.bf16.gmra.mxu1 %v1788_v50  ;;  %v1241_v50 = vsel %vm4930_vm8, %v5974_v3, %v1172_v36  ;;  %v1478_v36 = vsel %vm4954_vm13, %v6233_v32, %v1407_v22  ;;  %v436_v3 = vand.u32 15, %v256_v40 }
 0x15b   : > { %v1406_v56 = vsel %vm4946_vm12, %v6146_v24, %v1241_v50  ;;  %v257_v24 = vadd.s32 200, %v4899_v31  ;;  %v1517_v40 = vsel %vm4979_vm10, %v6152_v38, %v1478_v36 }
 0x15c   : > { %v1477_v29 = vsel %vm10575_vm1, %v6231_v16, %v1406_v56  ;;  %vm10588_vm1 = vmand %vm4988_vm2, %vm6262_vm4  ;;  %v1588_v50 = vsel %vm10577_vm6, %v1276_v26, %v1517_v40  ;;  %vm6373_vm5 = vcmp.ge.s32.totalorder %v436_v3, 1  ;;  %v10847_v56 = vmov 0 }
 0x15d   : > { %v1516_v11 = vsel %vm4979_vm10, %v6092_v59, %v1477_v29  ;;  %v10848_v56 = vsel %vm6373_vm5, 4294967295, %v10847_v56  ;;  %v443_v36 = vand.u32 15, %v257_v24  ;;  %vm10592_vm6 = vmand %vm5051_vm0, %vm6299_vm15  ;;  %v10851_v3 = vmov 0 }
 0x15e   : > { %v6332_v20 = vpop.f32.mrf.mxu0  ;;  %v6353_v42 = vld [vmem:[#allocation2 + $0xdf] sm:$0xff]  ;;  %v1587_v5 = vsel %vm5002_vm14, %v6266_v44, %v1516_v11  ;;  %10849 = vst [vmem:[#allocation34_spill] sm:$0xff] %v10848_v56  ;;  %vm6396_vm7 = vmand %vm10850_vm9, %vm6373_vm5 }
 0x15f   : > { %1011 = vst [vmem:[#allocation2 + $0xe8] sm:$0xff] %v6332_v20  ;;  %v6344_v19 = vpop.f32.mrf.mxu1  ;;  %v1658_v22 = vsel %vm10588_vm1, %v6351_v55, %v1587_v5  ;;  %v1659_v29 = vsel %vm4988_vm2, %v6353_v42, %v1588_v50  ;;  %v6386_v11 = vld [vmem:[#allocation2 + $0xd9] sm:$0xff]  ;;  %v10852_v3 = vsel %vm6396_vm7, 4294967295, %v10851_v3  ;;  %vm6419_vm9 = vcmp.lt.s32.totalorder %v443_v36, 15 }
 0x160   : > { %10853 = vst [vmem:[#allocation35_spill] sm:$0xff] %v10852_v3  ;;  %v1697_v24 = vsel %vm5038_vm3, %v6212_v21, %v1658_v22  ;;  %v1698_v50 = vsel %vm5038_vm3, %v6272_v7, %v1659_v29  ;;  %v10854_v22 = vmov 0  ;;  %v1174_v29 = vsel %vm6396_vm7, %v6231_v16, 0.0  ;;  %vm10594_vm4 = vmand %vm4946_vm12, %vm6419_vm9 }
 0x161   : > { %v1768_v2 = vsel %vm5051_vm0, %v6386_v11, %v1697_v24  ;;  %v10855_v22 = vsel %vm6419_vm9, 4294967295, %v10854_v22  ;;  %vm10857_vm1 = vcmp.lt.s32.totalorder %v4903_v33, 8  ;;  %v258_v36 = vadd.s32 208, %v4899_v31 }
 0x162   : > { %10856 = vst [vmem:[#allocation36_spill] sm:$0xff] %v10855_v22  ;;  %v1175_v30 = vsel %vm10857_vm1, %v6233_v32, 0.0  ;;  %vm10595_vm1 = vmand %vm5002_vm14, %vm6419_vm9  ;;  %vm10861_vm7 = vcmp.lt.s32.totalorder %v4903_v33, 8 }
 0x166   : > { %v6400_v40 = vpop.f32.mrf.mxu0  ;;  %v1278_v5 = vld [vmem:[#allocation2 + $0xe1] sm:$0xff] }
 0x167   : > { %1012 = vst [vmem:[#allocation2 + $0xf0] sm:$0xff] %v6400_v40  ;;  %v6409_v27 = vpop.f32.mrf.mxu1  ;;  %v1769_v9 = vsel %vm10592_vm6, %v1278_v5, %v1698_v50  ;;  %vm10593_vm6 = vmand %vm4954_vm13, %vm6373_vm5  ;;  %v6471_v24 = vld [vmem:[#allocation2 + $0xe7] sm:$0xff] }
 0x168   : > { %v1789_v54 = vpack.c.bf16 %v1769_v9, %v1768_v2  ;;  %v1243_v9 = vsel %vm4930_vm8, %v6092_v59, %v1174_v29 }
 0x169   : > { %v1408_v16 = vsel %vm4946_vm12, %v6266_v44, %v1243_v9 }
 0x16a   : > { %1905 = vmatmul.bf16.gmra.mxu1 %v1789_v54  ;;  %v1244_v54 = vsel %vm4930_vm8, %v6152_v38, %v1175_v30  ;;  %v1479_v59 = vsel %vm10593_vm6, %v6351_v55, %v1408_v16  ;;  %v450_v38 = vand.u32 15, %v258_v36  ;;  %vm10606_vm6 = vmand %vm4988_vm2, %vm6373_vm5  ;;  %v10858_v16 = vmov 0 }
 0x16b   : > { %v1409_v32 = vsel %vm10594_vm4, %v1276_v26, %v1244_v54  ;;  %v259_v26 = vadd.s32 216, %v4899_v31  ;;  %v1518_v29 = vsel %vm4979_vm10, %v6212_v21, %v1479_v59 }
 0x16c   : > { %v1480_v30 = vsel %vm4954_vm13, %v6353_v42, %v1409_v32  ;;  %v1589_v9 = vsel %vm5002_vm14, %v6386_v11, %v1518_v29  ;;  %vm6491_vm4 = vcmp.ge.s32.totalorder %v450_v38, 1  ;;  %v10862_v38 = vmov 0 }
 0x16d   : > { %v1519_v36 = vsel %vm4979_vm10, %v6272_v7, %v1480_v30  ;;  %v10859_v16 = vsel %vm6491_vm4, 4294967295, %v10858_v16  ;;  %v1660_v32 = vsel %vm10606_vm6, %v6471_v24, %v1589_v9  ;;  %v457_v30 = vand.u32 15, %v259_v26  ;;  %vm6513_vm15 = vmand %vm10861_vm7, %vm6491_vm4 }
 0x16e   : > { %v6458_v2 = vpop.f32.mrf.mxu0  ;;  %v1046_v50 = vld [vmem:[#allocation2 + $0xef] sm:$0xff]  ;;  %v1590_v54 = vsel %vm10595_vm1, %v1278_v5, %v1519_v36  ;;  %10860 = vst [vmem:[#allocation37_spill] sm:$0xff] %v10859_v16  ;;  %vm10611_vm1 = vmand %vm5051_vm0, %vm6419_vm9  ;;  %v10863_v38 = vsel %vm6513_vm15, 4294967295, %v10862_v38  ;;  %v1699_v26 = vsel %vm5038_vm3, %v6332_v20, %v1660_v32  ;;  %v10865_v32 = vmov 0 }
 0x16f   : > { %1013 = vst [vmem:[#allocation2 + $0xf8] sm:$0xff] %v6458_v2  ;;  %v6464_v44 = vpop.f32.mrf.mxu1  ;;  %v1661_v59 = vsel %vm4988_vm2, %v1046_v50, %v1590_v54  ;;  %v6503_v29 = vld [vmem:[#allocation2 + $0xe9] sm:$0xff]  ;;  %vm6536_vm7 = vcmp.lt.s32.totalorder %v457_v30, 15  ;;  %vm10868_vm6 = vcmp.lt.s32.totalorder %v4903_v33, 8  ;;  %v260_v30 = vadd.s32 224, %v4899_v31 }
 0x170   : > { %10864 = vst [vmem:[#allocation38_spill] sm:$0xff] %v10863_v38  ;;  %v1700_v54 = vsel %vm5038_vm3, %v6400_v40, %v1661_v59  ;;  %v1770_v3 = vsel %vm5051_vm0, %v6503_v29, %v1699_v26  ;;  %v10866_v32 = vsel %vm6536_vm7, 4294967295, %v10865_v32  ;;  %v1176_v59 = vsel %vm6513_vm15, %v6351_v55, 0.0  ;;  %vm10613_vm5 = vmand %vm4946_vm12, %vm6536_vm7 }
 0x171   : > { %10867 = vst [vmem:[#allocation39_spill] sm:$0xff] %v10866_v32  ;;  %v1177_v6 = vsel %vm10868_vm6, %v6353_v42, 0.0  ;;  %v1245_v55 = vsel %vm4930_vm8, %v6212_v21, %v1176_v59  ;;  %vm10615_vm6 = vmand %vm5002_vm14, %vm6536_vm7  ;;  %vm10875_vm9 = vcmp.lt.s32.totalorder %v4903_v33, 8 }
 0x172   : > { %v1410_v42 = vsel %vm4946_vm12, %v6386_v11, %v1245_v55 }
 0x176   : > { %v6517_v36 = vpop.f32.mrf.mxu0  ;;  %v1280_v9 = vld [vmem:[#allocation2 + $0xf1] sm:$0xff] }
 0x177   : > { %1014 = vst [vmem:[#allocation2 + $0x100] sm:$0xff] %v6517_v36  ;;  %v6526_v56 = vpop.f32.mrf.mxu1  ;;  %v1771_v52 = vsel %vm10611_vm1, %v1280_v9, %v1700_v54  ;;  %vm10612_vm1 = vmand %vm4954_vm13, %vm6491_vm4  ;;  %v6587_v54 = vld [vmem:[#allocation2 + $0xf7] sm:$0xff] }
 0x178   : > { %v1790_v45 = vpack.c.bf16 %v1771_v52, %v1770_v3  ;;  %v261_v52 = vadd.s32 232, %v4899_v31  ;;  %v1481_v21 = vsel %vm10612_vm1, %v6471_v24, %v1410_v42  ;;  %vm10618_vm1 = vmand %vm4988_vm2, %vm6491_vm4  ;;  %v10869_v42 = vmov 0 }
 0x17a   : > { %1910 = vmatmul.bf16.gmra.mxu1 %v1790_v45  ;;  %v1246_v45 = vsel %vm4930_vm8, %v6272_v7, %v1177_v6  ;;  %v464_v7 = vand.u32 15, %v260_v30  ;;  %v1520_v30 = vsel %vm4979_vm10, %v6332_v20, %v1481_v21 }
 0x17b   : > { %v1411_v3 = vsel %vm10613_vm5, %v1278_v5, %v1246_v45  ;;  %v471_v5 = vand.u32 15, %v261_v52  ;;  %v1591_v52 = vsel %vm5002_vm14, %v6503_v29, %v1520_v30 }
 0x17c   : > { %v1482_v6 = vsel %vm4954_vm13, %v1046_v50, %v1411_v3  ;;  %vm6607_vm5 = vcmp.ge.s32.totalorder %v464_v7, 1  ;;  %v1662_v3 = vsel %vm10618_vm1, %v6587_v54, %v1591_v52  ;;  %v262_v7 = vadd.s32 240, %v4899_v31  ;;  %vm10876_vm1 = vmmov %vm10875_vm9 }
 0x17d   : > { %v1521_v55 = vsel %vm4979_vm10, %v6400_v40, %v1482_v6  ;;  %v10870_v42 = vsel %vm6607_vm5, 4294967295, %v10869_v42  ;;  %vm6619_vm15 = vcmp.lt.s32.totalorder %v471_v5, 15  ;;  %v10872_v6 = vmov 0  ;;  %vm6636_vm4 = vmand %vm10876_vm1, %vm6607_vm5 }
 0x17e   : > { %v6570_v26 = vpop.f32.mrf.mxu0  ;;  %v1048_v59 = vld [vmem:[#allocation2 + $0xff] sm:$0xff]  ;;  %v1592_v45 = vsel %vm10615_vm6, %v1280_v9, %v1521_v55  ;;  %10871 = vst [vmem:[#allocation40_spill] sm:$0xff] %v10870_v42  ;;  %v10873_v6 = vsel %vm6619_vm15, 4294967295, %v10872_v6  ;;  %vm10633_vm6 = vmand %vm5051_vm0, %vm6536_vm7  ;;  %v1179_v55 = vsel %vm10875_vm9, %v1046_v50, 0.0  ;;  %v10877_v5 = vmov 0 }
 0x17f   : > { %1015 = vst [vmem:[#allocation2 + $0x108] sm:$0xff] %v6570_v26  ;;  %v6581_v11 = vpop.f32.mrf.mxu1  ;;  %v1663_v21 = vsel %vm4988_vm2, %v1048_v59, %v1592_v45  ;;  %v6623_v30 = vld [vmem:[#allocation2 + $0xf9] sm:$0xff]  ;;  %v10878_v5 = vsel %vm6636_vm4, 4294967295, %v10877_v5  ;;  %v1701_v16 = vsel %vm5038_vm3, %v6458_v2, %v1662_v3  ;;  %v263_v50 = vadd.s32 248, %v4899_v31  ;;  %vm10635_vm9 = vmand %vm4946_vm12, %vm6619_vm15 }
 0x180   : > { %10874 = vst [vmem:[#allocation41_spill] sm:$0xff] %v10873_v6  ;;  %v1702_v38 = vsel %vm5038_vm3, %v6517_v36, %v1663_v21  ;;  %v1772_v35 = vsel %vm5051_vm0, %v6623_v30, %v1701_v16  ;;  %v1248_v31 = vsel %vm4930_vm8, %v6400_v40, %v1179_v55  ;;  %v478_v18 = vand.u32 15, %v262_v7  ;;  %vm10640_vm1 = vmand %vm4954_vm13, %vm6607_vm5 }
 0x181   : > { %10879 = vst [vmem:[#allocation42_spill] sm:$0xff] %v10878_v5  ;;  %v1178_v13 = vsel %vm6636_vm4, %v6471_v24, 0.0  ;;  %v1413_v16 = vsel %vm10635_vm9, %v1280_v9, %v1248_v31  ;;  %v485_v32 = vand.u32 15, %v263_v50  ;;  %v10880_v40 = vmov 0 }
 0x182   : > { %vm6682_vm4 = vcmp.ge.s32.totalorder %v478_v18, 1  ;;  %v1247_v24 = vsel %vm4930_vm8, %v6332_v20, %v1178_v13  ;;  %v10883_v7 = vmov 0  ;;  %vm10886_vm7 = vcmp.lt.s32.totalorder %v4903_v33, 8 }
 0x183   : > { %v10881_v40 = vsel %vm6682_vm4, 4294967295, %v10880_v40  ;;  %vm6695_vm9 = vcmp.lt.s32.totalorder %v485_v32, 15  ;;  %vm6716_vm11 = vmand %vm10886_vm7, %vm6682_vm4  ;;  %v10887_v32 = vmov 0  ;;  %v4782_v5 = vmov 256.0  }
 0x184   : > { %10882 = vst [vmem:[#allocation43_spill] sm:$0xff] %v10881_v40  ;;  %v10884_v7 = vsel %vm6695_vm9, 4294967295, %v10883_v7  ;;  %v10888_v32 = vsel %vm6716_vm11, 4294967295, %v10887_v32  ;;  %4633 = vrcp.f32 %v4782_v5 }
 0x185   : > { %10885 = vst [vmem:[#allocation44_spill] sm:$0xff] %v10884_v7  ;;  %v1946_v7 = vld [vmem:[%s10449_s2 + $0x78] sm:$0xff] }
 0x186   : > { %v966_v52 = vpop.f32.mrf.mxu0  ;;  %v1282_v45 = vld [vmem:[#allocation2 + $0x101] sm:$0xff]  ;;  %10889 = vst [vmem:[#allocation45_spill] sm:$0xff] %v10888_v32  ;;  %1992 = vmatpush.msra.mxu2 %v1946_v7  ;;  %2115 = vmatpush.msra.mxu3 %v1946_v7  ;;  %v1942_v7 = vld [vmem:[%s10449_s2 + $0x58] sm:$0xff] }
 0x187   : > { %1016 = vst [vmem:[#allocation2 + $0x110] sm:$0xff] %v966_v52  ;;  %v6651_v22 = vpop.f32.mrf.mxu1  ;;  %v1773_v3 = vsel %vm10633_vm6, %v1282_v45, %v1702_v38  ;;  %vm10641_vm6 = vmand %vm5002_vm14, %vm6619_vm15  ;;  %v1412_v38 = vsel %vm4946_vm12, %v6503_v29, %v1247_v24  ;;  %v1416_v50 = vld [vmem:[#allocation2 + $0x107] sm:$0xff] }
 0x188   : > { %v1791_v21 = vpack.c.bf16 %v1773_v3, %v1772_v35  ;;  %v1484_v35 = vsel %vm4954_vm13, %v1048_v59, %v1413_v16  ;;  %v1483_v13 = vsel %vm10640_vm1, %v6587_v54, %v1412_v38  ;;  %vm10676_vm1 = vmand %vm4988_vm2, %vm6607_vm5 }
 0x189   : > { %v1523_v9 = vsel %vm4979_vm10, %v6517_v36, %v1484_v35  ;;  %v1522_v31 = vsel %vm4979_vm10, %v6458_v2, %v1483_v13 }
 0x18a   : > { %1915 = vmatmul.bf16.gmra.mxu1 %v1791_v21  ;;  %v1594_v20 = vsel %vm10641_vm6, %v1282_v45, %v1523_v9  ;;  %vm10890_vm6 = vmmov %vm10886_vm7  ;;  %v1593_v16 = vsel %vm5002_vm14, %v6623_v30, %v1522_v31  ;;  %v1180_v9 = vsel %vm6716_vm11, %v6587_v54, 0.0  ;;  %v4634_v39 = vpop.eup %4633 }
 0x18b   : > { %v1181_v3 = vsel %vm10890_vm6, %v1048_v59, 0.0  ;;  %vm10642_vm7 = vmand %vm4946_vm12, %vm6695_vm9  ;;  %v1664_v59 = vsel %vm10676_vm1, %v1416_v50, %v1593_v16 }
 0x18c   : > { %vm10643_vm6 = vmand %vm5051_vm0, %vm6619_vm15  ;;  %v1250_v24 = vsel %vm4930_vm8, %v6517_v36, %v1181_v3  ;;  %v1249_v3 = vsel %vm4930_vm8, %v6458_v2, %v1180_v9 }
 0x18d   : > { %v1415_v13 = vsel %vm10642_vm7, %v1282_v45, %v1250_v24  ;;  %vm10644_vm7 = vmand %vm4954_vm13, %vm6682_vm4 }
 0x18e   : > { %v1417_v18 = vld [vmem:[#allocation2 + $0x10f] sm:$0xff]  ;;  %v1597_v24 = vld [vmem:[#allocation2 + $0x117] sm:$0xff] }
 0x18f   : > { %v6710_v29 = vpop.f32.mrf.mxu1  ;;  %v1665_v55 = vsel %vm4988_vm2, %v1417_v18, %v1594_v20  ;;  %v1527_v21 = vld [vmem:[#allocation2 + $0x111] sm:$0xff]  ;;  %v1526_v38 = vld [vmem:[#allocation2 + $0x109] sm:$0xff]  ;;  %v1486_v36 = vsel %vm4954_vm13, %v1417_v18, %v1415_v13  ;;  %v1414_v18 = vsel %vm4946_vm12, %v6623_v30, %v1249_v3  ;;  %v1598_v30 = vld [vmem:[#allocation2 + $0x11f] sm:$0xff] }
 0x190   : > { %v1704_v35 = vsel %vm5038_vm3, %v966_v52, %v1665_v55  ;;  %v1703_v55 = vsel %vm5038_vm3, %v6570_v26, %v1664_v59  ;;  %v1525_v16 = vsel %vm4979_vm10, %v966_v52, %v1486_v36  ;;  %v1708_v13 = vld [vmem:[#allocation2 + $0x121] sm:$0xff]  ;;  %v1707_v36 = vld [vmem:[#allocation2 + $0x119] sm:$0xff] }
 0x191   : > { %v1775_v20 = vsel %vm10643_vm6, %v1527_v21, %v1704_v35  ;;  %v1774_v45 = vsel %vm5051_vm0, %v1526_v38, %v1703_v55  ;;  %vm10645_vm6 = vmand %vm5002_vm14, %vm6695_vm9  ;;  %v1485_v35 = vsel %vm10644_vm7, %v1416_v50, %v1414_v18 }
 0x192   : > { %v1792_v31 = vpack.c.bf16 %v1775_v20, %v1774_v45  ;;  %v1596_v2 = vsel %vm10645_vm6, %v1527_v21, %v1525_v16  ;;  %v1524_v52 = vsel %vm4979_vm10, %v6570_v26, %v1485_v35  ;;  %vm10675_vm7 = vmand %vm4988_vm2, %vm6682_vm4  ;;  %v6818_v21 = vld [vmem:[#allocation2] sm:$0xff] }
 0x193   : > { %v1595_v59 = vsel %vm5002_vm14, %v1526_v38, %v1524_v52  ;;  %v1667_v9 = vsel %vm4988_vm2, %v1598_v30, %v1596_v2  ;;  %vm10671_vm6 = vmand %vm5051_vm0, %vm6695_vm9  ;;  %vm11052_vm9 = vcmp.lt.s32.totalorder %v4903_v33, 8 }
 0x194   : > { %v1666_v26 = vsel %vm10675_vm7, %v1597_v24, %v1595_v59  ;;  %v1706_v38 = vsel %vm5038_vm3, %v6818_v21, %v1667_v9 }
 0x195   : > { %v1705_v20 = vsel %vm5038_vm3, %v6818_v21, %v1666_v26  ;;  %v1777_v55 = vsel %vm10671_vm6, %v1708_v13, %v1706_v38  ;;  %v1947_v26 = vadd.f32 %v6104_v23, %v6049_v53  ;;  %vm1989_vm6 = vweird.f32 %v4634_v39 }
 0x196   : > { %v1776_v3 = vsel %vm5051_vm0, %v1707_v36, %v1705_v20 }
 0x197   : > { %v6770_v54 = vpop.f32.mrf.mxu1  ;;  %v1948_v38 = vadd.f32 %v1947_v26, %v6169_v34  ;;  %v1945_v26 = vld [vmem:[%s10449_s2 + $0x70] sm:$0xff] }
 0x198   : > { %1993 = vmatpush.msra.mxu2 %v1945_v26  ;;  %2116 = vmatpush.msra.mxu3 %v1945_v26 }
 0x199   : > { %v1949_v20 = vadd.f32 %v1948_v38, %v6224_v41 }
 0x19a   : > { %1920 = vmatmul.bf16.gmra.mxu1 %v1792_v31  ;;  %v1793_v31 = vpack.c.bf16 %v1777_v55, %v1776_v3 }
 0x19b   : > { %v1950_v36 = vadd.f32 %v1949_v20, %v6289_v61  ;;  %v1944_v20 = vld [vmem:[%s10449_s2 + $0x68] sm:$0xff] }
 0x19c   : > { %1994 = vmatpush.msra.mxu2 %v1944_v20  ;;  %2117 = vmatpush.msra.mxu3 %v1944_v20 }
 0x19d   : > { %v1951_v55 = vadd.f32 %v1950_v36, %v6344_v19 }
 0x19f   : > { %v6809_v50 = vpop.f32.mrf.mxu1  ;;  %v1952_v3 = vadd.f32 %v1951_v55, %v6409_v27 }
 0x1a1   : > { %v1953_v40 = vadd.f32 %v1952_v3, %v6464_v44 }
 0x1a3   : > { %v1954_v38 = vadd.f32 %v1953_v40, %v6526_v56  ;;  %v1943_v40 = vld [vmem:[%s10449_s2 + $0x60] sm:$0xff] }
 0x1a4   : > { %1995 = vmatpush.msra.mxu2 %v1943_v40  ;;  %2118 = vmatpush.msra.mxu3 %v1943_v40  ;;  %v1939_v40 = vld [vmem:[%s10449_s2 + $0x40] sm:$0xff] }
 0x1a5   : > { %v1955_v36 = vadd.f32 %v1954_v38, %v6581_v11  ;;  %v1941_v38 = vld [vmem:[%s10449_s2 + $0x50] sm:$0xff] }
 0x1a6   : > { %1996 = vmatpush.msra.mxu2 %v1942_v7  ;;  %2119 = vmatpush.msra.mxu3 %v1942_v7 }
 0x1a7   : > { %v6835_v45 = vpop.f32.mrf.mxu1  ;;  %v1956_v55 = vadd.f32 %v1955_v36, %v6651_v22  ;;  %v1940_v36 = vld [vmem:[%s10449_s2 + $0x48] sm:$0xff] }
 0x1a8   : > { %1997 = vmatpush.msra.mxu2 %v1941_v38  ;;  %2120 = vmatpush.msra.mxu3 %v1941_v38 }
 0x1a9   : > { %v1957_v32 = vadd.f32 %v1956_v55, %v6710_v29 }
 0x1aa   : > { %1925 = vmatmul.bf16.gmra.mxu1 %v1793_v31  ;;  %1998 = vmatpush.msra.mxu2 %v1940_v36 }
 0x1ab   : > { %v1958_v26 = vadd.f32 %v1957_v32, %v6770_v54  ;;  %2121 = vmatpush.msra.mxu3 %v1940_v36 }
 0x1ac   : > { %1999 = vmatpush.msra.mxu2 %v1939_v40 }
 0x1ad   : > { %v1959_v20 = vadd.f32 %v1958_v26, %v6809_v50  ;;  %2122 = vmatpush.msra.mxu3 %v1939_v40  ;;  %v1938_v26 = vld [vmem:[%s10449_s2 + $0x38] sm:$0xff] }
 0x1ae   : > { %2000 = vmatpush.msra.mxu2 %v1938_v26 }
 0x1af   : > { %v6839_v18 = vpop.f32.mrf.mxu1  ;;  %v1960_v55 = vadd.f32 %v1959_v20, %v6835_v45  ;;  %2123 = vmatpush.msra.mxu3 %v1938_v26  ;;  %v1937_v20 = vld [vmem:[%s10449_s2 + $0x30] sm:$0xff]  ;;  %v1934_v26 = vld [vmem:[%s10449_s2 + $0x18] sm:$0xff] }
 0x1b0   : > { %2001 = vmatpush.msra.mxu2 %v1937_v20 }
 0x1b1   : > { %v1961_v32 = vadd.f32 %v1960_v55, %v6839_v18  ;;  %2124 = vmatpush.msra.mxu3 %v1937_v20  ;;  %v1936_v55 = vld [vmem:[%s10449_s2 + $0x28] sm:$0xff]  ;;  %v1933_v20 = vld [vmem:[%s10449_s2 + $0x10] sm:$0xff] }
 0x1b2   : > { %2002 = vmatpush.msra.mxu2 %v1936_v55 }
 0x1b3   : > { %2125 = vmatpush.msra.mxu3 %v1936_v55 }
 0x1b7   : > { %v6841_v16 = vpop.f32.mrf.mxu1 }
 0x1b8   : > { %v1962_v7 = vadd.f32 %v1961_v32, %v6841_v16  ;;  %v1935_v32 = vld [vmem:[%s10449_s2 + $0x20] sm:$0xff] }
 0x1b9   : > { %2003 = vmatpush.msra.mxu2 %v1935_v32  ;;  %2126 = vmatpush.msra.mxu3 %v1935_v32  ;;  %v1931_v32 = vld [vmem:[%s10449_s2] sm:$0xff] }
 0x1bb   : > { %2004 = vmatpush.msra.mxu2 %v1934_v26  ;;  %2127 = vmatpush.msra.mxu3 %v1934_v26 }
 0x1bd   : > { %2005 = vmatpush.msra.mxu2 %v1933_v20  ;;  %2128 = vmatpush.msra.mxu3 %v1933_v20 }
 0x1bf   : > { %v6843_v35 = vpop.f32.mrf.mxu1 }
 0x1c0   : > { %v1963_v38 = vadd.f32 %v1962_v7, %v6843_v35 }
 0x1c7   : > { %v6845_v2 = vpop.f32.mrf.mxu1 }
 0x1c8   : > { %v1964_v36 = vadd.f32 %v1963_v38, %v6845_v2 }
 0x1cf   : > { %v6847_v30 = vpop.f32.mrf.mxu1 }
 0x1d0   : > { %v1965_v7 = vadd.f32 %v1964_v36, %v6847_v30  ;;  %v1932_v36 = vld [vmem:[%s10449_s2 + $0x8] sm:$0xff] }
 0x1d1   : > { %2006 = vmatpush.msra.mxu2 %v1932_v36  ;;  %2129 = vmatpush.msra.mxu3 %v1932_v36  ;;  %v1985_v36 = vmul.f32 256.0, %v4634_v39 }
 0x1d3   : > { %2007 = vmatpush.msra.mxu2 %v1931_v32  ;;  %2130 = vmatpush.msra.mxu3 %v1931_v32 }
 0x1d7   : > { %v6849_v52 = vpop.f32.mrf.mxu1 }
 0x1d8   : > { %v1966_v38 = vadd.f32 %v1965_v7, %v6849_v52 }
 0x1df   : > { %v6851_v59 = vpop.f32.mrf.mxu1 }
 0x1e0   : > { %v1967_v6 = vadd.f32 %v1966_v38, %v6851_v59 }
 0x1e7   : > { %v6853_v24 = vpop.f32.mrf.mxu1 }
 0x1e8   : > { %v1968_v55 = vadd.f32 %v1967_v6, %v6853_v24 }
 0x1ef   : > { %v6855_v9 = vpop.f32.mrf.mxu1 }
 0x1f0   : > { %v1969_v26 = vadd.f32 %v1968_v55, %v6855_v9 }
 0x1f7   : > { %v6860_v13 = vpop.f32.mrf.mxu1 }
 0x1f8   : > { %v1970_v38 = vadd.f32 %v1969_v26, %v6860_v13  ;;  %v1986_v26 = vsub.f32 1.0, %v1985_v36 }
 0x1fa   : > { %v1987_v8 = vmul.f32 %v4634_v39, %v1986_v26 }
 0x1fc   : > { %v1988_v0 = vadd.f32 %v4634_v39, %v1987_v8 }
 0x1fe   : > { %v6953_v10 = vsel %vm1989_vm6, %v4634_v39, %v1988_v0 }
 0x1ff   : > { %v6866_v31 = vpop.f32.mrf.mxu1 }
 0x200   : > { %v1971_v20 = vadd.f32 %v1970_v38, %v6866_v31 }
 0x207   : > { %v6881_v3 = vpop.f32.mrf.mxu1 }
 0x208   : > { %v1972_v6 = vadd.f32 %v1971_v20, %v6881_v3 }
 0x20f   : > { %v6899_v42 = vpop.f32.mrf.mxu1 }
 0x210   : > { %v1973_v4 = vadd.f32 %v1972_v6, %v6899_v42 }
 0x217   : > { %v6920_v40 = vpop.f32.mrf.mxu1 }
 0x218   : > { %v1974_v57 = vadd.f32 %v1973_v4, %v6920_v40 }
 0x21f   : > { %v6938_v7 = vpop.f32.mrf.mxu1 }
 0x220   : > { %v1975_v55 = vadd.f32 %v1974_v57, %v6938_v7 }
 0x227   : > { %v6944_v63 = vpop.f32.mrf.mxu1 }
 0x228   : > { %v1976_v32 = vadd.f32 %v1975_v55, %v6944_v63 }
 0x22f   : > { %v6950_v47 = vpop.f32.mrf.mxu1 }
 0x230   : > { %v1977_v5 = vadd.f32 %v1976_v32, %v6950_v47 }
 0x232   : > { %v1978_v38 = vrot.slane %v1977_v5, 4 }
 0x234   : > { %v1979_v20 = vadd.f32 %v1978_v38, %v1977_v5 }
 0x236   : > { %v1980_v62 = vrot.slane %v1979_v20, 2 }
 0x238   : > { %v1981_v14 = vadd.f32 %v1980_v62, %v1979_v20 }
 0x23a   : > { %v1982_v6 = vrot.slane %v1981_v14, 1 }
 0x23c   : > { %v1983_v4 = vadd.f32 %v1982_v6, %v1981_v14 }
 0x23e   : > { %v1991_v57 = vmul.f32 %v6953_v10, %v1983_v4 }
 0x240   : > { %2008 = vmatmul.f32.vlgmr.msra.gmra.mxu2 %v1991_v57 }
 0x2c3   : > { %v2009_v55 = vpop.f32.mrf.mxu2 }
 0x2c4   : > { %v6956_v17 = vperm.slane %v2009_v55, 0 }
 0x2c6   : > { %v6960_v36 = vsub.f32 %v6049_v53, %v6956_v17  ;;  %v6964_v32 = vsub.f32 %v6104_v23, %v6956_v17  ;;  %v6968_v62 = vsub.f32 %v6169_v34, %v6956_v17  ;;  %v6976_v8 = vsub.f32 %v6224_v41, %v6956_v17 }
 0x2c7   : > { %v6980_v39 = vsub.f32 %v6289_v61, %v6956_v17  ;;  %v6986_v34 = vsub.f32 %v6344_v19, %v6956_v17  ;;  %v6992_v41 = vsub.f32 %v6409_v27, %v6956_v17  ;;  %v6998_v20 = vsub.f32 %v6464_v44, %v6956_v17 }
 0x2c8   : > { %v2045_v0 = vmul.f32 %v6960_v36, %v6960_v36  ;;  %v2046_v14 = vmul.f32 %v6964_v32, %v6964_v32  ;;  %v2047_v53 = vmul.f32 %v6968_v62, %v6968_v62  ;;  %v2048_v26 = vmul.f32 %v6976_v8, %v6976_v8 }
 0x2c9   : > { %v2049_v61 = vmul.f32 %v6980_v39, %v6980_v39  ;;  %v2050_v19 = vmul.f32 %v6986_v34, %v6986_v34  ;;  %v7004_v4 = vsub.f32 %v6526_v56, %v6956_v17  ;;  %v2051_v27 = vmul.f32 %v6992_v41, %v6992_v41 }
 0x2ca   : > { %v2077_v23 = vadd.f32 %v2046_v14, %v2045_v0  ;;  %v7010_v55 = vsub.f32 %v6581_v11, %v6956_v17  ;;  %v2052_v44 = vmul.f32 %v6998_v20, %v6998_v20  ;;  %v7016_v14 = vsub.f32 %v6651_v22, %v6956_v17 }
 0x2cb   : > { %v2053_v56 = vmul.f32 %v7004_v4, %v7004_v4 }
 0x2cc   : > { %v2078_v5 = vadd.f32 %v2077_v23, %v2047_v53  ;;  %v7022_v23 = vsub.f32 %v6710_v29, %v6956_v17  ;;  %v2054_v11 = vmul.f32 %v7010_v55, %v7010_v55  ;;  %v2055_v22 = vmul.f32 %v7016_v14, %v7016_v14 }
 0x2ce   : > { %v2079_v38 = vadd.f32 %v2078_v5, %v2048_v26  ;;  %v7028_v5 = vsub.f32 %v6770_v54, %v6956_v17  ;;  %v2056_v29 = vmul.f32 %v7022_v23, %v7022_v23 }
 0x2d0   : > { %v2080_v6 = vadd.f32 %v2079_v38, %v2049_v61  ;;  %v7034_v38 = vsub.f32 %v6809_v50, %v6956_v17  ;;  %v2057_v54 = vmul.f32 %v7028_v5, %v7028_v5 }
 0x2d2   : > { %v2081_v57 = vadd.f32 %v2080_v6, %v2050_v19  ;;  %v7040_v6 = vsub.f32 %v6835_v45, %v6956_v17  ;;  %v2058_v50 = vmul.f32 %v7034_v38, %v7034_v38 }
 0x2d4   : > { %v2082_v0 = vadd.f32 %v2081_v57, %v2051_v27  ;;  %v7046_v57 = vsub.f32 %v6839_v18, %v6956_v17  ;;  %v2059_v45 = vmul.f32 %v7040_v6, %v7040_v6 }
 0x2d6   : > { %v2083_v53 = vadd.f32 %v2082_v0, %v2052_v44  ;;  %v7052_v0 = vsub.f32 %v6841_v16, %v6956_v17  ;;  %v2060_v18 = vmul.f32 %v7046_v57, %v7046_v57 }
 0x2d8   : > { %v2084_v26 = vadd.f32 %v2083_v53, %v2053_v56  ;;  %v7058_v53 = vsub.f32 %v6843_v35, %v6956_v17  ;;  %v2061_v16 = vmul.f32 %v7052_v0, %v7052_v0 }
 0x2da   : > { %v2085_v61 = vadd.f32 %v2084_v26, %v2054_v11  ;;  %v7064_v26 = vsub.f32 %v6845_v2, %v6956_v17  ;;  %v2062_v35 = vmul.f32 %v7058_v53, %v7058_v53 }
 0x2dc   : > { %v2086_v19 = vadd.f32 %v2085_v61, %v2055_v22  ;;  %v7070_v61 = vsub.f32 %v6847_v30, %v6956_v17  ;;  %v2063_v2 = vmul.f32 %v7064_v26, %v7064_v26 }
 0x2de   : > { %v2087_v27 = vadd.f32 %v2086_v19, %v2056_v29  ;;  %v7076_v19 = vsub.f32 %v6849_v52, %v6956_v17  ;;  %v2064_v30 = vmul.f32 %v7070_v61, %v7070_v61 }
 0x2e0   : > { %v2088_v44 = vadd.f32 %v2087_v27, %v2057_v54  ;;  %v7082_v27 = vsub.f32 %v6851_v59, %v6956_v17  ;;  %v2065_v52 = vmul.f32 %v7076_v19, %v7076_v19 }
 0x2e2   : > { %v2089_v56 = vadd.f32 %v2088_v44, %v2058_v50  ;;  %v7088_v44 = vsub.f32 %v6853_v24, %v6956_v17  ;;  %v2066_v59 = vmul.f32 %v7082_v27, %v7082_v27 }
 0x2e4   : > { %v2090_v11 = vadd.f32 %v2089_v56, %v2059_v45  ;;  %v7094_v56 = vsub.f32 %v6855_v9, %v6956_v17  ;;  %v2067_v24 = vmul.f32 %v7088_v44, %v7088_v44 }
 0x2e6   : > { %v2091_v22 = vadd.f32 %v2090_v11, %v2060_v18  ;;  %v7100_v11 = vsub.f32 %v6860_v13, %v6956_v17  ;;  %v2068_v9 = vmul.f32 %v7094_v56, %v7094_v56 }
 0x2e8   : > { %v2092_v29 = vadd.f32 %v2091_v22, %v2061_v16  ;;  %v7106_v22 = vsub.f32 %v6866_v31, %v6956_v17  ;;  %v2069_v13 = vmul.f32 %v7100_v11, %v7100_v11 }
 0x2ea   : > { %v2093_v54 = vadd.f32 %v2092_v29, %v2062_v35  ;;  %v7112_v29 = vsub.f32 %v6881_v3, %v6956_v17  ;;  %v2070_v31 = vmul.f32 %v7106_v22, %v7106_v22 }
 0x2ec   : > { %v2094_v50 = vadd.f32 %v2093_v54, %v2063_v2  ;;  %v7118_v54 = vsub.f32 %v6899_v42, %v6956_v17  ;;  %v2071_v3 = vmul.f32 %v7112_v29, %v7112_v29 }
 0x2ee   : > { %v2095_v45 = vadd.f32 %v2094_v50, %v2064_v30  ;;  %v7124_v50 = vsub.f32 %v6920_v40, %v6956_v17  ;;  %v2072_v42 = vmul.f32 %v7118_v54, %v7118_v54 }
 0x2f0   : > { %v2096_v18 = vadd.f32 %v2095_v45, %v2065_v52  ;;  %v7130_v45 = vsub.f32 %v6938_v7, %v6956_v17  ;;  %v2073_v40 = vmul.f32 %v7124_v50, %v7124_v50 }
 0x2f2   : > { %v2097_v16 = vadd.f32 %v2096_v18, %v2066_v59  ;;  %v7136_v18 = vsub.f32 %v6944_v63, %v6956_v17  ;;  %v2074_v7 = vmul.f32 %v7130_v45, %v7130_v45 }
 0x2f4   : > { %v2098_v35 = vadd.f32 %v2097_v16, %v2067_v24  ;;  %v7142_v16 = vsub.f32 %v6950_v47, %v6956_v17 }
 0x2f6   : > { %v2099_v2 = vadd.f32 %v2098_v35, %v2068_v9  ;;  %v2075_v35 = vmul.f32 %v7136_v18, %v7136_v18  ;;  %v2076_v63 = vmul.f32 %v7142_v16, %v7142_v16 }
 0x2f8   : > { %v2100_v30 = vadd.f32 %v2099_v2, %v2069_v13 }
 0x2fa   : > { %v2101_v52 = vadd.f32 %v2100_v30, %v2070_v31 }
 0x2fc   : > { %v2102_v59 = vadd.f32 %v2101_v52, %v2071_v3 }
 0x2fe   : > { %v2103_v24 = vadd.f32 %v2102_v59, %v2072_v42 }
 0x300   : > { %v2104_v9 = vadd.f32 %v2103_v24, %v2073_v40  ;;  %v4484_v40 = vld [vmem:[%s10449_s2 + $0xf8] sm:$0xff]  ;;  %v4483_v24 = vld [vmem:[%s10449_s2 + $0xf0] sm:$0xff] }
 0x301   : > { %2293 = vmatpush.msrb.mxu2 %v4484_v40  ;;  %v4470_v40 = vld [vmem:[%s10449_s2 + $0x88] sm:$0xff] }
 0x302   : > { %v2105_v13 = vadd.f32 %v2104_v9, %v2074_v7  ;;  %v4482_v7 = vld [vmem:[%s10449_s2 + $0xe8] sm:$0xff]  ;;  %v4481_v9 = vld [vmem:[%s10449_s2 + $0xe0] sm:$0xff] }
 0x303   : > { %2294 = vmatpush.msrb.mxu2 %v4483_v24  ;;  %v4469_v24 = vld [vmem:[%s10449_s2 + $0x80] sm:$0xff] }
 0x304   : > { %v2106_v2 = vadd.f32 %v2105_v13, %v2075_v35  ;;  %v4480_v35 = vld [vmem:[%s10449_s2 + $0xd8] sm:$0xff]  ;;  %v4479_v13 = vld [vmem:[%s10449_s2 + $0xd0] sm:$0xff] }
 0x305   : > { %2295 = vmatpush.msrb.mxu2 %v4482_v7 }
 0x306   : > { %v2107_v31 = vadd.f32 %v2106_v2, %v2076_v63  ;;  %v4478_v63 = vld [vmem:[%s10449_s2 + $0xc8] sm:$0xff]  ;;  %v4477_v2 = vld [vmem:[%s10449_s2 + $0xc0] sm:$0xff] }
 0x307   : > { %2296 = vmatpush.msrb.mxu2 %v4481_v9 }
 0x308   : > { %v2108_v30 = vrot.slane %v2107_v31, 4 }
 0x309   : > { %2297 = vmatpush.msrb.mxu2 %v4480_v35 }
 0x30a   : > { %v2109_v3 = vadd.f32 %v2108_v30, %v2107_v31  ;;  %v4476_v31 = vld [vmem:[%s10449_s2 + $0xb8] sm:$0xff]  ;;  %v4475_v30 = vld [vmem:[%s10449_s2 + $0xb0] sm:$0xff] }
 0x30b   : > { %2298 = vmatpush.msrb.mxu2 %v4479_v13 }
 0x30c   : > { %v2110_v52 = vrot.slane %v2109_v3, 2 }
 0x30d   : > { %2299 = vmatpush.msrb.mxu2 %v4478_v63 }
 0x30e   : > { %v2111_v42 = vadd.f32 %v2110_v52, %v2109_v3  ;;  %v4474_v3 = vld [vmem:[%s10449_s2 + $0xa8] sm:$0xff]  ;;  %v4473_v52 = vld [vmem:[%s10449_s2 + $0xa0] sm:$0xff] }
 0x30f   : > { %2300 = vmatpush.msrb.mxu2 %v4477_v2 }
 0x310   : > { %v2112_v59 = vrot.slane %v2111_v42, 1 }
 0x311   : > { %2301 = vmatpush.msrb.mxu2 %v4476_v31 }
 0x312   : > { %v2113_v17 = vadd.f32 %v2112_v59, %v2111_v42  ;;  %v4472_v42 = vld [vmem:[%s10449_s2 + $0x98] sm:$0xff] }
 0x313   : > { %2302 = vmatpush.msrb.mxu2 %v4475_v30 }
 0x314   : > { %v2114_v47 = vmul.f32 %v2113_v17, %v6953_v10 }
 0x315   : > { %2303 = vmatpush.msrb.mxu2 %v4474_v3  ;;  %v7204_v3 = vld [vmem:[%s10451_s4] ss:$0 sm:$0xff] }
 0x316   : > { %2131 = vmatmul.f32.vlgmr.msra.gmra.mxu3 %v2114_v47  ;;  %v4471_v47 = vld [vmem:[%s10449_s2 + $0x90] sm:$0xff] }
 0x317   : > { %2304 = vmatpush.msrb.mxu2 %v4473_v52 }
 0x319   : > { %2305 = vmatpush.msrb.mxu2 %v4472_v42 }
 0x31b   : > { %2306 = vmatpush.msrb.mxu2 %v4471_v47 }
 0x31d   : > { %2307 = vmatpush.msrb.mxu2 %v4470_v40 }
 0x31f   : > { %2308 = vmatpush.msrb.mxu2 %v4469_v24 }
 0x399   : > { %v2132_v59 = vpop.f32.mrf.mxu3 }
 0x39a   : > { %v2133_v17 = vadd.f32 1e-05, %v2132_v59 }
 0x39c   : > { %4635 = vrsqrt.f32 %v2133_v17  ;;  %vm2141_vm7 = vweird.f32 %v2133_v17 }
 0x3a2   : > { %v4636_v7 = vpop.eup %4635 }
 0x3a3   : > { %v2136_v9 = vmul.f32 %v4636_v7, %v2133_v17  ;;  %vm2142_vm6 = vweird.f32 %v4636_v7 }
 0x3a4   : > { %vm2143_vm1 = vmor %vm2141_vm7, %vm2142_vm6  ;;  %vm10892_vm7 = vnez %v10712_v46 }
 0x3a5   : > { %v2137_v35 = vmul.f32 %v4636_v7, %v2136_v9  ;;  %vm10893_vm6 = vmand %vm4946_vm12, %vm10892_vm7 }
 0x3a7   : > { %v2138_v13 = vmul.f32 0.5, %v2137_v35 }
 0x3a9   : > { %v2139_v63 = vsub.f32 1.5, %v2138_v13 }
 0x3ab   : > { %v2140_v2 = vmul.f32 %v4636_v7, %v2139_v63 }
 0x3ad   : > { %v2144_v31 = vsel %vm2143_vm1, %v4636_v7, %v2140_v2  ;;  %vm10891_vm1 = vcmp.lt.s32.totalorder %v4903_v33, 8 }
 0x3ae   : > { %v7199_v30 = vperm.slane %v2144_v31, 0 }
 0x3b0   : > { %v2146_v52 = vmul.f32 %v7199_v30, %v6960_v36  ;;  %v2147_v42 = vmul.f32 %v7199_v30, %v6964_v32  ;;  %v2169_v59 = vmul.f32 %v7199_v30, %v7094_v56  ;;  %v2170_v17 = vmul.f32 %v7199_v30, %v7100_v11  ;;  %v7223_v36 = vld [vmem:[%s10451_s4 + $0x1] ss:$0 sm:$0xff] }
 0x3b1   : > { %v2171_v47 = vmul.f32 %v7199_v30, %v7106_v22  ;;  %v2172_v40 = vmul.f32 %v7199_v30, %v7112_v29  ;;  %v2173_v24 = vmul.f32 %v7199_v30, %v7118_v54  ;;  %v2174_v32 = vmul.f32 %v7199_v30, %v7124_v50 }
 0x3b2   : > { %v2175_v56 = vmul.f32 %v7199_v30, %v7130_v45  ;;  %v2176_v11 = vmul.f32 %v7199_v30, %v7136_v18  ;;  %v2177_v22 = vmul.f32 %v7199_v30, %v7142_v16  ;;  %v2179_v29 = vmul.f32 %v7204_v3, %v2146_v52 }
 0x3b3   : > { %v2202_v54 = vmul.f32 %v7204_v3, %v2169_v59  ;;  %v7236_v7 = vmul.f32 %v7204_v3, %v2170_v17  ;;  %v7239_v9 = vmul.f32 %v7204_v3, %v2171_v47  ;;  %v7242_v50 = vmul.f32 %v7204_v3, %v2172_v40 }
 0x3b4   : > { %v7245_v45 = vmul.f32 %v7204_v3, %v2173_v24  ;;  %v7248_v18 = vmul.f32 %v7204_v3, %v2174_v32  ;;  %v7251_v16 = vmul.f32 %v7204_v3, %v2175_v56  ;;  %v2154_v35 = vmul.f32 %v7199_v30, %v7004_v4 }
 0x3b5   : > { %v7256_v13 = vmul.f32 %v7204_v3, %v2176_v11  ;;  %v7259_v63 = vmul.f32 %v7204_v3, %v2177_v22  ;;  %v2212_v2 = vadd.f32 %v7223_v36, %v2179_v29  ;;  %v2148_v31 = vmul.f32 %v7199_v30, %v6968_v62 }
 0x3b6   : > { %v2155_v52 = vmul.f32 %v7199_v30, %v7010_v55  ;;  %v2156_v59 = vmul.f32 %v7199_v30, %v7016_v14  ;;  %v2180_v4 = vmul.f32 %v7204_v3, %v2147_v42  ;;  %v2157_v47 = vmul.f32 %v7199_v30, %v7022_v23 }
 0x3b7   : > { %v2244_v17 = vmax.f32 %v2212_v2, 0.0  ;;  %v2158_v40 = vmul.f32 %v7199_v30, %v7028_v5  ;;  %v2159_v24 = vmul.f32 %v7199_v30, %v7034_v38  ;;  %v2160_v62 = vmul.f32 %v7199_v30, %v7040_v6 }
 0x3b8   : > { %v2161_v55 = vmul.f32 %v7199_v30, %v7046_v57  ;;  %v2162_v14 = vmul.f32 %v7199_v30, %v7052_v0  ;;  %v2163_v42 = vmul.f32 %v7199_v30, %v7058_v53  ;;  %v2187_v23 = vmul.f32 %v7204_v3, %v2154_v35 }
 0x3b9   : > { %2309 = vmatmul.f32.vlgmr.msrb.gmra.mxu2 %v2244_v17  ;;  %v2164_v5 = vmul.f32 %v7199_v30, %v7064_v26  ;;  %v2165_v38 = vmul.f32 %v7199_v30, %v7070_v61  ;;  %v2166_v6 = vmul.f32 %v7199_v30, %v7076_v19  ;;  %v2167_v57 = vmul.f32 %v7199_v30, %v7082_v27 }
 0x3ba   : > { %v2168_v0 = vmul.f32 %v7199_v30, %v7088_v44  ;;  %v2213_v53 = vadd.f32 %v7223_v36, %v2180_v4  ;;  %v7296_v32 = vadd.f32 %v7223_v36, %v2187_v23  ;;  %v2188_v56 = vmul.f32 %v7204_v3, %v2155_v52 }
 0x3bb   : > { %v2189_v26 = vmul.f32 %v7204_v3, %v2156_v59  ;;  %v2190_v61 = vmul.f32 %v7204_v3, %v2157_v47  ;;  %v2191_v11 = vmul.f32 %v7204_v3, %v2158_v40  ;;  %v2192_v19 = vmul.f32 %v7204_v3, %v2159_v24 }
 0x3bc   : > { %v2181_v27 = vmul.f32 %v7204_v3, %v2148_v31  ;;  %v7305_v22 = vadd.f32 %v7223_v36, %v2188_v56  ;;  %v2193_v44 = vmul.f32 %v7204_v3, %v2160_v62  ;;  %v2194_v29 = vmul.f32 %v7204_v3, %v2161_v55 }
 0x3bd   : > { %v7310_v35 = vadd.f32 %v7223_v36, %v2189_v26  ;;  %v7313_v2 = vadd.f32 %v7223_v36, %v2190_v61  ;;  %v7316_v52 = vadd.f32 %v7223_v36, %v2191_v11  ;;  %v7319_v59 = vadd.f32 %v7223_v36, %v2192_v19 }
 0x3be   : > { %v2245_v31 = vmax.f32 %v2213_v53, 0.0  ;;  %v7322_v17 = vadd.f32 %v7223_v36, %v2193_v44  ;;  %v7325_v4 = vadd.f32 %v7223_v36, %v2194_v29  ;;  %v2195_v47 = vmul.f32 %v7204_v3, %v2162_v14 }
 0x3bf   : > { %v2149_v40 = vmul.f32 %v7199_v30, %v6976_v8  ;;  %v2196_v62 = vmul.f32 %v7204_v3, %v2163_v42  ;;  %v2197_v55 = vmul.f32 %v7204_v3, %v2164_v5  ;;  %v2198_v23 = vmul.f32 %v7204_v3, %v2165_v38 }
 0x3c0   : > { %v7331_v24 = vadd.f32 %v7223_v36, %v2195_v47  ;;  %v2199_v53 = vmul.f32 %v7204_v3, %v2166_v6  ;;  %v2200_v56 = vmul.f32 %v7204_v3, %v2167_v57  ;;  %v2214_v26 = vadd.f32 %v7223_v36, %v2181_v27 }
 0x3c1   : > { %2312 = vmatmul.f32.gmra.mxu2 %v2245_v31  ;;  %v7340_v14 = vadd.f32 %v7223_v36, %v2196_v62  ;;  %v2201_v8 = vmul.f32 %v7204_v3, %v2168_v0  ;;  %v7344_v61 = vadd.f32 %v7223_v36, %v2202_v54  ;;  %v7347_v42 = vadd.f32 %v7223_v36, %v2197_v55 }
 0x3c2   : > { %v7350_v5 = vadd.f32 %v7223_v36, %v2198_v23  ;;  %v7353_v38 = vadd.f32 %v7223_v36, %v2199_v53  ;;  %v7356_v6 = vadd.f32 %v7223_v36, %v2200_v56  ;;  %v7363_v0 = vadd.f32 %v7223_v36, %v7236_v7 }
 0x3c3   : > { %v7359_v57 = vadd.f32 %v7223_v36, %v2201_v8  ;;  %v2246_v54 = vmax.f32 %v2214_v26, 0.0  ;;  %v2182_v11 = vmul.f32 %v7204_v3, %v2149_v40  ;;  %v7368_v19 = vadd.f32 %v7223_v36, %v7239_v9 }
 0x3c4   : > { %v7372_v27 = vadd.f32 %v7223_v36, %v7242_v50  ;;  %v7376_v44 = vadd.f32 %v7223_v36, %v7245_v45  ;;  %v7380_v29 = vadd.f32 %v7223_v36, %v7248_v18  ;;  %v7384_v7 = vadd.f32 %v7223_v36, %v7251_v16 }
 0x3c5   : > { %v7388_v9 = vadd.f32 %v7223_v36, %v7256_v13  ;;  %v7392_v50 = vadd.f32 %v7223_v36, %v7259_v63  ;;  %v2150_v45 = vmul.f32 %v7199_v30, %v6980_v39  ;;  %v2215_v31 = vadd.f32 %v7223_v36, %v2182_v11 }
 0x3c6   : > { %v2151_v16 = vmul.f32 %v7199_v30, %v6986_v34  ;;  %v2152_v63 = vmul.f32 %v7199_v30, %v6992_v41  ;;  %v2153_v53 = vmul.f32 %v7199_v30, %v6998_v20  ;;  %v2252_v41 = vmax.f32 %v7296_v32, 0.0  ;;  %v4617_v32 = vld [vmem:[%s10448_s1 + $0x78] sm:$0xff] }
 0x3c7   : > { %v2247_v18 = vmax.f32 %v2215_v31, 0.0  ;;  %v2183_v47 = vmul.f32 %v7204_v3, %v2150_v45  ;;  %v2253_v11 = vmax.f32 %v7305_v22, 0.0  ;;  %v2254_v45 = vmax.f32 %v7310_v35, 0.0  ;;  %2915 = vmatpush.bf16.msrb.mxu3 %v4617_v32  ;;  %v4616_v22 = vld [vmem:[%s10448_s1 + $0x70] sm:$0xff] }
 0x3c8   : > { %v2184_v62 = vmul.f32 %v7204_v3, %v2151_v16  ;;  %v2185_v23 = vmul.f32 %v7204_v3, %v2152_v63  ;;  %v2186_v26 = vmul.f32 %v7204_v3, %v2153_v53  ;;  %v2255_v20 = vmax.f32 %v7313_v2, 0.0  ;;  %v4615_v2 = vld [vmem:[%s10448_s1 + $0x68] sm:$0xff]  ;;  %v4612_v31 = vld [vmem:[%s10448_s1 + $0x50] sm:$0xff]  ;;  %v4610_v16 = vld [vmem:[%s10448_s1 + $0x40] sm:$0xff] }
 0x3c9   : > { %2315 = vmatmul.f32.gmra.mxu2 %v2246_v54  ;;  %v2216_v13 = vadd.f32 %v7223_v36, %v2183_v47  ;;  %v2256_v30 = vmax.f32 %v7316_v52, 0.0  ;;  %v2257_v3 = vmax.f32 %v7319_v59, 0.0  ;;  %v2259_v35 = vmax.f32 %v7325_v4, 0.0  ;;  %v4614_v52 = vld [vmem:[%s10448_s1 + $0x60] sm:$0xff] }
 0x3ca   : > { %v2217_v39 = vadd.f32 %v7223_v36, %v2184_v62  ;;  %v2218_v34 = vadd.f32 %v7223_v36, %v2185_v23  ;;  %v2219_v8 = vadd.f32 %v7223_v36, %v2186_v26  ;;  %v2258_v36 = vmax.f32 %v7322_v17, 0.0  ;;  %v4613_v17 = vld [vmem:[%s10448_s1 + $0x58] sm:$0xff]  ;;  %v2456_v62 = vld [vmem:[#allocation2 + $0xf] sm:$0xff] }
 0x3cb   : > { %v2248_v40 = vmax.f32 %v2216_v13, 0.0  ;;  %2916 = vmatpush.bf16.msrb.mxu3 %v4616_v22  ;;  %v2260_v59 = vmax.f32 %v7331_v24, 0.0  ;;  %v4611_v24 = vld [vmem:[%s10448_s1 + $0x48] sm:$0xff]  ;;  %v2262_v13 = vmax.f32 %v7347_v42, 0.0  ;;  %v2264_v42 = vmax.f32 %v7353_v38, 0.0 }
 0x3cc   : > { %v2249_v55 = vmax.f32 %v2217_v39, 0.0  ;;  %v2250_v56 = vmax.f32 %v2218_v34, 0.0  ;;  %v2251_v54 = vmax.f32 %v2219_v8, 0.0  ;;  %v2488_v39 = vsel %vm10891_vm1, %v2456_v62, 0.0 }
 0x3cd   : > { %v2552_v23 = vsel %vm4930_vm8, %v6818_v21, %v2488_v39  ;;  %vm10894_vm1 = vnez %v10706_v37 }
 0x3ce   : > { %vm10895_vm4 = vmand %vm4954_vm13, %vm10894_vm1 }
 0x3cf   : > { %2917 = vmatpush.bf16.msrb.mxu3 %v4615_v2 }
 0x3d1   : > { %2318 = vmatmul.f32.gmra.mxu2 %v2247_v18  ;;  %v2261_v18 = vmax.f32 %v7340_v14, 0.0  ;;  %v2263_v14 = vmax.f32 %v7350_v5, 0.0 }
 0x3d3   : > { %2918 = vmatpush.bf16.msrb.mxu3 %v4614_v52 }
 0x3d7   : > { %2919 = vmatpush.bf16.msrb.mxu3 %v4613_v17 }
 0x3d9   : > { %2321 = vmatmul.f32.gmra.mxu2 %v2248_v40 }
 0x3db   : > { %2920 = vmatpush.bf16.msrb.mxu3 %v4612_v31 }
 0x3df   : > { %2921 = vmatpush.bf16.msrb.mxu3 %v4611_v24 }
 0x3e1   : > { %2324 = vmatmul.f32.gmra.mxu2 %v2249_v55  ;;  %v2583_v55 = vld [vmem:[#allocation2 + $0x9] sm:$0xff] }
 0x3e3   : > { %2922 = vmatpush.bf16.msrb.mxu3 %v4610_v16  ;;  %v2266_v16 = vmax.f32 %v7359_v57, 0.0  ;;  %v10903_v57 = vld [vmem:[#allocation3_spill] sm:$0xff] }
 0x3e9   : > { %2327 = vmatmul.f32.gmra.mxu2 %v2250_v56  ;;  %v2615_v56 = vsel %vm4946_vm12, %v2583_v55, %v4952_v49 }
 0x3f1   : > { %2330 = vmatmul.f32.gmra.mxu2 %v2251_v54 }
 0x3f9   : > { %2333 = vmatmul.f32.gmra.mxu2 %v2252_v41 }
 0x401   : > { %2336 = vmatmul.f32.gmra.mxu2 %v2253_v11 }
 0x409   : > { %2339 = vmatmul.f32.gmra.mxu2 %v2254_v45  ;;  %v2265_v45 = vmax.f32 %v7356_v6, 0.0 }
 0x411   : > { %2342 = vmatmul.f32.gmra.mxu2 %v2255_v20 }
 0x419   : > { %2345 = vmatmul.f32.gmra.mxu2 %v2256_v30 }
 0x421   : > { %2348 = vmatmul.f32.gmra.mxu2 %v2257_v3 }
 0x429   : > { %2351 = vmatmul.f32.gmra.mxu2 %v2258_v36 }
 0x431   : > { %2354 = vmatmul.f32.gmra.mxu2 %v2259_v35 }
 0x439   : > { %2357 = vmatmul.f32.gmra.mxu2 %v2260_v59 }
 0x43c   : > { %v2310_v4 = vpop.f32.mrf.mxu2 }
 0x43d   : > { %2423 = vst [vmem:[#allocation2 + $0x18] sm:$0xff] %v2310_v4 }
 0x441   : > { %2360 = vmatmul.f32.gmra.mxu2 %v2261_v18 }
 0x444   : > { %v2313_v47 = vpop.f32.mrf.mxu2  ;;  %v2584_v53 = vld [vmem:[#allocation2 + $0x11] sm:$0xff] }
 0x445   : > { %2424 = vst [vmem:[#allocation2 + $0x20] sm:$0xff] %v2313_v47  ;;  %v2457_v34 = vld [vmem:[#allocation2 + $0x17] sm:$0xff]  ;;  %v2616_v26 = vsel %vm10893_vm6, %v2584_v53, %v2552_v23  ;;  %vm10897_vm6 = vmand %vm4988_vm2, %vm10894_vm1 }
 0x446   : > { %v2649_v21 = vsel %vm10895_vm4, %v2457_v34, %v2615_v56  ;;  %vm10896_vm4 = vmand %vm5002_vm14, %vm10892_vm7 }
 0x447   : > { %v2683_v20 = vsel %vm4979_vm10, %v2310_v4, %v2649_v21  ;;  %vm10898_vm1 = vmand %vm5051_vm0, %vm10892_vm7  ;;  %vm10901_vm7 = vnez %v10734_v28 }
 0x449   : > { %2363 = vmatmul.f32.gmra.mxu2 %v2262_v13 }
 0x44c   : > { %v7446_v40 = vpop.f32.mrf.mxu2  ;;  %v2458_v5 = vld [vmem:[#allocation2 + $0x1f] sm:$0xff] }
 0x44d   : > { %2425 = vst [vmem:[#allocation2 + $0x28] sm:$0xff] %v7446_v40  ;;  %v2650_v38 = vsel %vm4954_vm13, %v2458_v5, %v2616_v26  ;;  %v2585_v49 = vld [vmem:[#allocation2 + $0x19] sm:$0xff] }
 0x44e   : > { %v2684_v30 = vsel %vm4979_vm10, %v2313_v47, %v2650_v38  ;;  %v2717_v3 = vsel %vm5002_vm14, %v2585_v49, %v2683_v20 }
 0x451   : > { %2366 = vmatmul.f32.gmra.mxu2 %v2263_v14 }
 0x454   : > { %v7450_v63 = vpop.f32.mrf.mxu2  ;;  %v2586_v54 = vld [vmem:[#allocation2 + $0x21] sm:$0xff] }
 0x455   : > { %2426 = vst [vmem:[#allocation2 + $0x30] sm:$0xff] %v7450_v63  ;;  %v2459_v41 = vld [vmem:[#allocation2 + $0x27] sm:$0xff]  ;;  %v2718_v36 = vsel %vm10896_vm4, %v2586_v54, %v2684_v30  ;;  %vm10899_vm4 = vnez %v10732_v25 }
 0x456   : > { %v2751_v6 = vsel %vm10897_vm6, %v2459_v41, %v2717_v3  ;;  %v2489_v18 = vsel %vm10899_vm4, %v2457_v34, 0.0  ;;  %vm10900_vm6 = vcmp.lt.s32.totalorder %v4903_v33, 8  ;;  %vm10904_vm4 = vnez %v10903_v57  ;;  %v10909_v3 = vld [vmem:[#allocation5_spill] sm:$0xff] }
 0x457   : > { %v2785_v52 = vsel %vm5038_vm3, %v7446_v40, %v2751_v6  ;;  %v2490_v24 = vsel %vm10900_vm6, %v2458_v5, 0.0  ;;  %v2553_v13 = vsel %vm4930_vm8, %v2310_v4, %v2489_v18  ;;  %vm10905_vm6 = vmand %vm4954_vm13, %vm10904_vm4  ;;  %v2269_v18 = vmax.f32 %v7368_v19, 0.0 }
 0x458   : > { %v2554_v14 = vsel %vm4930_vm8, %v2313_v47, %v2490_v24  ;;  %v2617_v46 = vsel %vm4946_vm12, %v2585_v49, %v2553_v13 }
 0x459   : > { %2369 = vmatmul.f32.gmra.mxu2 %v2264_v42  ;;  %v2651_v4 = vsel %vm10905_vm6, %v2459_v41, %v2617_v46  ;;  %v2267_v42 = vmax.f32 %v7344_v61, 0.0  ;;  %vm10907_vm6 = vmand %vm4988_vm2, %vm10904_vm4 }
 0x45a   : > { %v2685_v23 = vsel %vm4979_vm10, %v7446_v40, %v2651_v4  ;;  %vm10908_vm4 = vmand %vm5051_vm0, %vm10901_vm7 }
 0x45c   : > { %v7467_v8 = vpop.f32.mrf.mxu2  ;;  %v2460_v11 = vld [vmem:[#allocation2 + $0x2f] sm:$0xff] }
 0x45d   : > { %2427 = vst [vmem:[#allocation2 + $0x38] sm:$0xff] %v7467_v8  ;;  %v2752_v32 = vsel %vm4988_vm2, %v2460_v11, %v2718_v36  ;;  %v2587_v22 = vld [vmem:[#allocation2 + $0x29] sm:$0xff] }
 0x45e   : > { %v2786_v59 = vsel %vm5038_vm3, %v7450_v63, %v2752_v32  ;;  %v2819_v37 = vsel %vm5051_vm0, %v2587_v22, %v2785_v52  ;;  %v2719_v34 = vsel %vm5002_vm14, %v2587_v22, %v2685_v23  ;;  %v2268_v32 = vmax.f32 %v7363_v0, 0.0  ;;  %v10915_v0 = vld [vmem:[#allocation4_spill] sm:$0xff] }
 0x461   : > { %2372 = vmatmul.f32.gmra.mxu2 %v2265_v45 }
 0x464   : > { %v7496_v35 = vpop.f32.mrf.mxu2  ;;  %v2588_v2 = vld [vmem:[#allocation2 + $0x31] sm:$0xff] }
 0x465   : > { %2428 = vst [vmem:[#allocation2 + $0x40] sm:$0xff] %v7496_v35  ;;  %v2820_v17 = vsel %vm10898_vm1, %v2588_v2, %v2786_v59  ;;  %vm10902_vm1 = vmand %vm4946_vm12, %vm10901_vm7  ;;  %v2461_v39 = vld [vmem:[#allocation2 + $0x37] sm:$0xff] }
 0x466   : > { %v2851_v31 = vpack.c.bf16 %v2820_v17, %v2819_v37  ;;  %v2618_v25 = vsel %vm10902_vm1, %v2586_v54, %v2554_v14  ;;  %vm10906_vm1 = vmand %vm5002_vm14, %vm10901_vm7  ;;  %v2753_v61 = vsel %vm10907_vm6, %v2461_v39, %v2719_v34  ;;  %vm10911_vm6 = vcmp.lt.s32.totalorder %v4903_v33, 8 }
 0x467   : > { %v2652_v47 = vsel %vm4954_vm13, %v2460_v11, %v2618_v25  ;;  %v2787_v49 = vsel %vm5038_vm3, %v7467_v8, %v2753_v61  ;;  %v2492_v6 = vsel %vm10911_vm6, %v2460_v11, 0.0  ;;  %v2270_v61 = vmax.f32 %v7372_v27, 0.0  ;;  %v10927_v27 = vld [vmem:[#allocation7_spill] sm:$0xff] }
 0x468   : > { %2923 = vmatmul.bf16.vlgmr.msrb.gmra.mxu3 %v2851_v31  ;;  %v2686_v53 = vsel %vm4979_vm10, %v7450_v63, %v2652_v47  ;;  %v2556_v28 = vsel %vm4930_vm8, %v7450_v63, %v2492_v6 }
 0x469   : > { %2375 = vmatmul.f32.gmra.mxu2 %v2266_v16  ;;  %v2720_v5 = vsel %vm10906_vm1, %v2588_v2, %v2686_v53  ;;  %vm10910_vm1 = vnez %v10909_v3  ;;  %v10921_v53 = vld [vmem:[#allocation8_spill] sm:$0xff]  ;;  %v2271_v3 = vmax.f32 %v7376_v44, 0.0 }
 0x46a   : > { %v2491_v36 = vsel %vm10910_vm1, %v2459_v41, 0.0  ;;  %v10912_v41 = vld [vmem:[#allocation6_spill] sm:$0xff]  ;;  %vm10916_vm1 = vnez %v10915_v0 }
 0x46b   : > { %v2555_v52 = vsel %vm4930_vm8, %v7446_v40, %v2491_v36  ;;  %vm10913_vm7 = vnez %v10912_v41  ;;  %vm10917_vm6 = vmand %vm4954_vm13, %vm10916_vm1 }
 0x46c   : > { %v7528_v62 = vpop.f32.mrf.mxu2  ;;  %v2462_v55 = vld [vmem:[#allocation2 + $0x3f] sm:$0xff]  ;;  %v2619_v59 = vsel %vm4946_vm12, %v2587_v22, %v2555_v52 }
 0x46d   : > { %2429 = vst [vmem:[#allocation2 + $0x48] sm:$0xff] %v7528_v62  ;;  %v2754_v56 = vsel %vm4988_vm2, %v2462_v55, %v2720_v5  ;;  %v2589_v26 = vld [vmem:[#allocation2 + $0x39] sm:$0xff]  ;;  %v2653_v37 = vsel %vm10917_vm6, %v2461_v39, %v2619_v59  ;;  %vm10919_vm6 = vmand %vm4988_vm2, %vm10916_vm1 }
 0x46e   : > { %v2788_v54 = vsel %vm5038_vm3, %v7496_v35, %v2754_v56  ;;  %v2821_v45 = vsel %vm5051_vm0, %v2589_v26, %v2787_v49  ;;  %v2687_v31 = vsel %vm4979_vm10, %v7467_v8, %v2653_v37  ;;  %vm10920_vm1 = vmand %vm5051_vm0, %vm10913_vm7 }
 0x46f   : > { %v2721_v24 = vsel %vm5002_vm14, %v2589_v26, %v2687_v31  ;;  %v10933_v31 = vld [vmem:[#allocation11_spill] sm:$0xff] }
 0x471   : > { %2378 = vmatmul.f32.gmra.mxu2 %v2267_v42 }
 0x474   : > { %v7559_v21 = vpop.f32.mrf.mxu2  ;;  %v2590_v38 = vld [vmem:[#allocation2 + $0x41] sm:$0xff] }
 0x475   : > { %2430 = vst [vmem:[#allocation2 + $0x50] sm:$0xff] %v7559_v21  ;;  %v2822_v20 = vsel %vm10908_vm4, %v2590_v38, %v2788_v54  ;;  %vm10914_vm4 = vmand %vm4946_vm12, %vm10913_vm7  ;;  %v2463_v63 = vld [vmem:[#allocation2 + $0x47] sm:$0xff] }
 0x476   : > { %v2852_v30 = vpack.c.bf16 %v2822_v20, %v2821_v45  ;;  %v2620_v11 = vsel %vm10914_vm4, %v2588_v2, %v2556_v28  ;;  %vm10918_vm4 = vmand %vm5002_vm14, %vm10913_vm7  ;;  %v2755_v13 = vsel %vm10919_vm6, %v2463_v63, %v2721_v24  ;;  %vm10923_vm6 = vcmp.lt.s32.totalorder %v4903_v33, 8 }
 0x477   : > { %v2654_v40 = vsel %vm4954_vm13, %v2462_v55, %v2620_v11  ;;  %v2789_v57 = vsel %vm5038_vm3, %v7528_v62, %v2755_v13  ;;  %v2494_v5 = vsel %vm10923_vm6, %v2462_v55, 0.0  ;;  %v2272_v24 = vmax.f32 %v7380_v29, 0.0  ;;  %v10939_v29 = vld [vmem:[#allocation10_spill] sm:$0xff] }
 0x478   : > { %2928 = vmatmul.bf16.gmra.mxu3 %v2852_v30  ;;  %v2688_v2 = vsel %vm4979_vm10, %v7496_v35, %v2654_v40  ;;  %v2558_v49 = vsel %vm4930_vm8, %v7496_v35, %v2494_v5 }
 0x479   : > { %2381 = vmatmul.f32.gmra.mxu2 %v2268_v32  ;;  %v2722_v16 = vsel %vm10918_vm4, %v2590_v38, %v2688_v2  ;;  %vm10922_vm4 = vnez %v10921_v53 }
 0x47a   : > { %v2493_v34 = vsel %vm10922_vm4, %v2461_v39, 0.0  ;;  %v10924_v39 = vld [vmem:[#allocation9_spill] sm:$0xff]  ;;  %vm10928_vm4 = vnez %v10927_v27 }
 0x47b   : > { %v2557_v56 = vsel %vm4930_vm8, %v7467_v8, %v2493_v34  ;;  %vm10925_vm7 = vnez %v10924_v39  ;;  %vm10929_vm6 = vmand %vm4954_vm13, %vm10928_vm4 }
 0x47c   : > { %v7600_v17 = vpop.f32.mrf.mxu2  ;;  %v2464_v22 = vld [vmem:[#allocation2 + $0x4f] sm:$0xff]  ;;  %v2621_v54 = vsel %vm4946_vm12, %v2589_v26, %v2557_v56 }
 0x47d   : > { %2431 = vst [vmem:[#allocation2 + $0x58] sm:$0xff] %v7600_v17  ;;  %v2756_v14 = vsel %vm4988_vm2, %v2464_v22, %v2722_v16  ;;  %v2591_v19 = vld [vmem:[#allocation2 + $0x49] sm:$0xff]  ;;  %v2655_v45 = vsel %vm10929_vm6, %v2463_v63, %v2621_v54  ;;  %vm10931_vm6 = vmand %vm4988_vm2, %vm10928_vm4 }
 0x47e   : > { %v2790_v4 = vsel %vm5038_vm3, %v7559_v21, %v2756_v14  ;;  %v2823_v47 = vsel %vm5051_vm0, %v2591_v19, %v2789_v57  ;;  %v2689_v30 = vsel %vm4979_vm10, %v7528_v62, %v2655_v45  ;;  %vm10932_vm4 = vmand %vm5051_vm0, %vm10925_vm7  ;;  %v10945_v45 = vld [vmem:[#allocation14_spill] sm:$0xff] }
 0x47f   : > { %v2723_v36 = vsel %vm5002_vm14, %v2591_v19, %v2689_v30 }
 0x481   : > { %2384 = vmatmul.f32.gmra.mxu2 %v2269_v18 }
 0x484   : > { %v7624_v46 = vpop.f32.mrf.mxu2  ;;  %v2592_v25 = vld [vmem:[#allocation2 + $0x51] sm:$0xff] }
 0x485   : > { %2432 = vst [vmem:[#allocation2 + $0x60] sm:$0xff] %v7624_v46  ;;  %v2824_v42 = vsel %vm10920_vm1, %v2592_v25, %v2790_v4  ;;  %vm10926_vm1 = vmand %vm4946_vm12, %vm10925_vm7  ;;  %v2465_v35 = vld [vmem:[#allocation2 + $0x57] sm:$0xff] }
 0x486   : > { %v2853_v23 = vpack.c.bf16 %v2824_v42, %v2823_v47  ;;  %v2622_v55 = vsel %vm10926_vm1, %v2590_v38, %v2558_v49  ;;  %vm10930_vm1 = vmand %vm5002_vm14, %vm10925_vm7  ;;  %v2757_v32 = vsel %vm10931_vm6, %v2465_v35, %v2723_v36  ;;  %vm10935_vm6 = vcmp.lt.s32.totalorder %v4903_v33, 8 }
 0x487   : > { %v2656_v8 = vsel %vm4954_vm13, %v2464_v22, %v2622_v55  ;;  %v2791_v41 = vsel %vm5038_vm3, %v7600_v17, %v2757_v32  ;;  %v2496_v18 = vsel %vm10935_vm6, %v2464_v22, 0.0  ;;  %v2273_v42 = vmax.f32 %v7384_v7, 0.0 }
 0x488   : > { %2933 = vmatmul.bf16.gmra.mxu3 %v2853_v23  ;;  %v2690_v38 = vsel %vm4979_vm10, %v7559_v21, %v2656_v8  ;;  %v2560_v13 = vsel %vm4930_vm8, %v7559_v21, %v2496_v18 }
 0x489   : > { %2387 = vmatmul.f32.gmra.mxu2 %v2270_v61  ;;  %v2724_v6 = vsel %vm10930_vm1, %v2592_v25, %v2690_v38  ;;  %vm10934_vm1 = vnez %v10933_v31  ;;  %v2274_v38 = vmax.f32 %v7388_v9, 0.0  ;;  %v10951_v9 = vld [vmem:[#allocation13_spill] sm:$0xff] }
 0x48a   : > { %v2495_v2 = vsel %vm10934_vm1, %v2463_v63, 0.0  ;;  %v10936_v63 = vld [vmem:[#allocation12_spill] sm:$0xff]  ;;  %vm10940_vm1 = vnez %v10939_v29 }
 0x48b   : > { %v2559_v16 = vsel %vm4930_vm8, %v7528_v62, %v2495_v2  ;;  %vm10937_vm7 = vnez %v10936_v63  ;;  %vm10941_vm6 = vmand %vm4954_vm13, %vm10940_vm1 }
 0x48c   : > { %v7665_v20 = vpop.f32.mrf.mxu2  ;;  %v2466_v26 = vld [vmem:[#allocation2 + $0x5f] sm:$0xff]  ;;  %v2623_v14 = vsel %vm4946_vm12, %v2591_v19, %v2559_v16 }
 0x48d   : > { %2433 = vst [vmem:[#allocation2 + $0x68] sm:$0xff] %v7665_v20  ;;  %v2758_v52 = vsel %vm4988_vm2, %v2466_v26, %v2724_v6  ;;  %v2593_v44 = vld [vmem:[#allocation2 + $0x59] sm:$0xff]  ;;  %v2657_v57 = vsel %vm10941_vm6, %v2465_v35, %v2623_v14  ;;  %vm10943_vm6 = vmand %vm4988_vm2, %vm10940_vm1 }
 0x48e   : > { %v2792_v11 = vsel %vm5038_vm3, %v7624_v46, %v2758_v52  ;;  %v2825_v0 = vsel %vm5051_vm0, %v2593_v44, %v2791_v41  ;;  %v2691_v47 = vsel %vm4979_vm10, %v7600_v17, %v2657_v57  ;;  %vm10944_vm1 = vmand %vm5051_vm0, %vm10937_vm7 }
 0x48f   : > { %v2725_v23 = vsel %vm5002_vm14, %v2593_v44, %v2691_v47 }
 0x491   : > { %2390 = vmatmul.f32.gmra.mxu2 %v2271_v3 }
 0x494   : > { %v7689_v28 = vpop.f32.mrf.mxu2  ;;  %v2594_v59 = vld [vmem:[#allocation2 + $0x61] sm:$0xff] }
 0x495   : > { %2434 = vst [vmem:[#allocation2 + $0x70] sm:$0xff] %v7689_v28  ;;  %v2826_v37 = vsel %vm10932_vm4, %v2594_v59, %v2792_v11  ;;  %vm10938_vm4 = vmand %vm4946_vm12, %vm10937_vm7  ;;  %v2467_v21 = vld [vmem:[#allocation2 + $0x67] sm:$0xff]  ;;  %v2275_v11 = vmax.f32 %v7392_v50, 0.0 }
 0x496   : > { %v2854_v40 = vpack.c.bf16 %v2826_v37, %v2825_v0  ;;  %v2624_v22 = vsel %vm10938_vm4, %v2592_v25, %v2560_v13  ;;  %vm10942_vm4 = vmand %vm5002_vm14, %vm10937_vm7  ;;  %v2759_v34 = vsel %vm10943_vm6, %v2467_v21, %v2725_v23  ;;  %vm10947_vm6 = vcmp.lt.s32.totalorder %v4903_v33, 8 }
 0x497   : > { %v2658_v62 = vsel %vm4954_vm13, %v2466_v26, %v2624_v22  ;;  %v2793_v49 = vsel %vm5038_vm3, %v7665_v20, %v2759_v34  ;;  %v2498_v30 = vsel %vm10947_vm6, %v2466_v26, 0.0  ;;  %v10957_v22 = vld [vmem:[#allocation17_spill] sm:$0xff] }
 0x498   : > { %2938 = vmatmul.bf16.gmra.mxu3 %v2854_v40  ;;  %v2692_v25 = vsel %vm4979_vm10, %v7624_v46, %v2658_v62  ;;  %v2562_v36 = vsel %vm4930_vm8, %v7624_v46, %v2498_v30 }
 0x499   : > { %2393 = vmatmul.f32.gmra.mxu2 %v2272_v24  ;;  %v2726_v53 = vsel %vm10942_vm4, %v2594_v59, %v2692_v25  ;;  %vm10946_vm4 = vnez %v10945_v45 }
 0x49a   : > { %v2497_v8 = vsel %vm10946_vm4, %v2465_v35, 0.0  ;;  %v10948_v35 = vld [vmem:[#allocation15_spill] sm:$0xff]  ;;  %vm10952_vm4 = vnez %v10951_v9 }
 0x49b   : > { %v2561_v3 = vsel %vm4930_vm8, %v7600_v17, %v2497_v8  ;;  %vm10949_vm7 = vnez %v10948_v35  ;;  %vm10953_vm6 = vmand %vm4954_vm13, %vm10952_vm4 }
 0x49c   : > { %v7730_v4 = vpop.f32.mrf.mxu2  ;;  %v2468_v19 = vld [vmem:[#allocation2 + $0x6f] sm:$0xff]  ;;  %v2625_v6 = vsel %vm4946_vm12, %v2593_v44, %v2561_v3 }
 0x49d   : > { %2435 = vst [vmem:[#allocation2 + $0x78] sm:$0xff] %v7730_v4  ;;  %v2760_v5 = vsel %vm4988_vm2, %v2468_v19, %v2726_v53  ;;  %v2595_v7 = vld [vmem:[#allocation2 + $0x69] sm:$0xff]  ;;  %v2659_v32 = vsel %vm10953_vm6, %v2467_v21, %v2625_v6  ;;  %vm10955_vm6 = vmand %vm4988_vm2, %vm10952_vm4  ;;  %v10969_v6 = vld [vmem:[#allocation20_spill] sm:$0xff] }
 0x49e   : > { %v2794_v54 = vsel %vm5038_vm3, %v7689_v28, %v2760_v5  ;;  %v2827_v39 = vsel %vm5051_vm0, %v2595_v7, %v2793_v49  ;;  %v2693_v41 = vsel %vm4979_vm10, %v7665_v20, %v2659_v32  ;;  %vm10956_vm4 = vmand %vm5051_vm0, %vm10949_vm7 }
 0x49f   : > { %v2727_v0 = vsel %vm5002_vm14, %v2595_v7, %v2693_v41  ;;  %v10972_v41 = vld [vmem:[#allocation21_spill] sm:$0xff] }
 0x4a1   : > { %2396 = vmatmul.f32.gmra.mxu2 %v2273_v42  ;;  %v10960_v42 = vld [vmem:[#allocation18_spill] sm:$0xff] }
 0x4a4   : > { %v7754_v61 = vpop.f32.mrf.mxu2  ;;  %v2596_v56 = vld [vmem:[#allocation2 + $0x71] sm:$0xff] }
 0x4a5   : > { %2436 = vst [vmem:[#allocation2 + $0x80] sm:$0xff] %v7754_v61  ;;  %v2828_v55 = vsel %vm10944_vm1, %v2596_v56, %v2794_v54  ;;  %vm10950_vm1 = vmand %vm4946_vm12, %vm10949_vm7  ;;  %v2469_v46 = vld [vmem:[#allocation2 + $0x77] sm:$0xff] }
 0x4a6   : > { %v2855_v27 = vpack.c.bf16 %v2828_v55, %v2827_v39  ;;  %v2626_v26 = vsel %vm10950_vm1, %v2594_v59, %v2562_v36  ;;  %vm10954_vm1 = vmand %vm5002_vm14, %vm10949_vm7  ;;  %v2761_v40 = vsel %vm10955_vm6, %v2469_v46, %v2727_v0  ;;  %vm10959_vm6 = vcmp.lt.s32.totalorder %v4903_v33, 8 }
 0x4a7   : > { %v2660_v17 = vsel %vm4954_vm13, %v2468_v19, %v2626_v26  ;;  %v2795_v24 = vsel %vm5038_vm3, %v7730_v4, %v2761_v40  ;;  %v2500_v57 = vsel %vm10959_vm6, %v2468_v19, 0.0  ;;  %vm10961_vm7 = vnez %v10960_v42  ;;  %v10963_v19 = vld [vmem:[#allocation16_spill] sm:$0xff] }
 0x4a8   : > { %2943 = vmatmul.bf16.gmra.mxu3 %v2855_v27  ;;  %v2694_v59 = vsel %vm4979_vm10, %v7689_v28, %v2660_v17  ;;  %v2564_v47 = vsel %vm4930_vm8, %v7689_v28, %v2500_v57 }
 0x4a9   : > { %2399 = vmatmul.f32.gmra.mxu2 %v2274_v38  ;;  %v2728_v37 = vsel %vm10954_vm1, %v2596_v56, %v2694_v59  ;;  %vm10958_vm1 = vnez %v10957_v22 }
 0x4aa   : > { %v2499_v29 = vsel %vm10958_vm1, %v2467_v21, 0.0  ;;  %vm10964_vm1 = vnez %v10963_v19 }
 0x4ab   : > { %v2563_v62 = vsel %vm4930_vm8, %v7665_v20, %v2499_v29  ;;  %vm10965_vm6 = vmand %vm4954_vm13, %vm10964_vm1 }
 0x4ac   : > { %v7795_v52 = vpop.f32.mrf.mxu2  ;;  %v2470_v44 = vld [vmem:[#allocation2 + $0x7f] sm:$0xff]  ;;  %v2627_v25 = vsel %vm4946_vm12, %v2595_v7, %v2563_v62 }
 0x4ad   : > { %2437 = vst [vmem:[#allocation2 + $0x88] sm:$0xff] %v7795_v52  ;;  %v2762_v31 = vsel %vm4988_vm2, %v2470_v44, %v2728_v37  ;;  %v2597_v50 = vld [vmem:[#allocation2 + $0x79] sm:$0xff]  ;;  %v2661_v23 = vsel %vm10965_vm6, %v2469_v46, %v2627_v25  ;;  %vm10967_vm6 = vmand %vm4988_vm2, %vm10964_vm1  ;;  %v10981_v25 = vld [vmem:[#allocation23_spill] sm:$0xff] }
 0x4ae   : > { %v2796_v16 = vsel %vm5038_vm3, %v7754_v61, %v2762_v31  ;;  %v2829_v13 = vsel %vm5051_vm0, %v2597_v50, %v2795_v24  ;;  %v2695_v5 = vsel %vm4979_vm10, %v7730_v4, %v2661_v23  ;;  %vm10968_vm1 = vmand %vm5051_vm0, %vm10961_vm7  ;;  %v3019_v62 = vld [vmem:[%s10449_s2 + $0x78] sm:$0xff] }
 0x4af   : > { %3058 = vmatpush.msrb.mxu0 %v3019_v62  ;;  %3181 = vmatpush.msrb.mxu1 %v3019_v62 }
 0x4b1   : > { %2402 = vmatmul.f32.gmra.mxu2 %v2275_v11 }
 0x4b4   : > { %v7819_v2 = vpop.f32.mrf.mxu2  ;;  %v2598_v18 = vld [vmem:[#allocation2 + $0x81] sm:$0xff] }
 0x4b5   : > { %2438 = vst [vmem:[#allocation2 + $0x90] sm:$0xff] %v7819_v2  ;;  %v2830_v14 = vsel %vm10956_vm4, %v2598_v18, %v2796_v16  ;;  %vm10962_vm4 = vmand %vm4946_vm12, %vm10961_vm7  ;;  %v2471_v28 = vld [vmem:[#allocation2 + $0x87] sm:$0xff] }
 0x4b6   : > { %v2856_v63 = vpack.c.bf16 %v2830_v14, %v2829_v13  ;;  %v2628_v21 = vsel %vm10962_vm4, %v2596_v56, %v2564_v47  ;;  %v2729_v56 = vsel %vm5002_vm14, %v2597_v50, %v2695_v5  ;;  %vm10966_vm4 = vmand %vm5002_vm14, %vm10961_vm7  ;;  %vm10973_vm7 = vnez %v10972_v41  ;;  %v10984_v5 = vld [vmem:[#allocation24_spill] sm:$0xff]  ;;  %v10993_v41 = vld [vmem:[#allocation26_spill] sm:$0xff] }
 0x4b7   : > { %v2662_v20 = vsel %vm4954_vm13, %v2470_v44, %v2628_v21  ;;  %v2763_v54 = vsel %vm10967_vm6, %v2471_v28, %v2729_v56  ;;  %vm10971_vm6 = vcmp.lt.s32.totalorder %v4903_v33, 8 }
 0x4b8   : > { %2948 = vmatmul.bf16.gmra.mxu3 %v2856_v63  ;;  %v2696_v7 = vsel %vm4979_vm10, %v7754_v61, %v2662_v20  ;;  %v2797_v8 = vsel %vm5038_vm3, %v7795_v52, %v2763_v54  ;;  %v2502_v26 = vsel %vm10971_vm6, %v2470_v44, 0.0  ;;  %v10975_v44 = vld [vmem:[#allocation19_spill] sm:$0xff] }
 0x4b9   : > { %v2730_v49 = vsel %vm10966_vm4, %v2598_v18, %v2696_v7  ;;  %vm10970_vm4 = vnez %v10969_v6  ;;  %v2566_v32 = vsel %vm4930_vm8, %v7754_v61, %v2502_v26 }
 0x4ba   : > { %v2501_v35 = vsel %vm10970_vm4, %v2469_v46, 0.0  ;;  %vm10976_vm4 = vnez %v10975_v44 }
 0x4bb   : > { %v2565_v9 = vsel %vm4930_vm8, %v7730_v4, %v2501_v35  ;;  %vm10977_vm6 = vmand %vm4954_vm13, %vm10976_vm4 }
 0x4bc   : > { %v7859_v53 = vpop.f32.mrf.mxu2  ;;  %v2472_v34 = vld [vmem:[#allocation2 + $0x8f] sm:$0xff]  ;;  %v2629_v17 = vsel %vm4946_vm12, %v2597_v50, %v2565_v9 }
 0x4bd   : > { %2439 = vst [vmem:[#allocation2 + $0x98] sm:$0xff] %v7859_v53  ;;  %v2764_v39 = vsel %vm4988_vm2, %v2472_v34, %v2730_v49  ;;  %v2599_v55 = vld [vmem:[#allocation2 + $0x89] sm:$0xff]  ;;  %v2663_v59 = vsel %vm10977_vm6, %v2471_v28, %v2629_v17  ;;  %vm10979_vm6 = vmand %vm4988_vm2, %vm10976_vm4 }
 0x4be   : > { %v2798_v30 = vsel %vm5038_vm3, %v7819_v2, %v2764_v39  ;;  %v2831_v38 = vsel %vm5051_vm0, %v2599_v55, %v2797_v8  ;;  %v2697_v37 = vsel %vm4979_vm10, %v7795_v52, %v2663_v59  ;;  %vm10980_vm4 = vmand %vm5051_vm0, %vm10973_vm7 }
 0x4bf   : > { %v2731_v31 = vsel %vm5002_vm14, %v2599_v55, %v2697_v37 }
 0x4c4   : > { %v7882_v27 = vpop.f32.mrf.mxu2  ;;  %v2600_v45 = vld [vmem:[#allocation2 + $0x91] sm:$0xff] }
 0x4c5   : > { %2440 = vst [vmem:[#allocation2 + $0xa0] sm:$0xff] %v7882_v27  ;;  %v2832_v3 = vsel %vm10968_vm1, %v2600_v45, %v2798_v30  ;;  %vm10974_vm1 = vmand %vm4946_vm12, %vm10973_vm7  ;;  %v2473_v61 = vld [vmem:[#allocation2 + $0x97] sm:$0xff] }
 0x4c6   : > { %v2857_v36 = vpack.c.bf16 %v2832_v3, %v2831_v38  ;;  %v2630_v46 = vsel %vm10974_vm1, %v2598_v18, %v2566_v32  ;;  %vm10978_vm1 = vmand %vm5002_vm14, %vm10973_vm7  ;;  %v2765_v18 = vsel %vm10979_vm6, %v2473_v61, %v2731_v31  ;;  %vm10983_vm6 = vcmp.lt.s32.totalorder %v4903_v33, 8  ;;  %v3018_v32 = vld [vmem:[%s10449_s2 + $0x70] sm:$0xff] }
 0x4c7   : > { %v2664_v4 = vsel %vm4954_vm13, %v2472_v34, %v2630_v46  ;;  %v2799_v63 = vsel %vm5038_vm3, %v7859_v53, %v2765_v18  ;;  %v2504_v21 = vsel %vm10983_vm6, %v2472_v34, 0.0  ;;  %vm10985_vm7 = vnez %v10984_v5  ;;  %v10987_v34 = vld [vmem:[#allocation22_spill] sm:$0xff]  ;;  %3059 = vmatpush.msrb.mxu0 %v3018_v32  ;;  %3182 = vmatpush.msrb.mxu1 %v3018_v32 }
 0x4c8   : > { %2953 = vmatmul.bf16.gmra.mxu3 %v2857_v36  ;;  %v2698_v40 = vsel %vm4979_vm10, %v7819_v2, %v2664_v4  ;;  %v2568_v23 = vsel %vm4930_vm8, %v7819_v2, %v2504_v21  ;;  %v3017_v5 = vld [vmem:[%s10449_s2 + $0x68] sm:$0xff] }
 0x4c9   : > { %v2732_v50 = vsel %vm10978_vm1, %v2600_v45, %v2698_v40  ;;  %vm10982_vm1 = vnez %v10981_v25  ;;  %v10996_v40 = vld [vmem:[#allocation27_spill] sm:$0xff]  ;;  %3060 = vmatpush.msrb.mxu0 %v3017_v5  ;;  %3183 = vmatpush.msrb.mxu1 %v3017_v5 }
 0x4ca   : > { %v2503_v42 = vsel %vm10982_vm1, %v2471_v28, 0.0  ;;  %vm10988_vm1 = vnez %v10987_v34  ;;  %v11005_v34 = vld [vmem:[#allocation29_spill] sm:$0xff] }
 0x4cb   : > { %v2567_v19 = vsel %vm4930_vm8, %v7795_v52, %v2503_v42  ;;  %vm10989_vm6 = vmand %vm4954_vm13, %vm10988_vm1 }
 0x4cc   : > { %v7922_v11 = vpop.f32.mrf.mxu2  ;;  %v2474_v0 = vld [vmem:[#allocation2 + $0x9f] sm:$0xff]  ;;  %v2631_v20 = vsel %vm4946_vm12, %v2599_v55, %v2567_v19 }
 0x4cd   : > { %2441 = vst [vmem:[#allocation2 + $0xa8] sm:$0xff] %v7922_v11  ;;  %v2766_v24 = vsel %vm4988_vm2, %v2474_v0, %v2732_v50  ;;  %v2601_v16 = vld [vmem:[#allocation2 + $0x99] sm:$0xff]  ;;  %v2665_v7 = vsel %vm10989_vm6, %v2473_v61, %v2631_v20  ;;  %vm10991_vm6 = vmand %vm4988_vm2, %vm10988_vm1 }
 0x4ce   : > { %v2800_v22 = vsel %vm5038_vm3, %v7882_v27, %v2766_v24  ;;  %v2833_v29 = vsel %vm5051_vm0, %v2601_v16, %v2799_v63  ;;  %v2699_v54 = vsel %vm4979_vm10, %v7859_v53, %v2665_v7  ;;  %vm10992_vm1 = vmand %vm5051_vm0, %vm10985_vm7 }
 0x4cf   : > { %v2733_v55 = vsel %vm5002_vm14, %v2601_v16, %v2699_v54 }
 0x4d4   : > { %v7945_v13 = vpop.f32.mrf.mxu2  ;;  %v2602_v14 = vld [vmem:[#allocation2 + $0xa1] sm:$0xff] }
 0x4d5   : > { %2442 = vst [vmem:[#allocation2 + $0xb0] sm:$0xff] %v7945_v13  ;;  %v2834_v57 = vsel %vm10980_vm4, %v2602_v14, %v2800_v22  ;;  %vm10986_vm4 = vmand %vm4946_vm12, %vm10985_vm7  ;;  %v2475_v2 = vld [vmem:[#allocation2 + $0xa7] sm:$0xff] }
 0x4d6   : > { %v2858_v47 = vpack.c.bf16 %v2834_v57, %v2833_v29  ;;  %v2632_v28 = vsel %vm10986_vm4, %v2600_v45, %v2568_v23  ;;  %vm10990_vm4 = vmand %vm5002_vm14, %vm10985_vm7  ;;  %v2767_v8 = vsel %vm10991_vm6, %v2475_v2, %v2733_v55  ;;  %vm10995_vm6 = vcmp.lt.s32.totalorder %v4903_v33, 8 }
 0x4d7   : > { %v2666_v52 = vsel %vm4954_vm13, %v2474_v0, %v2632_v28  ;;  %v2801_v6 = vsel %vm5038_vm3, %v7922_v11, %v2767_v8  ;;  %v2506_v44 = vsel %vm10995_vm6, %v2474_v0, 0.0  ;;  %vm10997_vm7 = vnez %v10996_v40  ;;  %v10999_v0 = vld [vmem:[#allocation25_spill] sm:$0xff] }
 0x4d8   : > { %2958 = vmatmul.bf16.gmra.mxu3 %v2858_v47  ;;  %v2700_v39 = vsel %vm4979_vm10, %v7882_v27, %v2666_v52  ;;  %v2570_v4 = vsel %vm4930_vm8, %v7882_v27, %v2506_v44  ;;  %v3016_v40 = vld [vmem:[%s10449_s2 + $0x60] sm:$0xff] }
 0x4d9   : > { %v2734_v45 = vsel %vm10990_vm4, %v2602_v14, %v2700_v39  ;;  %vm10994_vm4 = vnez %v10993_v41  ;;  %3061 = vmatpush.msrb.mxu0 %v3016_v40  ;;  %3184 = vmatpush.msrb.mxu1 %v3016_v40 }
 0x4da   : > { %v2505_v46 = vsel %vm10994_vm4, %v2473_v61, 0.0  ;;  %vm11000_vm4 = vnez %v10999_v0 }
 0x4db   : > { %v2569_v59 = vsel %vm4930_vm8, %v7859_v53, %v2505_v46  ;;  %vm11001_vm6 = vmand %vm4954_vm13, %vm11000_vm4 }
 0x4dc   : > { %v7988_v56 = vpop.f32.mrf.mxu2  ;;  %v2476_v49 = vld [vmem:[#allocation2 + $0xaf] sm:$0xff]  ;;  %v2633_v37 = vsel %vm4946_vm12, %v2601_v16, %v2569_v59 }
 0x4dd   : > { %2443 = vst [vmem:[#allocation2 + $0xb8] sm:$0xff] %v7988_v56  ;;  %v2768_v30 = vsel %vm4988_vm2, %v2476_v49, %v2734_v45  ;;  %v2603_v38 = vld [vmem:[#allocation2 + $0xa9] sm:$0xff]  ;;  %v2667_v53 = vsel %vm11001_vm6, %v2475_v2, %v2633_v37  ;;  %vm11003_vm6 = vmand %vm4988_vm2, %vm11000_vm4 }
 0x4de   : > { %v2802_v35 = vsel %vm5038_vm3, %v7945_v13, %v2768_v30  ;;  %v2835_v26 = vsel %vm5051_vm0, %v2603_v38, %v2801_v6  ;;  %v2701_v16 = vsel %vm4979_vm10, %v7922_v11, %v2667_v53  ;;  %vm11004_vm4 = vmand %vm5051_vm0, %vm10997_vm7  ;;  %v11017_v53 = vld [vmem:[#allocation32_spill] sm:$0xff] }
 0x4df   : > { %v2735_v63 = vsel %vm5002_vm14, %v2603_v38, %v2701_v16 }
 0x4e4   : > { %v8011_v3 = vpop.f32.mrf.mxu2  ;;  %v2604_v36 = vld [vmem:[#allocation2 + $0xb1] sm:$0xff] }
 0x4e5   : > { %2444 = vst [vmem:[#allocation2 + $0xc0] sm:$0xff] %v8011_v3  ;;  %v2836_v9 = vsel %vm10992_vm1, %v2604_v36, %v2802_v35  ;;  %vm10998_vm1 = vmand %vm4946_vm12, %vm10997_vm7  ;;  %v2477_v18 = vld [vmem:[#allocation2 + $0xb7] sm:$0xff] }
 0x4e6   : > { %v2859_v17 = vpack.c.bf16 %v2836_v9, %v2835_v26  ;;  %v2634_v61 = vsel %vm10998_vm1, %v2602_v14, %v2570_v4  ;;  %vm11002_vm1 = vmand %vm5002_vm14, %vm10997_vm7  ;;  %v2769_v29 = vsel %vm11003_vm6, %v2477_v18, %v2735_v63  ;;  %vm11007_vm6 = vcmp.lt.s32.totalorder %v4903_v33, 8 }
 0x4e7   : > { %v2668_v27 = vsel %vm4954_vm13, %v2476_v49, %v2634_v61  ;;  %v2803_v21 = vsel %vm5038_vm3, %v7988_v56, %v2769_v29  ;;  %v2508_v52 = vsel %vm11007_vm6, %v2476_v49, 0.0 }
 0x4e8   : > { %2963 = vmatmul.bf16.gmra.mxu3 %v2859_v17  ;;  %v2702_v14 = vsel %vm4979_vm10, %v7945_v13, %v2668_v27  ;;  %v2572_v39 = vsel %vm4930_vm8, %v7945_v13, %v2508_v52 }
 0x4e9   : > { %v2736_v22 = vsel %vm11002_vm1, %v2604_v36, %v2702_v14  ;;  %vm11006_vm1 = vnez %v11005_v34 }
 0x4ea   : > { %v2507_v7 = vsel %vm11006_vm1, %v2475_v2, 0.0  ;;  %v11008_v2 = vld [vmem:[#allocation30_spill] sm:$0xff] }
 0x4eb   : > { %v8047_v31 = vpop.f32.mrf.mxu3  ;;  %v2571_v54 = vsel %vm4930_vm8, %v7922_v11, %v2507_v7  ;;  %vm11009_vm7 = vnez %v11008_v2  ;;  %v11011_v11 = vld [vmem:[#allocation28_spill] sm:$0xff] }
 0x4ec   : > { %v8056_v50 = vpop.f32.mrf.mxu2  ;;  %v2478_v24 = vld [vmem:[#allocation2 + $0xbf] sm:$0xff]  ;;  %v2635_v45 = vsel %vm4946_vm12, %v2603_v38, %v2571_v54  ;;  %vm11012_vm1 = vnez %v11011_v11 }
 0x4ed   : > { %2445 = vst [vmem:[#allocation2 + $0xc8] sm:$0xff] %v8056_v50  ;;  %v2770_v57 = vsel %vm4988_vm2, %v2478_v24, %v2736_v22  ;;  %v2605_v62 = vld [vmem:[#allocation2 + $0xb9] sm:$0xff]  ;;  %vm11013_vm6 = vmand %vm4954_vm13, %vm11012_vm1 }
 0x4ee   : > { %v2804_v19 = vsel %vm5038_vm3, %v8011_v3, %v2770_v57  ;;  %v2837_v23 = vsel %vm5051_vm0, %v2605_v62, %v2803_v21  ;;  %v2669_v30 = vsel %vm11013_vm6, %v2477_v18, %v2635_v45  ;;  %vm11015_vm6 = vmand %vm4988_vm2, %vm11012_vm1  ;;  %v11023_v21 = vld [vmem:[#allocation31_spill] sm:$0xff] }
 0x4ef   : > { %v2703_v35 = vsel %vm4979_vm10, %v7988_v56, %v2669_v30  ;;  %vm11016_vm1 = vmand %vm5051_vm0, %vm11009_vm7 }
 0x4f0   : > { %v2737_v26 = vsel %vm5002_vm14, %v2605_v62, %v2703_v35 }
 0x4f3   : > { %v8079_v47 = vpop.f32.mrf.mxu3 }
 0x4f4   : > { %v8081_v25 = vpop.f32.mrf.mxu2  ;;  %v2606_v42 = vld [vmem:[#allocation2 + $0xc1] sm:$0xff] }
 0x4f5   : > { %2446 = vst [vmem:[#allocation2 + $0xd0] sm:$0xff] %v8081_v25  ;;  %v2838_v20 = vsel %vm11004_vm4, %v2606_v42, %v2804_v19  ;;  %vm11010_vm4 = vmand %vm4946_vm12, %vm11009_vm7  ;;  %v2479_v38 = vld [vmem:[#allocation2 + $0xc7] sm:$0xff] }
 0x4f6   : > { %v2860_v28 = vpack.c.bf16 %v2838_v20, %v2837_v23  ;;  %v2636_v49 = vsel %vm11010_vm4, %v2604_v36, %v2572_v39  ;;  %vm11014_vm4 = vmand %vm5002_vm14, %vm11009_vm7  ;;  %v2771_v32 = vsel %vm11015_vm6, %v2479_v38, %v2737_v26  ;;  %vm11019_vm6 = vcmp.lt.s32.totalorder %v4903_v33, 8 }
 0x4f7   : > { %v2670_v13 = vsel %vm4954_vm13, %v2478_v24, %v2636_v49  ;;  %v2805_v4 = vsel %vm5038_vm3, %v8056_v50, %v2771_v32  ;;  %v2510_v16 = vsel %vm11019_vm6, %v2478_v24, 0.0 }
 0x4f8   : > { %2968 = vmatmul.bf16.gmra.mxu3 %v2860_v28  ;;  %v2704_v36 = vsel %vm4979_vm10, %v8011_v3, %v2670_v13  ;;  %v2574_v22 = vsel %vm4930_vm8, %v8011_v3, %v2510_v16  ;;  %v3015_v13 = vld [vmem:[%s10449_s2 + $0x58] sm:$0xff] }
 0x4f9   : > { %v2738_v9 = vsel %vm11014_vm4, %v2606_v42, %v2704_v36  ;;  %vm11018_vm4 = vnez %v11017_v53  ;;  %3062 = vmatpush.msrb.mxu0 %v3015_v13  ;;  %3185 = vmatpush.msrb.mxu1 %v3015_v13  ;;  %v11029_v36 = vld [vmem:[#allocation35_spill] sm:$0xff] }
 0x4fa   : > { %v2509_v27 = vsel %vm11018_vm4, %v2477_v18, 0.0  ;;  %v11020_v18 = vld [vmem:[#allocation33_spill] sm:$0xff]  ;;  %vm11024_vm4 = vnez %v11023_v21 }
 0x4fb   : > { %v8110_v55 = vpop.f32.mrf.mxu3  ;;  %v2573_v63 = vsel %vm4930_vm8, %v7988_v56, %v2509_v27  ;;  %vm11021_vm7 = vnez %v11020_v18  ;;  %vm11025_vm6 = vmand %vm4954_vm13, %vm11024_vm4 }
 0x4fc   : > { %v8119_v8 = vpop.f32.mrf.mxu2  ;;  %v2480_v6 = vld [vmem:[#allocation2 + $0xcf] sm:$0xff]  ;;  %v2637_v29 = vsel %vm4946_vm12, %v2605_v62, %v2573_v63 }
 0x4fd   : > { %2447 = vst [vmem:[#allocation2 + $0xd8] sm:$0xff] %v8119_v8  ;;  %v2772_v17 = vsel %vm4988_vm2, %v2480_v6, %v2738_v9  ;;  %v2607_v46 = vld [vmem:[#allocation2 + $0xc9] sm:$0xff]  ;;  %v2671_v56 = vsel %vm11025_vm6, %v2479_v38, %v2637_v29  ;;  %vm11027_vm6 = vmand %vm4988_vm2, %vm11024_vm4 }
 0x4fe   : > { %v2806_v37 = vsel %vm5038_vm3, %v8081_v25, %v2772_v17  ;;  %v2839_v61 = vsel %vm5051_vm0, %v2607_v46, %v2805_v4  ;;  %vm11028_vm4 = vmand %vm5051_vm0, %vm11021_vm7 }
 0x503   : > { %v8149_v41 = vpop.f32.mrf.mxu3 }
 0x504   : > { %v8151_v44 = vpop.f32.mrf.mxu2  ;;  %v2608_v59 = vld [vmem:[#allocation2 + $0xd1] sm:$0xff] }
 0x505   : > { %2448 = vst [vmem:[#allocation2 + $0xe0] sm:$0xff] %v8151_v44  ;;  %v2840_v0 = vsel %vm11016_vm1, %v2608_v59, %v2806_v37  ;;  %vm11022_vm1 = vmand %vm4946_vm12, %vm11021_vm7  ;;  %v2481_v62 = vld [vmem:[#allocation2 + $0xd7] sm:$0xff] }
 0x506   : > { %v2861_v14 = vpack.c.bf16 %v2840_v0, %v2839_v61  ;;  %v2638_v24 = vsel %vm11022_vm1, %v2606_v42, %v2574_v22  ;;  %v2705_v42 = vsel %vm4979_vm10, %v8056_v50, %v2671_v56  ;;  %vm11026_vm1 = vmand %vm5002_vm14, %vm11021_vm7  ;;  %v11032_v37 = vld [vmem:[#allocation36_spill] sm:$0xff] }
 0x507   : > { %v2672_v3 = vsel %vm4954_vm13, %v2480_v6, %v2638_v24  ;;  %v2739_v5 = vsel %vm5002_vm14, %v2607_v46, %v2705_v42  ;;  %vm11033_vm7 = vnez %v11032_v37 }
 0x508   : > { %2973 = vmatmul.bf16.gmra.mxu3 %v2861_v14  ;;  %v2706_v20 = vsel %vm4979_vm10, %v8081_v25, %v2672_v3  ;;  %v2773_v34 = vsel %vm11027_vm6, %v2481_v62, %v2739_v5  ;;  %vm11031_vm6 = vcmp.lt.s32.totalorder %v4903_v33, 8  ;;  %v3014_v3 = vld [vmem:[%s10449_s2 + $0x50] sm:$0xff] }
 0x509   : > { %v2740_v28 = vsel %vm11026_vm1, %v2608_v59, %v2706_v20  ;;  %v2807_v2 = vsel %vm5038_vm3, %v8119_v8, %v2773_v34  ;;  %vm11030_vm1 = vnez %v11029_v36  ;;  %v2512_v9 = vsel %vm11031_vm6, %v2480_v6, 0.0  ;;  %v11035_v6 = vld [vmem:[#allocation34_spill] sm:$0xff]  ;;  %3063 = vmatpush.msrb.mxu0 %v3014_v3  ;;  %3186 = vmatpush.msrb.mxu1 %v3014_v3 }
 0x50a   : > { %v2511_v26 = vsel %vm11030_vm1, %v2479_v38, 0.0  ;;  %v2576_v17 = vsel %vm4930_vm8, %v8081_v25, %v2512_v9  ;;  %vm11036_vm1 = vnez %v11035_v6  ;;  %v2818_v3 = vld [vmem:[#allocation2 + $0x121] sm:$0xff] }
 0x50b   : > { %v8187_v57 = vpop.f32.mrf.mxu3  ;;  %v2575_v32 = vsel %vm4930_vm8, %v8056_v50, %v2511_v26  ;;  %vm11037_vm6 = vmand %vm4954_vm13, %vm11036_vm1 }
 0x50c   : > { %v8196_v19 = vpop.f32.mrf.mxu2  ;;  %v2482_v23 = vld [vmem:[#allocation2 + $0xdf] sm:$0xff]  ;;  %v2639_v4 = vsel %vm4946_vm12, %v2607_v46, %v2575_v32 }
 0x50d   : > { %2449 = vst [vmem:[#allocation2 + $0xe8] sm:$0xff] %v8196_v19  ;;  %v2774_v7 = vsel %vm4988_vm2, %v2482_v23, %v2740_v28  ;;  %v2609_v52 = vld [vmem:[#allocation2 + $0xd9] sm:$0xff]  ;;  %v2673_v50 = vsel %vm11037_vm6, %v2481_v62, %v2639_v4  ;;  %vm11039_vm6 = vmand %vm4988_vm2, %vm11036_vm1  ;;  %v11041_v28 = vld [vmem:[#allocation38_spill] sm:$0xff] }
 0x50e   : > { %v2808_v49 = vsel %vm5038_vm3, %v8151_v44, %v2774_v7  ;;  %v2841_v11 = vsel %vm5051_vm0, %v2609_v52, %v2807_v2  ;;  %vm11040_vm1 = vmand %vm5051_vm0, %vm11033_vm7 }
 0x513   : > { %v8219_v54 = vpop.f32.mrf.mxu3 }
 0x514   : > { %v8221_v39 = vpop.f32.mrf.mxu2  ;;  %v2610_v45 = vld [vmem:[#allocation2 + $0xe1] sm:$0xff] }
 0x515   : > { %2450 = vst [vmem:[#allocation2 + $0xf0] sm:$0xff] %v8221_v39  ;;  %v2842_v30 = vsel %vm11028_vm4, %v2610_v45, %v2808_v49  ;;  %vm11034_vm4 = vmand %vm4946_vm12, %vm11033_vm7  ;;  %v2483_v46 = vld [vmem:[#allocation2 + $0xe7] sm:$0xff] }
 0x516   : > { %v2862_v35 = vpack.c.bf16 %v2842_v30, %v2841_v11  ;;  %v2640_v38 = vsel %vm11034_vm4, %v2608_v59, %v2576_v17  ;;  %v2707_v59 = vsel %vm4979_vm10, %v8119_v8, %v2673_v50  ;;  %vm11038_vm4 = vmand %vm5002_vm14, %vm11033_vm7  ;;  %v11044_v30 = vld [vmem:[#allocation39_spill] sm:$0xff] }
 0x517   : > { %v2674_v25 = vsel %vm4954_vm13, %v2482_v23, %v2640_v38  ;;  %v2741_v27 = vsel %vm5002_vm14, %v2609_v52, %v2707_v59  ;;  %vm11045_vm7 = vnez %v11044_v30 }
 0x518   : > { %2978 = vmatmul.bf16.gmra.mxu3 %v2862_v35  ;;  %v2708_v53 = vsel %vm4979_vm10, %v8151_v44, %v2674_v25  ;;  %v2775_v14 = vsel %vm11039_vm6, %v2483_v46, %v2741_v27  ;;  %vm11043_vm6 = vcmp.lt.s32.totalorder %v4903_v33, 8  ;;  %v3013_v27 = vld [vmem:[%s10449_s2 + $0x48] sm:$0xff] }
 0x519   : > { %v2742_v16 = vsel %vm11038_vm4, %v2610_v45, %v2708_v53  ;;  %v2809_v21 = vsel %vm5038_vm3, %v8196_v19, %v2775_v14  ;;  %vm11042_vm4 = vnez %v11041_v28  ;;  %v2514_v7 = vsel %vm11043_vm6, %v2482_v23, 0.0  ;;  %v11047_v23 = vld [vmem:[#allocation37_spill] sm:$0xff]  ;;  %3064 = vmatpush.msrb.mxu0 %v3013_v27  ;;  %3187 = vmatpush.msrb.mxu1 %v3013_v27 }
 0x51a   : > { %v2513_v34 = vsel %vm11042_vm4, %v2481_v62, 0.0  ;;  %v2578_v49 = vsel %vm4930_vm8, %v8151_v44, %v2514_v7  ;;  %vm11048_vm4 = vnez %v11047_v23 }
 0x51b   : > { %v8257_v40 = vpop.f32.mrf.mxu3  ;;  %v2577_v2 = vsel %vm4930_vm8, %v8119_v8, %v2513_v34  ;;  %vm11049_vm6 = vmand %vm4954_vm13, %vm11048_vm4 }
 0x51c   : > { %v8266_v61 = vpop.f32.mrf.mxu2  ;;  %v2484_v0 = vld [vmem:[#allocation2 + $0xef] sm:$0xff]  ;;  %v2641_v11 = vsel %vm4946_vm12, %v2609_v52, %v2577_v2 }
 0x51d   : > { %2451 = vst [vmem:[#allocation2 + $0xf8] sm:$0xff] %v8266_v61  ;;  %v2776_v63 = vsel %vm4988_vm2, %v2484_v0, %v2742_v16  ;;  %v2611_v22 = vld [vmem:[#allocation2 + $0xe9] sm:$0xff]  ;;  %v2675_v8 = vsel %vm11049_vm6, %v2483_v46, %v2641_v11  ;;  %vm11051_vm6 = vmand %vm4988_vm2, %vm11048_vm4  ;;  %v2516_v6 = vsel %vm11052_vm9, %v2484_v0, 0.0 }
 0x51e   : > { %v2810_v56 = vsel %vm5038_vm3, %v8221_v39, %v2776_v63  ;;  %v2843_v42 = vsel %vm5051_vm0, %v2611_v22, %v2809_v21  ;;  %vm11053_vm9 = vmand %vm5051_vm0, %vm11045_vm7  ;;  %v2580_v63 = vsel %vm4930_vm8, %v8221_v39, %v2516_v6  ;;  %v11054_v21 = vld [vmem:[#allocation42_spill] sm:$0xff] }
 0x51f   : > { %vm11055_vm4 = vnez %v11054_v21  ;;  %v4772_v21 = vld [vmem:[#allocation2] sm:$0xff] }
 0x523   : > { %v8289_v29 = vpop.f32.mrf.mxu3 }
 0x524   : > { %v8291_v18 = vpop.f32.mrf.mxu2  ;;  %v2612_v24 = vld [vmem:[#allocation2 + $0xf1] sm:$0xff] }
 0x525   : > { %2452 = vst [vmem:[#allocation2 + $0x100] sm:$0xff] %v8291_v18  ;;  %v2844_v20 = vsel %vm11040_vm1, %v2612_v24, %v2810_v56  ;;  %vm11046_vm1 = vmand %vm4946_vm12, %vm11045_vm7  ;;  %v2485_v52 = vld [vmem:[#allocation2 + $0xf7] sm:$0xff]  ;;  %v2515_v56 = vsel %vm11055_vm4, %v2483_v46, 0.0 }
 0x526   : > { %v2863_v5 = vpack.c.bf16 %v2844_v20, %v2843_v42  ;;  %v2642_v62 = vsel %vm11046_vm1, %v2610_v45, %v2578_v49  ;;  %v2709_v45 = vsel %vm4979_vm10, %v8196_v19, %v2675_v8  ;;  %vm11050_vm1 = vmand %vm5002_vm14, %vm11045_vm7 }
 0x527   : > { %v2676_v44 = vsel %vm4954_vm13, %v2484_v0, %v2642_v62  ;;  %v2743_v9 = vsel %vm5002_vm14, %v2611_v22, %v2709_v45  ;;  %vm11059_vm7 = vmand %vm4954_vm13, %vm6607_vm5 }
 0x528   : > { %2983 = vmatmul.bf16.gmra.mxu3 %v2863_v5  ;;  %v2710_v26 = vsel %vm4979_vm10, %v8221_v39, %v2676_v44  ;;  %v2777_v17 = vsel %vm11051_vm6, %v2485_v52, %v2743_v9  ;;  %v2579_v5 = vsel %vm4930_vm8, %v8196_v19, %v2515_v56  ;;  %vm11060_vm6 = vmand %vm5002_vm14, %vm6619_vm15  ;;  %v11064_v9 = vld [vmem:[#allocation44_spill] sm:$0xff] }
 0x529   : > { %v2744_v32 = vsel %vm11050_vm1, %v2612_v24, %v2710_v26  ;;  %v2811_v59 = vsel %vm5038_vm3, %v8266_v61, %v2777_v17  ;;  %vm11057_vm1 = vmand %vm4946_vm12, %vm6619_vm15  ;;  %v2643_v39 = vsel %vm4946_vm12, %v2611_v22, %v2579_v5  ;;  %v2517_v26 = vsel %vm6716_vm11, %v2485_v52, 0.0 }
 0x52a   : > { %v2644_v42 = vsel %vm11057_vm1, %v2612_v24, %v2580_v63  ;;  %v2677_v7 = vsel %vm11059_vm7, %v2485_v52, %v2643_v39  ;;  %vm11062_vm4 = vmand %vm4988_vm2, %vm6607_vm5  ;;  %vm11065_vm1 = vnez %v11064_v9 }
 0x52b   : > { %v8327_v13 = vpop.f32.mrf.mxu3  ;;  %v2711_v11 = vsel %vm4979_vm10, %v8266_v61, %v2677_v7  ;;  %vm11066_vm7 = vmand %vm4946_vm12, %vm11065_vm1 }
 0x52c   : > { %v8336_v35 = vpop.f32.mrf.mxu2  ;;  %v2486_v36 = vld [vmem:[#allocation2 + $0xff] sm:$0xff]  ;;  %vm11067_vm5 = vmand %vm5051_vm0, %vm6619_vm15 }
 0x52d   : > { %2453 = vst [vmem:[#allocation2 + $0x108] sm:$0xff] %v8336_v35  ;;  %v2778_v4 = vsel %vm4988_vm2, %v2486_v36, %v2744_v32  ;;  %v2613_v37 = vld [vmem:[#allocation2 + $0xf9] sm:$0xff]  ;;  %v2678_v20 = vsel %vm4954_vm13, %v2486_v36, %v2644_v42 }
 0x52e   : > { %v2812_v53 = vsel %vm5038_vm3, %v8291_v18, %v2778_v4  ;;  %v2845_v16 = vsel %vm5051_vm0, %v2613_v37, %v2811_v59  ;;  %v2712_v34 = vsel %vm4979_vm10, %v8291_v18, %v2678_v20  ;;  %v2745_v30 = vsel %vm5002_vm14, %v2613_v37, %v2711_v11  ;;  %v3011_v42 = vld [vmem:[%s10449_s2 + $0x38] sm:$0xff] }
 0x52f   : > { %v3007_v11 = vld [vmem:[%s10449_s2 + $0x18] sm:$0xff] }
 0x533   : > { %v8359_v38 = vpop.f32.mrf.mxu3 }
 0x534   : > { %v2403_v50 = vpop.f32.mrf.mxu2  ;;  %v2614_v25 = vld [vmem:[#allocation2 + $0x101] sm:$0xff] }
 0x535   : > { %2454 = vst [vmem:[#allocation2 + $0x110] sm:$0xff] %v2403_v50  ;;  %v2846_v0 = vsel %vm11053_vm9, %v2614_v25, %v2812_v53  ;;  %v2746_v19 = vsel %vm11060_vm6, %v2614_v25, %v2712_v34  ;;  %v2647_v2 = vld [vmem:[#allocation2 + $0x107] sm:$0xff]  ;;  %vm11061_vm9 = vcmp.lt.s32.totalorder %v4903_v33, 8  ;;  %vm11071_vm6 = vmand %vm5002_vm14, %vm11065_vm1 }
 0x536   : > { %v2864_v14 = vpack.c.bf16 %v2846_v0, %v2845_v16  ;;  %v2518_v49 = vsel %vm11061_vm9, %v2486_v36, 0.0  ;;  %v2779_v23 = vsel %vm11062_vm4, %v2647_v2, %v2745_v30  ;;  %v11068_v16 = vld [vmem:[#allocation43_spill] sm:$0xff] }
 0x537   : > { %v2582_v33 = vsel %vm4930_vm8, %v8291_v18, %v2518_v49  ;;  %v3012_v18 = vld [vmem:[%s10449_s2 + $0x40] sm:$0xff]  ;;  %v2813_v52 = vsel %vm5038_vm3, %v8336_v35, %v2779_v23  ;;  %vm11069_vm11 = vnez %v11068_v16  ;;  %v3006_v23 = vld [vmem:[%s10449_s2 + $0x10] sm:$0xff] }
 0x538   : > { %2988 = vmatmul.bf16.gmra.mxu3 %v2864_v14  ;;  %v2646_v32 = vsel %vm11066_vm7, %v2614_v25, %v2582_v33  ;;  %3065 = vmatpush.msrb.mxu0 %v3012_v18  ;;  %v2581_v25 = vsel %vm4930_vm8, %v8266_v61, %v2517_v26  ;;  %vm11070_vm15 = vmand %vm4954_vm13, %vm11069_vm11  ;;  %v3020_v33 = vadd.f32 %v8079_v47, %v8047_v31 }
 0x539   : > { %3188 = vmatpush.msrb.mxu1 %v3012_v18  ;;  %v2645_v53 = vsel %vm4946_vm12, %v2613_v37, %v2581_v25  ;;  %vm11072_vm8 = vmand %vm4988_vm2, %vm11069_vm11 }
 0x53a   : > { %v2679_v0 = vsel %vm11070_vm15, %v2647_v2, %v2645_v53  ;;  %vm11073_vm12 = vmand %vm5051_vm0, %vm11065_vm1  ;;  %3066 = vmatpush.msrb.mxu0 %v3011_v42 }
 0x53b   : > { %v8394_v28 = vpop.f32.mrf.mxu3  ;;  %v2713_v37 = vsel %vm4979_vm10, %v8336_v35, %v2679_v0  ;;  %v2817_v35 = vld [vmem:[#allocation2 + $0x119] sm:$0xff]  ;;  %3189 = vmatpush.msrb.mxu1 %v3011_v42 }
 0x53c   : > { %v2648_v46 = vld [vmem:[#allocation2 + $0x10f] sm:$0xff] }
 0x53d   : > { %v2780_v22 = vsel %vm4988_vm2, %v2648_v46, %v2746_v19  ;;  %v2715_v44 = vld [vmem:[#allocation2 + $0x109] sm:$0xff]  ;;  %v2716_v36 = vld [vmem:[#allocation2 + $0x111] sm:$0xff]  ;;  %v2680_v4 = vsel %vm4954_vm13, %v2648_v46, %v2646_v32 }
 0x53e   : > { %v2814_v62 = vsel %vm5038_vm3, %v2403_v50, %v2780_v22  ;;  %v2847_v6 = vsel %vm5051_vm0, %v2715_v44, %v2813_v52  ;;  %v2714_v27 = vsel %vm4979_vm10, %v2403_v50, %v2680_v4  ;;  %v2747_v51 = vsel %vm5002_vm14, %v2715_v44, %v2713_v37  ;;  %v2749_v50 = vld [vmem:[#allocation2 + $0x117] sm:$0xff]  ;;  %v3008_v22 = vld [vmem:[%s10449_s2 + $0x20] sm:$0xff]  ;;  %v3005_v4 = vld [vmem:[%s10449_s2 + $0x8] sm:$0xff] }
 0x53f   : > { %v2848_v17 = vsel %vm11067_vm5, %v2716_v36, %v2814_v62  ;;  %v2748_v43 = vsel %vm11071_vm6, %v2716_v36, %v2714_v27  ;;  %v2781_v63 = vsel %vm11072_vm8, %v2749_v50, %v2747_v51  ;;  %v3010_v46 = vld [vmem:[%s10449_s2 + $0x30] sm:$0xff]  ;;  %v3021_v44 = vadd.f32 %v3020_v33, %v8110_v55 }
 0x540   : > { %v2865_v59 = vpack.c.bf16 %v2848_v17, %v2847_v6  ;;  %v2782_v14 = vsel %vm4988_vm2, %v2750_v48, %v2748_v43  ;;  %v2815_v1 = vsel %vm5038_vm3, %v4772_v21, %v2781_v63  ;;  %3067 = vmatpush.msrb.mxu0 %v3010_v46  ;;  %3190 = vmatpush.msrb.mxu1 %v3010_v46 }
 0x541   : > { %v2816_v56 = vsel %vm5038_vm3, %v4772_v21, %v2782_v14  ;;  %v2849_v20 = vsel %vm5051_vm0, %v2817_v35, %v2815_v1  ;;  %v3022_v45 = vadd.f32 %v3021_v44, %v8149_v41  ;;  %vm722_vm0 = vcmask 1040384  }
 0x542   : > { %v2850_v60 = vsel %vm11073_vm12, %v2818_v3, %v2816_v56  ;;  %3068 = vmatpush.msrb.mxu0 %v3009_v15  ;;  %3191 = vmatpush.msrb.mxu1 %v3009_v15  ;;  %v3004_v3 = vld [vmem:[%s10449_s2] sm:$0xff] }
 0x543   : > { %v8430_v8 = vpop.f32.mrf.mxu3  ;;  %v2866_v5 = vpack.c.bf16 %v2850_v60, %v2849_v20  ;;  %v3023_v26 = vadd.f32 %v3022_v45, %v8187_v57 }
 0x544   : > { %3069 = vmatpush.msrb.mxu0 %v3008_v22  ;;  %3192 = vmatpush.msrb.mxu1 %v3008_v22 }
 0x545   : > { %v3024_v9 = vadd.f32 %v3023_v26, %v8219_v54 }
 0x546   : > { %3070 = vmatpush.msrb.mxu0 %v3007_v11  ;;  %3193 = vmatpush.msrb.mxu1 %v3007_v11 }
 0x547   : > { %v3025_v32 = vadd.f32 %v3024_v9, %v8257_v40 }
 0x548   : > { %2993 = vmatmul.bf16.gmra.mxu3 %v2865_v59  ;;  %3071 = vmatpush.msrb.mxu0 %v3006_v23 }
 0x549   : > { %3194 = vmatpush.msrb.mxu1 %v3006_v23  ;;  %v3026_v18 = vadd.f32 %v3025_v32, %v8289_v29 }
 0x54a   : > { %3072 = vmatpush.msrb.mxu0 %v3005_v4 }
 0x54b   : > { %v8471_v61 = vpop.f32.mrf.mxu3  ;;  %3195 = vmatpush.msrb.mxu1 %v3005_v4  ;;  %v3027_v52 = vadd.f32 %v3026_v18, %v8327_v13 }
 0x54c   : > { %3073 = vmatpush.msrb.mxu0 %v3004_v3 }
 0x54d   : > { %v3028_v6 = vadd.f32 %v3027_v52, %v8359_v38  ;;  %3196 = vmatpush.msrb.mxu1 %v3004_v3 }
 0x54f   : > { %v3029_v25 = vadd.f32 %v3028_v6, %v8394_v28 }
 0x551   : > { %v3030_v53 = vadd.f32 %v3029_v25, %v8430_v8 }
 0x553   : > { %v8487_v58 = vpop.f32.mrf.mxu3  ;;  %v3031_v27 = vadd.f32 %v3030_v53, %v8471_v61 }
 0x555   : > { %v3032_v16 = vadd.f32 %v3031_v27, %v8487_v58 }
 0x558   : > { %2998 = vmatmul.bf16.gmra.mxu3 %v2866_v5 }
 0x55b   : > { %v8501_v12 = vpop.f32.mrf.mxu3 }
 0x55c   : > { %v3033_v0 = vadd.f32 %v3032_v16, %v8501_v12 }
 0x563   : > { %v8503_v39 = vpop.f32.mrf.mxu3 }
 0x564   : > { %v3034_v48 = vadd.f32 %v3033_v0, %v8503_v39 }
 0x56b   : > { %v8508_v34 = vpop.f32.mrf.mxu3 }
 0x56c   : > { %v3035_v37 = vadd.f32 %v3034_v48, %v8508_v34 }
 0x573   : > { %v8510_v24 = vpop.f32.mrf.mxu3 }
 0x574   : > { %v3036_v51 = vadd.f32 %v3035_v37, %v8510_v24 }
 0x57b   : > { %v8515_v7 = vpop.f32.mrf.mxu3 }
 0x57c   : > { %v3037_v50 = vadd.f32 %v3036_v51, %v8515_v7 }
 0x583   : > { %v8517_v19 = vpop.f32.mrf.mxu3 }
 0x584   : > { %v3038_v63 = vadd.f32 %v3037_v50, %v8517_v19 }
 0x58b   : > { %v8522_v2 = vpop.f32.mrf.mxu3 }
 0x58c   : > { %v3039_v21 = vadd.f32 %v3038_v63, %v8522_v2 }
 0x593   : > { %v8524_v49 = vpop.f32.mrf.mxu3 }
 0x594   : > { %v3040_v56 = vadd.f32 %v3039_v21, %v8524_v49 }
 0x59b   : > { %v8529_v30 = vpop.f32.mrf.mxu3 }
 0x59c   : > { %v3041_v1 = vadd.f32 %v3040_v56, %v8529_v30 }
 0x5a3   : > { %v8531_v62 = vpop.f32.mrf.mxu3 }
 0x5a4   : > { %v3042_v60 = vadd.f32 %v3041_v1, %v8531_v62 }
 0x5ab   : > { %v8539_v36 = vpop.f32.mrf.mxu3 }
 0x5ac   : > { %v3043_v42 = vadd.f32 %v3042_v60, %v8539_v36 }
 0x5b3   : > { %v8545_v17 = vpop.f32.mrf.mxu3 }
 0x5b4   : > { %v3044_v20 = vadd.f32 %v3043_v42, %v8545_v17 }
 0x5bb   : > { %v8554_v59 = vpop.f32.mrf.mxu3 }
 0x5bc   : > { %v3045_v5 = vadd.f32 %v3044_v20, %v8554_v59 }
 0x5c3   : > { %v8560_v43 = vpop.f32.mrf.mxu3 }
 0x5c4   : > { %v3046_v15 = vadd.f32 %v3045_v5, %v8560_v43 }
 0x5cb   : > { %v8566_v14 = vpop.f32.mrf.mxu3 }
 0x5cc   : > { %v3047_v22 = vadd.f32 %v3046_v15, %v8566_v14 }
 0x5d3   : > { %v8575_v35 = vpop.f32.mrf.mxu3 }
 0x5d4   : > { %v3048_v11 = vadd.f32 %v3047_v22, %v8575_v35 }
 0x5db   : > { %v8581_v46 = vpop.f32.mrf.mxu3 }
 0x5dc   : > { %v3049_v23 = vadd.f32 %v3048_v11, %v8581_v46 }
 0x5e3   : > { %v8587_v33 = vpop.f32.mrf.mxu3 }
 0x5e4   : > { %v3050_v44 = vadd.f32 %v3049_v23, %v8587_v33 }
 0x5e6   : > { %v3051_v45 = vrot.slane %v3050_v44, 4 }
 0x5e8   : > { %v3052_v26 = vadd.f32 %v3051_v45, %v3050_v44 }
 0x5ea   : > { %v3053_v9 = vrot.slane %v3052_v26, 2 }
 0x5ec   : > { %v3054_v32 = vadd.f32 %v3053_v9, %v3052_v26 }
 0x5ee   : > { %v3055_v18 = vrot.slane %v3054_v32, 1 }
 0x5f0   : > { %v3056_v4 = vadd.f32 %v3055_v18, %v3054_v32 }
 0x5f2   : > { %v3057_v52 = vmul.f32 %v3056_v4, %v6953_v10 }
 0x5f4   : > { %3074 = vmatmul.f32.vlgmr.msrb.gmra.mxu0 %v3057_v52 }
 0x671   : > { %v3075_v6 = vpop.f32.mrf.mxu0 }
 0x672   : > { %v8591_v25 = vperm.slane %v3075_v6, 0 }
 0x674   : > { %v8595_v53 = vsub.f32 %v8047_v31, %v8591_v25  ;;  %v8599_v27 = vsub.f32 %v8079_v47, %v8591_v25  ;;  %v8603_v16 = vsub.f32 %v8110_v55, %v8591_v25  ;;  %v8611_v37 = vsub.f32 %v8149_v41, %v8591_v25 }
 0x675   : > { %v8615_v31 = vsub.f32 %v8187_v57, %v8591_v25  ;;  %v8621_v55 = vsub.f32 %v8219_v54, %v8591_v25  ;;  %v8627_v41 = vsub.f32 %v8257_v40, %v8591_v25  ;;  %v8633_v56 = vsub.f32 %v8289_v29, %v8591_v25 }
 0x676   : > { %v3111_v0 = vmul.f32 %v8595_v53, %v8595_v53  ;;  %v3112_v48 = vmul.f32 %v8599_v27, %v8599_v27  ;;  %v3113_v47 = vmul.f32 %v8603_v16, %v8603_v16  ;;  %v3114_v50 = vmul.f32 %v8611_v37, %v8611_v37 }
 0x677   : > { %v3115_v57 = vmul.f32 %v8615_v31, %v8615_v31  ;;  %v3116_v54 = vmul.f32 %v8621_v55, %v8621_v55  ;;  %v8639_v1 = vsub.f32 %v8327_v13, %v8591_v25  ;;  %v3117_v40 = vmul.f32 %v8627_v41, %v8627_v41 }
 0x678   : > { %v3143_v51 = vadd.f32 %v3112_v48, %v3111_v0  ;;  %v8645_v42 = vsub.f32 %v8359_v38, %v8591_v25  ;;  %v3118_v29 = vmul.f32 %v8633_v56, %v8633_v56  ;;  %v8651_v5 = vsub.f32 %v8394_v28, %v8591_v25 }
 0x679   : > { %v3119_v13 = vmul.f32 %v8639_v1, %v8639_v1  ;;  %v8657_v22 = vsub.f32 %v8430_v8, %v8591_v25  ;;  %v8663_v23 = vsub.f32 %v8471_v61, %v8591_v25  ;;  %v8669_v45 = vsub.f32 %v8487_v58, %v8591_v25 }
 0x67a   : > { %v3144_v63 = vadd.f32 %v3143_v51, %v3113_v47  ;;  %v3120_v38 = vmul.f32 %v8645_v42, %v8645_v42  ;;  %v3121_v28 = vmul.f32 %v8651_v5, %v8651_v5  ;;  %v8675_v9 = vsub.f32 %v8501_v12, %v8591_v25 }
 0x67b   : > { %v3122_v8 = vmul.f32 %v8657_v22, %v8657_v22  ;;  %v3123_v61 = vmul.f32 %v8663_v23, %v8663_v23  ;;  %v8681_v18 = vsub.f32 %v8503_v39, %v8591_v25  ;;  %v3124_v58 = vmul.f32 %v8669_v45, %v8669_v45 }
 0x67c   : > { %v3145_v21 = vadd.f32 %v3144_v63, %v3114_v50  ;;  %v8687_v52 = vsub.f32 %v8508_v34, %v8591_v25  ;;  %v3125_v12 = vmul.f32 %v8675_v9, %v8675_v9  ;;  %v8693_v0 = vsub.f32 %v8510_v24, %v8591_v25 }
 0x67d   : > { %v3126_v39 = vmul.f32 %v8681_v18, %v8681_v18  ;;  %v8699_v47 = vsub.f32 %v8515_v7, %v8591_v25  ;;  %v8705_v50 = vsub.f32 %v8517_v19, %v8591_v25 }
 0x67e   : > { %v3146_v3 = vadd.f32 %v3145_v21, %v3115_v57  ;;  %v3127_v34 = vmul.f32 %v8687_v52, %v8687_v52  ;;  %v3128_v24 = vmul.f32 %v8693_v0, %v8693_v0  ;;  %v8711_v57 = vsub.f32 %v8522_v2, %v8591_v25 }
 0x67f   : > { %v3129_v7 = vmul.f32 %v8699_v47, %v8699_v47  ;;  %v3130_v19 = vmul.f32 %v8705_v50, %v8705_v50 }
 0x680   : > { %v3147_v60 = vadd.f32 %v3146_v3, %v3116_v54  ;;  %v8717_v54 = vsub.f32 %v8524_v49, %v8591_v25  ;;  %v3131_v2 = vmul.f32 %v8711_v57, %v8711_v57 }
 0x682   : > { %v3148_v20 = vadd.f32 %v3147_v60, %v3117_v40  ;;  %v8723_v40 = vsub.f32 %v8529_v30, %v8591_v25  ;;  %v3132_v49 = vmul.f32 %v8717_v54, %v8717_v54 }
 0x684   : > { %v3149_v15 = vadd.f32 %v3148_v20, %v3118_v29  ;;  %v8729_v29 = vsub.f32 %v8531_v62, %v8591_v25  ;;  %v3133_v30 = vmul.f32 %v8723_v40, %v8723_v40 }
 0x686   : > { %v3150_v11 = vadd.f32 %v3149_v15, %v3119_v13  ;;  %v8735_v13 = vsub.f32 %v8539_v36, %v8591_v25  ;;  %v3134_v62 = vmul.f32 %v8729_v29, %v8729_v29 }
 0x688   : > { %v3151_v44 = vadd.f32 %v3150_v11, %v3120_v38  ;;  %v8741_v38 = vsub.f32 %v8545_v17, %v8591_v25  ;;  %v3135_v36 = vmul.f32 %v8735_v13, %v8735_v13 }
 0x68a   : > { %v3152_v26 = vadd.f32 %v3151_v44, %v3121_v28  ;;  %v8747_v28 = vsub.f32 %v8554_v59, %v8591_v25  ;;  %v3136_v17 = vmul.f32 %v8741_v38, %v8741_v38 }
 0x68c   : > { %v3153_v32 = vadd.f32 %v3152_v26, %v3122_v8  ;;  %v8753_v8 = vsub.f32 %v8560_v43, %v8591_v25  ;;  %v3137_v59 = vmul.f32 %v8747_v28, %v8747_v28 }
 0x68e   : > { %v3154_v4 = vadd.f32 %v3153_v32, %v3123_v61  ;;  %v8759_v61 = vsub.f32 %v8566_v14, %v8591_v25  ;;  %v3110_v14 = vsub.f32 %v8587_v33, %v8591_v25  ;;  %v721_v33 = vld [vmem:[%s10451_s4 + $0x7] sm:$0x1] }
 0x690   : > { %v3155_v6 = vadd.f32 %v3154_v4, %v3124_v58  ;;  %v3108_v58 = vsub.f32 %v8575_v35, %v8591_v25  ;;  %v3138_v4 = vmul.f32 %v8753_v8, %v8753_v8 }
 0x692   : > { %v3156_v48 = vadd.f32 %v3155_v6, %v3125_v12  ;;  %v3109_v12 = vsub.f32 %v8581_v46, %v8591_v25  ;;  %v3139_v6 = vmul.f32 %v8759_v61, %v8759_v61  ;;  %v723_v25 = vsel %vm722_vm0, %v721_v33, 0.0 }
 0x693   : > { %724 = vadd.xlane.f32.xlu0 %v723_v25 }
 0x694   : > { %v3157_v51 = vadd.f32 %v3156_v48, %v3126_v39  ;;  %v3140_v48 = vmul.f32 %v3108_v58, %v3108_v58 }
 0x696   : > { %v3158_v63 = vadd.f32 %v3157_v51, %v3127_v34  ;;  %v3141_v51 = vmul.f32 %v3109_v12, %v3109_v12 }
 0x698   : > { %v3159_v21 = vadd.f32 %v3158_v63, %v3128_v24  ;;  %v3142_v63 = vmul.f32 %v3110_v14, %v3110_v14 }
 0x69a   : > { %v3160_v3 = vadd.f32 %v3159_v21, %v3129_v7 }
 0x69c   : > { %v3161_v60 = vadd.f32 %v3160_v3, %v3130_v19 }
 0x69e   : > { %v3162_v20 = vadd.f32 %v3161_v60, %v3131_v2 }
 0x6a0   : > { %v3163_v15 = vadd.f32 %v3162_v20, %v3132_v49 }
 0x6a2   : > { %v3164_v11 = vadd.f32 %v3163_v15, %v3133_v30 }
 0x6a4   : > { %v3165_v44 = vadd.f32 %v3164_v11, %v3134_v62 }
 0x6a6   : > { %v3166_v26 = vadd.f32 %v3165_v44, %v3135_v36 }
 0x6a8   : > { %v3167_v32 = vadd.f32 %v3166_v26, %v3136_v17 }
 0x6aa   : > { %v3168_v43 = vadd.f32 %v3167_v32, %v3137_v59  ;;  %v8782_v32 = vld [vmem:[%s10451_s4 + $0x2] ss:$0 sm:$0xff] }
 0x6ac   : > { %v3169_v39 = vadd.f32 %v3168_v43, %v3138_v4 }
 0x6ae   : > { %v3170_v34 = vadd.f32 %v3169_v39, %v3139_v6 }
 0x6b0   : > { %v3171_v24 = vadd.f32 %v3170_v34, %v3140_v48  ;;  %v8792_v48 = vld [vmem:[%s10451_s4 + $0x3] ss:$0 sm:$0xff] }
 0x6b2   : > { %v3172_v35 = vadd.f32 %v3171_v24, %v3141_v51 }
 0x6b4   : > { %v3173_v7 = vadd.f32 %v3172_v35, %v3142_v63  ;;  %v8808_v35 = vld [vmem:[%s10451_s4 + $0x6] ss:$0 sm:$0xff] }
 0x6b6   : > { %v3174_v21 = vrot.slane %v3173_v7, 4 }
 0x6b8   : > { %v3175_v19 = vadd.f32 %v3174_v21, %v3173_v7 }
 0x6ba   : > { %v3176_v3 = vrot.slane %v3175_v19, 2 }
 0x6bc   : > { %v3177_v2 = vadd.f32 %v3176_v3, %v3175_v19 }
 0x6be   : > { %v3178_v60 = vrot.slane %v3177_v2, 1 }
 0x6c0   : > { %v3179_v46 = vadd.f32 %v3178_v60, %v3177_v2 }
 0x6c2   : > { %v3180_v49 = vmul.f32 %v3179_v46, %v6953_v10 }
 0x6c4   : > { %3197 = vmatmul.f32.vlgmr.msrb.gmra.mxu1 %v3180_v49 }
 0x741   : > { %v3198_v20 = vpop.f32.mrf.mxu1 }
 0x742   : > { %v3199_v30 = vadd.f32 1e-05, %v3198_v20 }
 0x744   : > { %4637 = vrsqrt.f32 %v3199_v30  ;;  %vm3207_vm13 = vweird.f32 %v3199_v30 }
 0x74a   : > { %v4638_v15 = vpop.eup %4637 }
 0x74b   : > { %v3202_v62 = vmul.f32 %v4638_v15, %v3199_v30  ;;  %vm3208_vm2 = vweird.f32 %v4638_v15 }
 0x74c   : > { %vm3209_vm3 = vmor %vm3207_vm13, %vm3208_vm2 }
 0x74d   : > { %v3203_v11 = vmul.f32 %v4638_v15, %v3202_v62 }
 0x74f   : > { %v3204_v36 = vmul.f32 0.5, %v3203_v11 }
 0x751   : > { %v3205_v44 = vsub.f32 1.5, %v3204_v36 }
 0x753   : > { %v3206_v17 = vmul.f32 %v4638_v15, %v3205_v44 }
 0x755   : > { %v3210_v26 = vsel %vm3209_vm3, %v4638_v15, %v3206_v17 }
 0x756   : > { %v8777_v59 = vperm.slane %v3210_v26, 0 }
 0x758   : > { %v3215_v4 = vmul.f32 %v8777_v59, %v8611_v37  ;;  %v3241_v43 = vmul.f32 %v8777_v59, %v3108_v58  ;;  %v3242_v6 = vmul.f32 %v8777_v59, %v3109_v12  ;;  %v3243_v39 = vmul.f32 %v8777_v59, %v3110_v14 }
 0x759   : > { %v3212_v51 = vmul.f32 %v8777_v59, %v8595_v53  ;;  %v3213_v12 = vmul.f32 %v8777_v59, %v8599_v27  ;;  %v3214_v14 = vmul.f32 %v8777_v59, %v8603_v16  ;;  %v3216_v53 = vmul.f32 %v8777_v59, %v8615_v31 }
 0x75a   : > { %v3248_v34 = vmul.f32 %v8782_v32, %v3215_v4  ;;  %v3274_v24 = vmul.f32 %v8782_v32, %v3241_v43  ;;  %v3275_v37 = vmul.f32 %v8782_v32, %v3242_v6  ;;  %v3276_v58 = vmul.f32 %v8782_v32, %v3243_v39 }
 0x75b   : > { %v3245_v7 = vmul.f32 %v8782_v32, %v3212_v51  ;;  %v3246_v19 = vmul.f32 %v8782_v32, %v3213_v12  ;;  %v3247_v27 = vmul.f32 %v8782_v32, %v3214_v14  ;;  %v3249_v3 = vmul.f32 %v8782_v32, %v3216_v53 }
 0x75c   : > { %v3281_v63 = vadd.f32 %v8792_v48, %v3248_v34  ;;  %v3217_v60 = vmul.f32 %v8777_v59, %v8621_v55  ;;  %v8824_v31 = vadd.f32 %v8792_v48, %v3274_v24  ;;  %v8827_v46 = vadd.f32 %v8792_v48, %v3275_v37 }
 0x75d   : > { %v3278_v2 = vadd.f32 %v8792_v48, %v3245_v7  ;;  %v3218_v49 = vmul.f32 %v8777_v59, %v8627_v41  ;;  %v3280_v33 = vadd.f32 %v8792_v48, %v3247_v27  ;;  %v8833_v25 = vadd.f32 %v8792_v48, %v3276_v58 }
 0x75e   : > { %v8813_v21 = vmax.f32 %v3281_v63, 0.0  ;;  %v3279_v20 = vadd.f32 %v8792_v48, %v3246_v19  ;;  %v3219_v55 = vmul.f32 %v8777_v59, %v8633_v56  ;;  %v3282_v30 = vadd.f32 %v8792_v48, %v3249_v3 }
 0x75f   : > { %v8839_v15 = vmax.f32 %v3278_v2, 0.0  ;;  %v3250_v62 = vmul.f32 %v8782_v32, %v3217_v60  ;;  %v3220_v41 = vmul.f32 %v8777_v59, %v8639_v1  ;;  %v3251_v36 = vmul.f32 %v8782_v32, %v3218_v49 }
 0x760   : > { %11074 = vst [vmem:[#allocation3_spill] sm:$0xff] %v8813_v21  ;;  %v3511_v16 = vmul.f32 %v8808_v35, %v8813_v21  ;;  %v8842_v11 = vmax.f32 %v3279_v20, 0.0  ;;  %v8847_v44 = vmax.f32 %v3280_v33, 0.0  ;;  %v3252_v26 = vmul.f32 %v8782_v32, %v3219_v55 }
 0x761   : > { %v8854_v4 = vmax.f32 %v3282_v30, 0.0  ;;  %v3221_v43 = vmul.f32 %v8777_v59, %v8645_v42  ;;  %v3283_v6 = vadd.f32 %v8792_v48, %v3250_v62  ;;  %v3222_v39 = vmul.f32 %v8777_v59, %v8651_v5 }
 0x762   : > { %3546 = vadd.xlane.f32.xlu2 %v3511_v16  ;;  %v3509_v17 = vmul.f32 %v8808_v35, %v8842_v11  ;;  %v3342_v56 = vadd.f32 %v8842_v11, %v8839_v15  ;;  %v3253_v34 = vmul.f32 %v8782_v32, %v3220_v41  ;;  %v3284_v51 = vadd.f32 %v8792_v48, %v3251_v36 }
 0x763   : > { %v3508_v37 = vmul.f32 %v8808_v35, %v8839_v15  ;;  %v3285_v58 = vadd.f32 %v8792_v48, %v3252_v26  ;;  %v3512_v42 = vmul.f32 %v8808_v35, %v8854_v4  ;;  %v3223_v12 = vmul.f32 %v8777_v59, %v8657_v22 }
 0x764   : > { %3542 = vadd.xlane.f32.xlu1 %v3509_v17  ;;  %v3343_v1 = vadd.f32 %v3342_v56, %v8847_v44  ;;  %v3254_v14 = vmul.f32 %v8782_v32, %v3221_v43  ;;  %v8874_v63 = vmax.f32 %v3283_v6, 0.0  ;;  %v3224_v53 = vmul.f32 %v8777_v59, %v8663_v23  ;;  %v4548_v43 = vld [vmem:[%s10449_s2 + $0x178] sm:$0xff] }
 0x765   : > { %3540 = vadd.xlane.f32.xlu0 %v3508_v37  ;;  %v3255_v7 = vmul.f32 %v8782_v32, %v3222_v39  ;;  %v3286_v19 = vadd.f32 %v8792_v48, %v3253_v34  ;;  %v8880_v27 = vmax.f32 %v3284_v51, 0.0  ;;  %v3510_v22 = vmul.f32 %v8808_v35, %v8847_v44  ;;  %3397 = vmatpush.msra.mxu0 %v4548_v43  ;;  %v4546_v37 = vld [vmem:[%s10449_s2 + $0x168] sm:$0xff] }
 0x766   : > { %v3344_v24 = vadd.f32 %v3343_v1, %v8813_v21  ;;  %v8885_v3 = vmax.f32 %v3285_v58, 0.0  ;;  %v3225_v2 = vmul.f32 %v8777_v59, %v8669_v45  ;;  %v3256_v60 = vmul.f32 %v8782_v32, %v3223_v12 }
 0x767   : > { %v3287_v23 = vadd.f32 %v8792_v48, %v3254_v14  ;;  %v3226_v33 = vmul.f32 %v8777_v59, %v8675_v9  ;;  %v3257_v20 = vmul.f32 %v8782_v32, %v3224_v53  ;;  %v3288_v55 = vadd.f32 %v8792_v48, %v3255_v7 }
 0x768   : > { %v3345_v5 = vadd.f32 %v3344_v24, %v8854_v4  ;;  %11075 = vst [vmem:[#allocation5_spill] sm:$0xff] %v8885_v3  ;;  %v8896_v30 = vmax.f32 %v3286_v19, 0.0  ;;  %v3513_v62 = vmul.f32 %v8808_v35, %v8874_v63  ;;  %v3227_v41 = vmul.f32 %v8777_v59, %v8681_v18  ;;  %v4547_v18 = vld [vmem:[%s10449_s2 + $0x170] sm:$0xff] }
 0x769   : > { %v3515_v36 = vmul.f32 %v8808_v35, %v8885_v3  ;;  %v3258_v17 = vmul.f32 %v8782_v32, %v3225_v2  ;;  %v3289_v9 = vadd.f32 %v8792_v48, %v3256_v60  ;;  %v8907_v56 = vmax.f32 %v3287_v23, 0.0  ;;  %3398 = vmatpush.msra.mxu0 %v4547_v18 }
 0x76a   : > { %3548 = vadd.xlane.f32.xlu2 %v3512_v42  ;;  %v3346_v16 = vadd.f32 %v3345_v5, %v8874_v63  ;;  %v3228_v6 = vmul.f32 %v8777_v59, %v8687_v52  ;;  %v3259_v1 = vmul.f32 %v8782_v32, %v3226_v33  ;;  %v3290_v39 = vadd.f32 %v8792_v48, %v3257_v20  ;;  %v4545_v33 = vld [vmem:[%s10449_s2 + $0x160] sm:$0xff] }
 0x76b   : > { %v8920_v34 = vmax.f32 %v3288_v55, 0.0  ;;  %v3514_v24 = vmul.f32 %v8808_v35, %v8880_v27  ;;  %v3229_v52 = vmul.f32 %v8777_v59, %v8693_v0  ;;  %v3260_v58 = vmul.f32 %v8782_v32, %v3227_v41  ;;  %3399 = vmatpush.msra.mxu0 %v4546_v37 }
 0x76c   : > { %3544 = vadd.xlane.f32.xlu1 %v3510_v22  ;;  %v3347_v49 = vadd.f32 %v3346_v16, %v8880_v27  ;;  %v3291_v42 = vadd.f32 %v8792_v48, %v3258_v17  ;;  %v8932_v12 = vmax.f32 %v3289_v9, 0.0  ;;  %v3230_v5 = vmul.f32 %v8777_v59, %v8699_v47  ;;  %v4543_v17 = vld [vmem:[%s10449_s2 + $0x150] sm:$0xff] }
 0x76d   : > { %3550 = vadd.xlane.f32.xlu0 %v3513_v62  ;;  %v3261_v53 = vmul.f32 %v8782_v32, %v3228_v6  ;;  %v3292_v7 = vadd.f32 %v8792_v48, %v3259_v1  ;;  %v8939_v19 = vmax.f32 %v3290_v39, 0.0  ;;  %v3516_v22 = vmul.f32 %v8808_v35, %v8896_v30  ;;  %3400 = vmatpush.msra.mxu0 %v4545_v33  ;;  %v4542_v6 = vld [vmem:[%s10449_s2 + $0x148] sm:$0xff] }
 0x76e   : > { %v3348_v45 = vadd.f32 %v3347_v49, %v8885_v3  ;;  %v3231_v16 = vmul.f32 %v8777_v59, %v8705_v50  ;;  %v3518_v2 = vmul.f32 %v8808_v35, %v8920_v34  ;;  %v3262_v47 = vmul.f32 %v8782_v32, %v3229_v52  ;;  %v4544_v50 = vld [vmem:[%s10449_s2 + $0x158] sm:$0xff] }
 0x76f   : > { %v3293_v60 = vadd.f32 %v8792_v48, %v3260_v58  ;;  %v8950_v23 = vmax.f32 %v3291_v42, 0.0  ;;  %v3232_v20 = vmul.f32 %v8777_v59, %v8711_v57  ;;  %v3263_v55 = vmul.f32 %v8782_v32, %v3230_v5  ;;  %3401 = vmatpush.msra.mxu0 %v4544_v50 }
 0x770   : > { %v3349_v26 = vadd.f32 %v3348_v45, %v8896_v30  ;;  %v3294_v62 = vadd.f32 %v8792_v48, %v3261_v53  ;;  %v8963_v45 = vmax.f32 %v3292_v7, 0.0  ;;  %v3233_v57 = vmul.f32 %v8777_v59, %v8717_v54  ;;  %v4541_v53 = vld [vmem:[%s10449_s2 + $0x140] sm:$0xff] }
 0x771   : > { %v3264_v9 = vmul.f32 %v8782_v32, %v3231_v16  ;;  %v8975_v43 = vmax.f32 %v3293_v60, 0.0  ;;  %v3234_v1 = vmul.f32 %v8777_v59, %v8723_v40  ;;  %v3265_v39 = vmul.f32 %v8782_v32, %v3232_v20  ;;  %3402 = vmatpush.msra.mxu0 %v4543_v17  ;;  %v4539_v60 = vld [vmem:[%s10449_s2 + $0x130] sm:$0xff] }
 0x772   : > { %3554 = vadd.xlane.f32.xlu2 %v3515_v36  ;;  %v3350_v51 = vadd.f32 %v3349_v26, %v8907_v56  ;;  %v3517_v36 = vmul.f32 %v8808_v35, %v8907_v56  ;;  %v3295_v26 = vadd.f32 %v8792_v48, %v3262_v47  ;;  %v3296_v54 = vadd.f32 %v8792_v48, %v3263_v55  ;;  %v4538_v55 = vld [vmem:[%s10449_s2 + $0x128] sm:$0xff] }
 0x773   : > { %v3519_v37 = vmul.f32 %v8808_v35, %v8932_v12  ;;  %v3235_v52 = vmul.f32 %v8777_v59, %v8729_v29  ;;  %v3521_v58 = vmul.f32 %v8808_v35, %v8950_v23  ;;  %3403 = vmatpush.msra.mxu0 %v4542_v6  ;;  %v3266_v40 = vmul.f32 %v8782_v32, %v3233_v57  ;;  %v4540_v29 = vld [vmem:[%s10449_s2 + $0x138] sm:$0xff] }
 0x774   : > { %v3351_v14 = vadd.f32 %v3350_v51, %v8920_v34  ;;  %3552 = vadd.xlane.f32.xlu1 %v3514_v24  ;;  %v8985_v51 = vmax.f32 %v3294_v62, 0.0  ;;  %v3297_v42 = vadd.f32 %v8792_v48, %v3264_v9  ;;  %v3236_v7 = vmul.f32 %v8777_v59, %v8735_v13 }
 0x775   : > { %3556 = vadd.xlane.f32.xlu0 %v3516_v22  ;;  %3404 = vmatpush.msra.mxu0 %v4541_v53  ;;  %v3298_v22 = vadd.f32 %v8792_v48, %v3265_v39  ;;  %v9009_v16 = vmax.f32 %v3296_v54, 0.0  ;;  %v3520_v47 = vmul.f32 %v8808_v35, %v8939_v19  ;;  %v3237_v13 = vmul.f32 %v8777_v59, %v8741_v38  ;;  %v4536_v39 = vld [vmem:[%s10449_s2 + $0x118] sm:$0xff]  ;;  %v4534_v53 = vld [vmem:[%s10449_s2 + $0x108] sm:$0xff] }
 0x776   : > { %v3352_v0 = vadd.f32 %v3351_v14, %v8932_v12  ;;  %v8996_v14 = vmax.f32 %v3295_v26, 0.0  ;;  %v3299_v33 = vadd.f32 %v8792_v48, %v3266_v40  ;;  %v9021_v50 = vmax.f32 %v3297_v42, 0.0  ;;  %v4535_v40 = vld [vmem:[%s10449_s2 + $0x110] sm:$0xff] }
 0x777   : > { %11077 = vst [vmem:[#allocation4_spill] sm:$0xff] %v9009_v16  ;;  %3405 = vmatpush.msra.mxu0 %v4540_v29  ;;  %v3238_v62 = vmul.f32 %v8777_v59, %v8747_v28  ;;  %v3522_v57 = vmul.f32 %v8808_v35, %v8963_v45  ;;  %v3239_v9 = vmul.f32 %v8777_v59, %v8753_v8 }
 0x778   : > { %v3353_v49 = vadd.f32 %v3352_v0, %v8939_v19  ;;  %11076 = vst [vmem:[#allocation6_spill] sm:$0xff] %v8996_v14  ;;  %v3267_v0 = vmul.f32 %v8782_v32, %v3234_v1  ;;  %v3524_v26 = vmul.f32 %v8808_v35, %v8985_v51  ;;  %v3270_v28 = vmul.f32 %v8782_v32, %v3237_v13  ;;  %v4537_v1 = vld [vmem:[%s10449_s2 + $0x120] sm:$0xff] }
 0x779   : > { %11078 = vst [vmem:[#allocation8_spill] sm:$0xff] %v9021_v50  ;;  %3406 = vmatpush.msra.mxu0 %v4539_v60  ;;  %v9042_v6 = vmax.f32 %v3299_v33, 0.0  ;;  %v3240_v54 = vmul.f32 %v8777_v59, %v8759_v61  ;;  %v3272_v61 = vmul.f32 %v8782_v32, %v3239_v9  ;;  %v3527_v60 = vmul.f32 %v8808_v35, %v9021_v50 }
 0x77a   : > { %3560 = vadd.xlane.f32.xlu2 %v3518_v2  ;;  %v3354_v41 = vadd.f32 %v3353_v49, %v8950_v23  ;;  %v3268_v49 = vmul.f32 %v8782_v32, %v3235_v52  ;;  %v3300_v38 = vadd.f32 %v8792_v48, %v3267_v0  ;;  %v3303_v59 = vadd.f32 %v8792_v48, %v3270_v28 }
 0x77b   : > { %3407 = vmatpush.msra.mxu0 %v4538_v55  ;;  %v3305_v13 = vadd.f32 %v8792_v48, %v3272_v61  ;;  %v9104_v28 = vmax.f32 %v8824_v31, 0.0 }
 0x77c   : > { %v3355_v18 = vadd.f32 %v3354_v41, %v8963_v45  ;;  %3558 = vadd.xlane.f32.xlu1 %v3517_v36  ;;  %v3269_v41 = vmul.f32 %v8782_v32, %v3236_v7  ;;  %v9031_v36 = vmax.f32 %v3298_v22, 0.0  ;;  %v9055_v52 = vmax.f32 %v3300_v38, 0.0 }
 0x77d   : > { %3562 = vadd.xlane.f32.xlu0 %v3519_v37  ;;  %3408 = vmatpush.msra.mxu0 %v4537_v1  ;;  %v3273_v7 = vmul.f32 %v8782_v32, %v3240_v54  ;;  %v9093_v38 = vmax.f32 %v3305_v13, 0.0  ;;  %11086 = vst [vmem:[#allocation13_spill] sm:$0xff] %v9104_v28  ;;  %v9108_v1 = vmax.f32 %v8827_v46, 0.0  ;;  %v9114_v54 = vmax.f32 %v8833_v25, 0.0 }
 0x77e   : > { %v3356_v24 = vadd.f32 %v3355_v18, %v8975_v43  ;;  %11079 = vst [vmem:[#allocation9_spill] sm:$0xff] %v9031_v36  ;;  %v3301_v18 = vadd.f32 %v8792_v48, %v3268_v49  ;;  %v3302_v37 = vadd.f32 %v8792_v48, %v3269_v41  ;;  %v9081_v49 = vmax.f32 %v3303_v59, 0.0 }
 0x77f   : > { %3409 = vmatpush.msra.mxu0 %v4536_v39  ;;  %11084 = vst [vmem:[#allocation14_spill] sm:$0xff] %v9093_v38  ;;  %v3528_v9 = vmul.f32 %v8808_v35, %v9031_v36  ;;  %v3529_v39 = vmul.f32 %v8808_v35, %v9042_v6  ;;  %v3538_v13 = vmul.f32 %v8808_v35, %v9108_v1 }
 0x780   : > { %v3357_v5 = vadd.f32 %v3356_v24, %v8985_v51  ;;  %v3271_v24 = vmul.f32 %v8782_v32, %v3238_v62  ;;  %v9073_v22 = vmax.f32 %v3302_v37, 0.0  ;;  %11082 = vst [vmem:[#allocation12_spill] sm:$0xff] %v9081_v49  ;;  %v4533_v32 = vld [vmem:[%s10449_s2 + $0x100] sm:$0xff]  ;;  %v3526_v62 = vmul.f32 %v8808_v35, %v9009_v16 }
 0x781   : > { %3410 = vmatpush.msra.mxu0 %v4535_v40  ;;  %11087 = vst [vmem:[#allocation17_spill] sm:$0xff] %v9108_v1  ;;  %v3533_v46 = vmul.f32 %v8808_v35, %v9081_v49 }
 0x782   : > { %3566 = vadd.xlane.f32.xlu2 %v3521_v58  ;;  %v3358_v2 = vadd.f32 %v3357_v5, %v8996_v14  ;;  %v3523_v58 = vmul.f32 %v8808_v35, %v8975_v43  ;;  %v9065_v5 = vmax.f32 %v3301_v18, 0.0  ;;  %v3304_v0 = vadd.f32 %v8792_v48, %v3271_v24  ;;  %11081 = vst [vmem:[#allocation11_spill] sm:$0xff] %v9073_v22 }
 0x783   : > { %3411 = vmatpush.msra.mxu0 %v4534_v53  ;;  %11088 = vst [vmem:[#allocation18_spill] sm:$0xff] %v9114_v54  ;;  %v3532_v40 = vmul.f32 %v8808_v35, %v9073_v22 }
 0x784   : > { %v3359_v20 = vadd.f32 %v3358_v2, %v9009_v16  ;;  %3564 = vadd.xlane.f32.xlu1 %v3520_v47  ;;  %11080 = vst [vmem:[#allocation7_spill] sm:$0xff] %v9065_v5  ;;  %v3525_v2 = vmul.f32 %v8808_v35, %v8996_v14  ;;  %v9088_v55 = vmax.f32 %v3304_v0, 0.0  ;;  %v3531_v31 = vmul.f32 %v8808_v35, %v9065_v5 }
 0x785   : > { %3568 = vadd.xlane.f32.xlu0 %v3522_v57  ;;  %3412 = vmatpush.msra.mxu0 %v4533_v32  ;;  %v4564_v32 = vld [vmem:[%s10449_s2 + $0x1f8] sm:$0xff] }
 0x786   : > { %v3360_v17 = vadd.f32 %v3359_v20, %v9021_v50  ;;  %v3306_v20 = vadd.f32 %v8792_v48, %v3273_v7  ;;  %11083 = vst [vmem:[#allocation10_spill] sm:$0xff] %v9088_v55  ;;  %v3530_v48 = vmul.f32 %v8808_v35, %v9055_v52  ;;  %v3534_v61 = vmul.f32 %v8808_v35, %v9088_v55 }
 0x787   : > { %v3535_v7 = vmul.f32 %v8808_v35, %v9093_v38  ;;  %3435 = vmatpush.msra.mxu1 %v4564_v32 }
 0x788   : > { %v3361_v8 = vadd.f32 %v3360_v17, %v9031_v36  ;;  %v9096_v57 = vmax.f32 %v3306_v20, 0.0  ;;  %v4560_v20 = vld [vmem:[%s10449_s2 + $0x1d8] sm:$0xff] }
 0x78a   : > { %3572 = vadd.xlane.f32.xlu2 %v3524_v26  ;;  %v3362_v42 = vadd.f32 %v3361_v8, %v9042_v6  ;;  %11085 = vst [vmem:[#allocation15_spill] sm:$0xff] %v9096_v57  ;;  %v3536_v53 = vmul.f32 %v8808_v35, %v9096_v57 }
 0x78c   : > { %3570 = vadd.xlane.f32.xlu1 %v3523_v58  ;;  %v3363_v29 = vadd.f32 %v3362_v42, %v9055_v52 }
 0x78d   : > { %3574 = vadd.xlane.f32.xlu0 %v3525_v2 }
 0x78e   : > { %v3364_v47 = vadd.f32 %v3363_v29, %v9065_v5 }
 0x790   : > { %v3365_v33 = vadd.f32 %v3364_v47, %v9073_v22  ;;  %v3537_v47 = vmul.f32 %v8808_v35, %v9104_v28 }
 0x792   : > { %3578 = vadd.xlane.f32.xlu2 %v3527_v60  ;;  %v3366_v41 = vadd.f32 %v3365_v33, %v9081_v49  ;;  %v3539_v60 = vmul.f32 %v8808_v35, %v9114_v54  ;;  %v4562_v33 = vld [vmem:[%s10449_s2 + $0x1e8] sm:$0xff]  ;;  %v4561_v35 = vld [vmem:[%s10449_s2 + $0x1e0] sm:$0xff] }
 0x794   : > { %3576 = vadd.xlane.f32.xlu1 %v3526_v62  ;;  %v3367_v17 = vadd.f32 %v3366_v41, %v9088_v55  ;;  %v4559_v62 = vld [vmem:[%s10449_s2 + $0x1d0] sm:$0xff]  ;;  %v4558_v41 = vld [vmem:[%s10449_s2 + $0x1c8] sm:$0xff] }
 0x795   : > { %3580 = vadd.xlane.f32.xlu0 %v3528_v9  ;;  %v4556_v9 = vld [vmem:[%s10449_s2 + $0x1b8] sm:$0xff] }
 0x796   : > { %v3368_v26 = vadd.f32 %v3367_v17, %v9093_v38  ;;  %v4557_v17 = vld [vmem:[%s10449_s2 + $0x1c0] sm:$0xff] }
 0x798   : > { %v3369_v18 = vadd.f32 %v3368_v26, %v9096_v57  ;;  %v4555_v26 = vld [vmem:[%s10449_s2 + $0x1b0] sm:$0xff] }
 0x79a   : > { %3584 = vadd.xlane.f32.xlu2 %v3530_v48  ;;  %v3370_v8 = vadd.f32 %v3369_v18, %v9104_v28  ;;  %v4554_v48 = vld [vmem:[%s10449_s2 + $0x1a8] sm:$0xff]  ;;  %v4553_v18 = vld [vmem:[%s10449_s2 + $0x1a0] sm:$0xff] }
 0x79c   : > { %3582 = vadd.xlane.f32.xlu1 %v3529_v39  ;;  %v3371_v24 = vadd.f32 %v3370_v8, %v9108_v1  ;;  %v4552_v39 = vld [vmem:[%s10449_s2 + $0x198] sm:$0xff]  ;;  %v4551_v8 = vld [vmem:[%s10449_s2 + $0x190] sm:$0xff] }
 0x79d   : > { %3586 = vadd.xlane.f32.xlu0 %v3531_v31  ;;  %v4549_v31 = vld [vmem:[%s10449_s2 + $0x180] sm:$0xff] }
 0x79e   : > { %v3372_v37 = vadd.f32 %v3371_v24, %v9114_v54  ;;  %v4550_v24 = vld [vmem:[%s10449_s2 + $0x188] sm:$0xff] }
 0x7a0   : > { %v3373_v58 = vrot.slane %v3372_v37, 4 }
 0x7a2   : > { %3590 = vadd.xlane.f32.xlu2 %v3533_v46  ;;  %v3374_v42 = vadd.f32 %v3373_v58, %v3372_v37  ;;  %v718_v37 = vld [vmem:[%s10451_s4 + $0x4] sm:$0x1] }
 0x7a4   : > { %3588 = vadd.xlane.f32.xlu1 %v3532_v40  ;;  %v3375_v25 = vrot.slane %v3374_v42, 2 }
 0x7a5   : > { %3592 = vadd.xlane.f32.xlu0 %v3534_v61 }
 0x7a6   : > { %v3376_v59 = vadd.f32 %v3375_v25, %v3374_v42  ;;  %v725_v42 = vpop.xlane.xlu0 %724 }
 0x7a7   : > { %v9188_v25 = vperm.slane %v725_v42, 0 }
 0x7a8   : > { %v3377_v29 = vrot.slane %v3376_v59, 1 }
 0x7aa   : > { %3596 = vadd.xlane.f32.xlu2 %v3536_v53  ;;  %v3378_v0 = vadd.f32 %v3377_v29, %v3376_v59 }
 0x7ac   : > { %3594 = vadd.xlane.f32.xlu1 %v3535_v7  ;;  %v3379_v2 = vmul.f32 %v3378_v0, %v6953_v10  ;;  %v4563_v10 = vld [vmem:[%s10449_s2 + $0x1f0] sm:$0xff] }
 0x7ad   : > { %3598 = vadd.xlane.f32.xlu0 %v3537_v47  ;;  %3436 = vmatpush.msra.mxu1 %v4563_v10 }
 0x7ae   : > { %3413 = vmatmul.f32.vlgmr.msra.gmra.mxu0 %v3379_v2 }
 0x7af   : > { %3437 = vmatpush.msra.mxu1 %v4562_v33 }
 0x7b1   : > { %3438 = vmatpush.msra.mxu1 %v4561_v35 }
 0x7b2   : > { %3602 = vadd.xlane.f32.xlu2 %v3539_v60 }
 0x7b3   : > { %3439 = vmatpush.msra.mxu1 %v4560_v20 }
 0x7b4   : > { %3600 = vadd.xlane.f32.xlu1 %v3538_v13 }
 0x7b5   : > { %3440 = vmatpush.msra.mxu1 %v4559_v62 }
 0x7b7   : > { %3441 = vmatpush.msra.mxu1 %v4558_v41 }
 0x7b9   : > { %3442 = vmatpush.msra.mxu1 %v4557_v17 }
 0x7bb   : > { %3443 = vmatpush.msra.mxu1 %v4556_v9 }
 0x7bd   : > { %3444 = vmatpush.msra.mxu1 %v4555_v26 }
 0x7bf   : > { %3445 = vmatpush.msra.mxu1 %v4554_v48 }
 0x7c1   : > { %3446 = vmatpush.msra.mxu1 %v4553_v18 }
 0x7c3   : > { %3447 = vmatpush.msra.mxu1 %v4552_v39 }
 0x7c5   : > { %3448 = vmatpush.msra.mxu1 %v4551_v8 }
 0x7c7   : > { %3449 = vmatpush.msra.mxu1 %v4550_v24 }
 0x7c9   : > { %3450 = vmatpush.msra.mxu1 %v4549_v31 }
 0x7d5   : > { %v3547_v61 = vpop.xlane.xlu2 %3546 }
 0x7d6   : > { %v3608_v59 = vadd.f32 %v9188_v25, %v3547_v61 }
 0x7d7   : > { %v3543_v29 = vpop.xlane.xlu1 %3542 }
 0x7d8   : > { %v4569_v53 = vmul.f32 -1.442695, %v3608_v59  ;;  %v3606_v7 = vadd.f32 %v9188_v25, %v3543_v29  ;;  %v3541_v0 = vpop.xlane.xlu0 %3540 }
 0x7d9   : > { %v3605_v13 = vadd.f32 %v9188_v25, %v3541_v0 }
 0x7da   : > { %4639 = vpow2.f32 %v4569_v53  ;;  %v4567_v60 = vmul.f32 -1.442695, %v3606_v7 }
 0x7db   : > { %v4566_v35 = vmul.f32 -1.442695, %v3605_v13 }
 0x7dc   : > { %4641 = vpow2.f32 %v4567_v60 }
 0x7dd   : > { %v3549_v2 = vpop.xlane.xlu2 %3548 }
 0x7de   : > { %v3609_v33 = vadd.f32 %v9188_v25, %v3549_v2 }
 0x7df   : > { %v3545_v32 = vpop.xlane.xlu1 %3544 }
 0x7e0   : > { %v4640_v47 = vpop.eup %4639  ;;  %v4570_v20 = vmul.f32 -1.442695, %v3609_v33  ;;  %v3607_v62 = vadd.f32 %v9188_v25, %v3545_v32  ;;  %v3551_v41 = vpop.xlane.xlu0 %3550 }
 0x7e1   : > { %v9193_v10 = vadd.f32 1.0, %v4640_v47  ;;  %v3610_v26 = vadd.f32 %v9188_v25, %v3551_v41 }
 0x7e2   : > { %v4642_v9 = vpop.eup %4641  ;;  %v4568_v18 = vmul.f32 -1.442695, %v3607_v62 }
 0x7e3   : > { %4643 = vrcp.f32 %v9193_v10  ;;  %v9202_v24 = vadd.f32 1.0, %v4642_v9  ;;  %vm3815_vm14 = vweird.f32 %v9193_v10 }
 0x7e4   : > { %4645 = vpow2.f32 %v4566_v35 }
 0x7e5   : > { %v3555_v17 = vpop.xlane.xlu2 %3554  ;;  %4647 = vpow2.f32 %v4570_v20  ;;  %vm3785_vm1 = vweird.f32 %v9202_v24 }
 0x7e6   : > { %v3612_v39 = vadd.f32 %v9188_v25, %v3555_v17  ;;  %4649 = vpow2.f32 %v4568_v18  ;;  %v3819_v17 = vand.u32 2147483647, %v9193_v10 }
 0x7e7   : > { %v3553_v48 = vpop.xlane.xlu1 %3552  ;;  %4651 = vrcp.f32 %v9202_v24 }
 0x7e8   : > { %v3557_v60 = vpop.xlane.xlu0 %3556  ;;  %vm9242_vm9 = vcmp.eq.f32.partialorder %v3819_v17, 8.507059e+37 }
 0x7e9   : > { %v9200_v8 = vpop.eup %4643  ;;  %v3613_v18 = vadd.f32 %v9188_v25, %v3557_v60 }
 0x7ea   : > { %v4646_v31 = vpop.eup %4645  ;;  %v3811_v42 = vmul.f32 %v9200_v8, %v9193_v10  ;;  %vm3816_vm10 = vweird.f32 %v9200_v8 }
 0x7eb   : > { %v9208_v61 = vadd.f32 1.0, %v4646_v31  ;;  %vm9251_vm4 = vmor %vm3815_vm14, %vm3816_vm10 }
 0x7ec   : > { %v3812_v29 = vsub.f32 1.0, %v3811_v42 }
 0x7ed   : > { %v3561_v35 = vpop.xlane.xlu2 %3560  ;;  %vm3770_vm11 = vweird.f32 %v9208_v61 }
 0x7ee   : > { %v3813_v47 = vmul.f32 %v9200_v8, %v3812_v29  ;;  %v3789_v29 = vand.u32 2147483647, %v9202_v24 }
 0x7ef   : > { %v3559_v62 = vpop.xlane.xlu1 %3558 }
 0x7f0   : > { %v3614_v60 = vadd.f32 %v9188_v25, %v3559_v62  ;;  %v3563_v1 = vpop.xlane.xlu0 %3562  ;;  %vm9268_vm5 = vcmp.eq.f32.partialorder %v3789_v29, 8.507059e+37 }
 0x7f1   : > { %v3616_v57 = vadd.f32 %v9188_v25, %v3563_v1 }
 0x82b   : > { %v3414_v46 = vpop.f32.mrf.mxu0 }
 0x82c   : > { %v3415_v58 = vadd.f32 %v3414_v46, %v718_v37  ;;  %v3611_v37 = vadd.f32 %v9188_v25, %v3553_v48  ;;  %v4571_v46 = vmul.f32 -1.442695, %v3610_v26  ;;  %v3814_v26 = vadd.f32 %v9200_v8, %v3813_v47 }
 0x82d   : > { %v4574_v47 = vmul.f32 -1.442695, %v3613_v18  ;;  %v3567_v18 = vpop.xlane.xlu2 %3566 }
 0x82e   : > { %v3417_v40 = vmax.f32 %v3415_v58, 0.0  ;;  %v4573_v58 = vmul.f32 -1.442695, %v3612_v39  ;;  %v4572_v59 = vmul.f32 -1.442695, %v3611_v37  ;;  %4653 = vpow2.f32 %v4571_v46 }
 0x82f   : > { %v3615_v46 = vadd.f32 %v9188_v25, %v3561_v35 }
 0x830   : > { %3451 = vmatmul.f32.vlgmr.msra.gmra.mxu1 %v3417_v40  ;;  %v4648_v40 = vpop.eup %4647  ;;  %4655 = vpow2.f32 %v4573_v58  ;;  %v3821_v58 = vand.u32 2147483648, %v9193_v10 }
 0x831   : > { %v9210_v53 = vadd.f32 1.0, %v4648_v40  ;;  %4657 = vrcp.f32 %v9208_v61  ;;  %v4650_v7 = vpop.eup %4649  ;;  %v3791_v40 = vand.u32 2147483648, %v9202_v24 }
 0x832   : > { %4659 = vpow2.f32 %v4572_v59  ;;  %v9213_v0 = vpop.eup %4651  ;;  %v9219_v33 = vadd.f32 1.0, %v4650_v7  ;;  %v3776_v7 = vand.u32 2147483648, %v9208_v61  ;;  %v3822_v17 = vor.u32 1.1754944e-38, %v3821_v58  ;;  %v3565_v58 = vpop.xlane.xlu1 %3564 }
 0x833   : > { %4661 = vrcp.f32 %v9210_v53  ;;  %v3781_v32 = vmul.f32 %v9213_v0, %v9202_v24  ;;  %v3792_v54 = vor.u32 1.1754944e-38, %v3791_v40  ;;  %vm3786_vm7 = vweird.f32 %v9213_v0 }
 0x834   : > { %v4654_v2 = vpop.eup %4653  ;;  %4663 = vrcp.f32 %v9219_v33  ;;  %vm3830_vm15 = vweird.f32 %v9210_v53  ;;  %v3836_v59 = vand.u32 2147483648, %v9210_v53  ;;  %v3834_v1 = vand.u32 2147483647, %v9210_v53  ;;  %vm9306_vm8 = vmor %vm3785_vm1, %vm3786_vm7 }
 0x835   : > { %v9224_v9 = vadd.f32 1.0, %v4654_v2  ;;  %v3782_v31 = vsub.f32 1.0, %v3781_v32  ;;  %vm3800_vm3 = vweird.f32 %v9219_v33 }
 0x836   : > { %v4656_v13 = vpop.eup %4655  ;;  %v3837_v55 = vor.u32 1.1754944e-38, %v3836_v59  ;;  %vm9322_vm2 = vcmp.eq.f32.partialorder %v3834_v1, 8.507059e+37 }
 0x837   : > { %v9221_v20 = vpop.eup %4657  ;;  %v9228_v48 = vadd.f32 1.0, %v4656_v13  ;;  %4665 = vrcp.f32 %v9224_v9  ;;  %v3818_v13 = vsel %vm9251_vm4, %v9200_v8, %v3814_v26  ;;  %v3783_v32 = vmul.f32 %v9213_v0, %v3782_v31 }
 0x838   : > { %v4660_v41 = vpop.eup %4659  ;;  %v3766_v37 = vmul.f32 %v9221_v20, %v9208_v61  ;;  %v3774_v8 = vand.u32 2147483647, %v9208_v61  ;;  %v9274_v26 = vor.u32 1.1754944e-38, %v3776_v7  ;;  %v3823_v31 = vsel %vm9242_vm9, %v3822_v17, %v3818_v13  ;;  %v3569_v61 = vpop.xlane.xlu0 %3568 }
 0x839   : > { %v9231_v39 = vpop.eup %4661  ;;  %v9240_v42 = vadd.f32 1.0, %v4660_v41  ;;  %4667 = vrcp.f32 %v9228_v48  ;;  %v4576_v41 = vmul.f32 -1.442695, %v3615_v46  ;;  %v4575_v46 = vmul.f32 -1.442695, %v3614_v60 }
 0x83a   : > { %v3826_v10 = vmul.f32 %v9231_v39, %v9210_v53  ;;  %v3767_v35 = vsub.f32 1.0, %v3766_v37  ;;  %v9265_v28 = vpop.eup %4663  ;;  %v3784_v29 = vadd.f32 %v9213_v0, %v3783_v32  ;;  %vm9293_vm6 = vcmp.eq.f32.partialorder %v3774_v8, 8.507059e+37 }
 0x83b   : > { %4669 = vrcp.f32 %v9240_v42  ;;  %v3796_v7 = vmul.f32 %v9265_v28, %v9219_v33  ;;  %v3806_v13 = vand.u32 2147483648, %v9219_v33  ;;  %v3617_v32 = vadd.f32 %v9188_v25, %v3565_v58 }
 0x83c   : > { %v3827_v37 = vsub.f32 1.0, %v3826_v10  ;;  %4671 = vpow2.f32 %v4574_v47  ;;  %v3768_v2 = vmul.f32 %v9221_v20, %v3767_v35  ;;  %v3618_v10 = vadd.f32 %v9188_v25, %v3567_v18 }
 0x83d   : > { %v9278_v40 = vpop.eup %4665  ;;  %4673 = vpow2.f32 %v4576_v41  ;;  %v9291_v47 = vmul.f32 %v3823_v31, %v8813_v21  ;;  %vm3771_vm12 = vweird.f32 %v9221_v20  ;;  %v3788_v18 = vsel %vm9306_vm8, %v9213_v0, %v3784_v29 }
 0x83e   : > { %v3828_v17 = vmul.f32 %v9231_v39, %v3827_v37  ;;  %v3841_v8 = vmul.f32 %v9278_v40, %v9224_v9  ;;  %4675 = vpow2.f32 %v4575_v46  ;;  %v3769_v31 = vadd.f32 %v9221_v20, %v3768_v2  ;;  %vm9336_vm13 = vmor %vm3770_vm11, %vm3771_vm12  ;;  %v3571_v46 = vpop.xlane.xlu1 %3570 }
 0x83f   : > { %v9283_v38 = vpop.eup %4667  ;;  %11095 = vst [vmem:[#allocation16_spill] sm:$0xff] %v9291_v47  ;;  %v4577_v58 = vmul.f32 -1.442695, %v3616_v57  ;;  %v3797_v22 = vsub.f32 1.0, %v3796_v7  ;;  %v3804_v21 = vand.u32 2147483647, %v9219_v33  ;;  %vm3831_vm0 = vweird.f32 %v9231_v39 }
 0x840   : > { %v3871_v24 = vmul.f32 %v9283_v38, %v9228_v48  ;;  %v4579_v37 = vmul.f32 -1.442695, %v3618_v10  ;;  %v9326_v0 = vor.u32 1.1754944e-38, %v3806_v13  ;;  %v4578_v2 = vmul.f32 -1.442695, %v3617_v32  ;;  %vm9360_vm14 = vmor %vm3830_vm15, %vm3831_vm0 }
 0x841   : > { %v9300_v35 = vpop.eup %4669  ;;  %v3793_v57 = vsel %vm9268_vm5, %v3792_v54, %v3788_v18  ;;  %v3829_v7 = vadd.f32 %v9231_v39, %v3828_v17  ;;  %v3842_v10 = vsub.f32 1.0, %v3841_v8  ;;  %v3849_v1 = vand.u32 2147483647, %v9224_v9  ;;  %v3573_v8 = vpop.xlane.xlu2 %3572 }
 0x842   : > { %v4672_v47 = vpop.eup %4671  ;;  %v3856_v29 = vmul.f32 %v9300_v35, %v9240_v42  ;;  %v3773_v62 = vsel %vm9336_vm13, %v9221_v20, %v3769_v31  ;;  %v3872_v54 = vsub.f32 1.0, %v3871_v24  ;;  %4677 = vpow2.f32 %v4577_v58 }
 0x843   : > { %v4674_v49 = vpop.eup %4673  ;;  %v9346_v13 = vadd.f32 1.0, %v4672_v47  ;;  %v3798_v41 = vmul.f32 %v9265_v28, %v3797_v22  ;;  %vm3845_vm10 = vweird.f32 %v9224_v9  ;;  %v3851_v17 = vand.u32 2147483648, %v9224_v9 }
 0x844   : > { %v4676_v32 = vpop.eup %4675  ;;  %v9351_v18 = vadd.f32 1.0, %v4674_v49  ;;  %4679 = vpow2.f32 %v4579_v37  ;;  %v9354_v5 = vmul.f32 %v3793_v57, %v8842_v11  ;;  %vm3801_vm9 = vweird.f32 %v9265_v28 }
 0x845   : > { %vm3875_vm4 = vweird.f32 %v9228_v48  ;;  %v3857_v22 = vsub.f32 1.0, %v3856_v29  ;;  %4681 = vpow2.f32 %v4578_v2  ;;  %v3778_v49 = vsel %vm9293_vm6, %v9274_v26, %v3773_v62  ;;  %vm9403_vm15 = vmor %vm3800_vm3, %vm3801_vm9 }
 0x846   : > { %11104 = vst [vmem:[#allocation20_spill] sm:$0xff] %v9354_v5  ;;  %v3833_v47 = vsel %vm9360_vm14, %v9231_v39, %v3829_v7  ;;  %v3843_v53 = vmul.f32 %v9278_v40, %v3842_v10  ;;  %v3619_v31 = vadd.f32 %v9188_v25, %v3569_v61  ;;  %vm9374_vm1 = vcmp.eq.f32.partialorder %v3804_v21, 8.507059e+37  ;;  %v3577_v9 = vpop.xlane.xlu1 %3576 }
 0x847   : > { %v3873_v58 = vmul.f32 %v9283_v38, %v3872_v54  ;;  %4683 = vrcp.f32 %v9346_v13  ;;  %v9380_v37 = vadd.f32 1.0, %v4676_v32  ;;  %v3621_v26 = vadd.f32 %v9188_v25, %v3573_v8 }
 0x848   : > { %v3799_v60 = vadd.f32 %v9265_v28, %v3798_v41  ;;  %v3879_v39 = vand.u32 2147483647, %v9228_v48  ;;  %v3881_v29 = vand.u32 2147483648, %v9228_v48  ;;  %4685 = vrcp.f32 %v9351_v18  ;;  %v4678_v21 = vpop.eup %4677 }
 0x849   : > { %v9388_v2 = vmul.f32 %v3778_v49, %v8839_v15  ;;  %vm9390_vm7 = vcmp.eq.f32.partialorder %v3849_v1, 8.507059e+37  ;;  %v3852_v59 = vor.u32 1.1754944e-38, %v3851_v17  ;;  %v3858_v7 = vmul.f32 %v9300_v35, %v3857_v22  ;;  %v3579_v1 = vpop.xlane.xlu2 %3578 }
 0x84a   : > { %v4680_v10 = vpop.eup %4679  ;;  %v3838_v62 = vsel %vm9322_vm2, %v3837_v55, %v3833_v47  ;;  %vm3846_vm5 = vweird.f32 %v9278_v40  ;;  %vm3876_vm11 = vweird.f32 %v9283_v38  ;;  %v4580_v54 = vmul.f32 -1.442695, %v3619_v31 }
 0x84b   : > { %11109 = vst [vmem:[#allocation21_spill] sm:$0xff] %v9388_v2  ;;  %v4682_v61 = vpop.eup %4681  ;;  %v3844_v32 = vadd.f32 %v9278_v40, %v3843_v53  ;;  %v3874_v41 = vadd.f32 %v9283_v38, %v3873_v58  ;;  %4687 = vrcp.f32 %v9380_v37  ;;  %v4582_v55 = vmul.f32 -1.442695, %v3621_v26  ;;  %vm9425_vm8 = vmor %vm3845_vm10, %vm3846_vm5 }
 0x84c   : > { %v3803_v17 = vsel %vm9403_vm15, %v9265_v28, %v3799_v60  ;;  %vm9413_vm6 = vcmp.eq.f32.partialorder %v3879_v39, 8.507059e+37  ;;  %v3882_v33 = vor.u32 1.1754944e-38, %v3881_v29  ;;  %v9417_v20 = vadd.f32 1.0, %v4678_v21  ;;  %vm9443_vm0 = vmor %vm3875_vm4, %vm3876_vm11 }
 0x84d   : > { %v9419_v22 = vpop.eup %4683  ;;  %v3859_v47 = vadd.f32 %v9300_v35, %v3858_v7  ;;  %vm3861_vm12 = vweird.f32 %v9300_v35  ;;  %v3866_v28 = vand.u32 2147483648, %v9240_v42  ;;  %v9432_v53 = vadd.f32 1.0, %v4680_v10  ;;  %v3575_v10 = vpop.xlane.xlu0 %3574 }
 0x84e   : > { %v9434_v31 = vpop.eup %4685  ;;  %v9437_v58 = vmul.f32 %v3838_v62, %v8854_v4  ;;  %vm3860_vm2 = vweird.f32 %v9240_v42  ;;  %v9448_v26 = vadd.f32 1.0, %v4682_v61  ;;  %4689 = vpow2.f32 %v4580_v54 }
 0x84f   : > { %v3848_v60 = vsel %vm9425_vm8, %v9278_v40, %v3844_v32  ;;  %v3878_v39 = vsel %vm9443_vm0, %v9283_v38, %v3874_v41  ;;  %v3864_v29 = vand.u32 2147483647, %v9240_v42  ;;  %4691 = vpow2.f32 %v4582_v55  ;;  %vm9460_vm13 = vmor %vm3860_vm2, %vm3861_vm12 }
 0x850   : > { %11118 = vst [vmem:[#allocation19_spill] sm:$0xff] %v9437_v58  ;;  %v3808_v48 = vsel %vm9374_vm1, %v9326_v0, %v3803_v17  ;;  %v3886_v7 = vmul.f32 %v9419_v22, %v9346_v13  ;;  %4693 = vrcp.f32 %v9417_v20  ;;  %v3620_v40 = vadd.f32 %v9188_v25, %v3571_v46 }
 0x851   : > { %v9468_v38 = vpop.eup %4687  ;;  %v3863_v42 = vsel %vm9460_vm13, %v9300_v35, %v3859_v47  ;;  %v3867_v24 = vor.u32 1.1754944e-38, %v3866_v28  ;;  %v3916_v0 = vmul.f32 %v9434_v31, %v9351_v18  ;;  %4695 = vrcp.f32 %v9432_v53 }
 0x852   : > { %v3853_v62 = vsel %vm9390_vm7, %v3852_v59, %v3848_v60  ;;  %v3883_v54 = vsel %vm9413_vm6, %v3882_v33, %v3878_v39  ;;  %v3896_v61 = vand.u32 2147483648, %v9346_v13  ;;  %4697 = vrcp.f32 %v9448_v26 }
 0x853   : > { %v9483_v32 = vmul.f32 %v3808_v48, %v8847_v44  ;;  %vm3865_vm3 = vcmp.eq.f32.partialorder %v3864_v29, 8.507059e+37  ;;  %v3926_v35 = vand.u32 2147483648, %v9351_v18  ;;  %v3622_v41 = vadd.f32 %v9188_v25, %v3575_v10 }
 0x854   : > { %v4690_v55 = vpop.eup %4689  ;;  %v3868_v46 = vsel %vm3865_vm3, %v3867_v24, %v3863_v42  ;;  %v3887_v57 = vsub.f32 1.0, %v3886_v7  ;;  %v3901_v59 = vmul.f32 %v9468_v38, %v9380_v37  ;;  %v4581_v17 = vmul.f32 -1.442695, %v3620_v40 }
 0x855   : > { %11123 = vst [vmem:[#allocation23_spill] sm:$0xff] %v9483_v32  ;;  %v4692_v8 = vpop.eup %4691  ;;  %v9490_v33 = vmul.f32 %v3853_v62, %v8874_v63  ;;  %v9493_v49 = vmul.f32 %v3883_v54, %v8885_v3  ;;  %v3917_v47 = vsub.f32 1.0, %v3916_v0  ;;  %v3624_v28 = vadd.f32 %v9188_v25, %v3579_v1 }
 0x856   : > { %v9496_v60 = vpop.eup %4693  ;;  %vm3890_vm10 = vweird.f32 %v9346_v13  ;;  %v3894_v39 = vand.u32 2147483647, %v9346_v13  ;;  %v9500_v29 = vor.u32 1.1754944e-38, %v3896_v61  ;;  %v3924_v48 = vand.u32 2147483647, %v9351_v18 }
 0x857   : > { %11124 = vst [vmem:[#allocation24_spill] sm:$0xff] %v9490_v33  ;;  %v9503_v21 = vpop.eup %4695  ;;  %v9506_v7 = vmul.f32 %v3868_v46, %v8880_v27  ;;  %vm3920_vm14 = vweird.f32 %v9351_v18  ;;  %v9509_v40 = vor.u32 1.1754944e-38, %v3926_v35  ;;  %v9511_v10 = vadd.f32 1.0, %v4690_v55 }
 0x858   : > { %11125 = vst [vmem:[#allocation22_spill] sm:$0xff] %v9493_v49  ;;  %v4583_v42 = vmul.f32 -1.442695, %v3622_v41  ;;  %v9513_v24 = vpop.eup %4697  ;;  %v3888_v0 = vmul.f32 %v9419_v22, %v3887_v57  ;;  %v3902_v62 = vsub.f32 1.0, %v3901_v59  ;;  %4699 = vpow2.f32 %v4581_v17 }
 0x859   : > { %11126 = vst [vmem:[#allocation26_spill] sm:$0xff] %v9506_v7  ;;  %v3623_v54 = vadd.f32 %v9188_v25, %v3577_v9  ;;  %v3918_v61 = vmul.f32 %v9434_v31, %v3917_v47  ;;  %v3909_v1 = vand.u32 2147483647, %v9380_v37  ;;  %v3931_v46 = vmul.f32 %v9496_v60, %v9417_v20  ;;  %v3581_v9 = vpop.xlane.xlu0 %3580 }
 0x85a   : > { %v4585_v35 = vmul.f32 -1.442695, %v3624_v28  ;;  %vm3891_vm9 = vweird.f32 %v9419_v22  ;;  %vm9522_vm4 = vcmp.eq.f32.partialorder %v3894_v39, 8.507059e+37  ;;  %vm3921_vm1 = vweird.f32 %v9434_v31 }
 0x85b   : > { %vm3905_vm7 = vweird.f32 %v9380_v37  ;;  %v3911_v55 = vand.u32 2147483648, %v9380_v37  ;;  %v3961_v57 = vmul.f32 %v9503_v21, %v9432_v53  ;;  %vm9531_vm5 = vcmp.eq.f32.partialorder %v3924_v48, 8.507059e+37  ;;  %vm9551_vm11 = vmor %vm3890_vm10, %vm3891_vm9 }
 0x85c   : > { %v3941_v17 = vand.u32 2147483648, %v9417_v20  ;;  %v3946_v47 = vmul.f32 %v9513_v24, %v9448_v26  ;;  %4701 = vrcp.f32 %v9511_v10  ;;  %v9539_v28 = vadd.f32 1.0, %v4692_v8  ;;  %vm9570_vm12 = vmor %vm3920_vm14, %vm3921_vm1 }
 0x85d   : > { %v3889_v39 = vadd.f32 %v9419_v22, %v3888_v0  ;;  %v3903_v49 = vmul.f32 %v9468_v38, %v3902_v62  ;;  %4703 = vpow2.f32 %v4583_v42  ;;  %v4584_v7 = vmul.f32 -1.442695, %v3623_v54 }
 0x85e   : > { %v3919_v48 = vadd.f32 %v9434_v31, %v3918_v61  ;;  %v3932_v33 = vsub.f32 1.0, %v3931_v46  ;;  %v3971_v58 = vand.u32 2147483648, %v9432_v53  ;;  %4705 = vpow2.f32 %v4585_v35  ;;  %v4700_v3 = vpop.eup %4699 }
 0x85f   : > { %v3912_v32 = vor.u32 1.1754944e-38, %v3911_v55  ;;  %v3939_v5 = vand.u32 2147483647, %v9417_v20  ;;  %v3962_v2 = vsub.f32 1.0, %v3961_v57  ;;  %v3625_v8 = vadd.f32 %v9188_v25, %v3581_v9 }
 0x860   : > { %vm3906_vm15 = vweird.f32 %v9468_v38  ;;  %vm9556_vm6 = vcmp.eq.f32.partialorder %v3909_v1, 8.507059e+37  ;;  %vm3935_vm8 = vweird.f32 %v9417_v20  ;;  %v3969_v62 = vand.u32 2147483647, %v9432_v53 }
 0x861   : > { %v3947_v54 = vsub.f32 1.0, %v3946_v47  ;;  %4707 = vrcp.f32 %v9539_v28  ;;  %v3893_v13 = vsel %vm9551_vm11, %v9419_v22, %v3889_v39  ;;  %v3904_v1 = vadd.f32 %v9468_v38, %v3903_v49  ;;  %v3585_v47 = vpop.xlane.xlu2 %3584  ;;  %vm9596_vm13 = vmor %vm3905_vm7, %vm3906_vm15  ;;  %v3587_v61 = vpop.xlane.xlu0 %3586 }
 0x862   : > { %v9575_v46 = vor.u32 1.1754944e-38, %v3941_v17  ;;  %vm3965_vm0 = vweird.f32 %v9432_v53  ;;  %4709 = vpow2.f32 %v4584_v7  ;;  %v9578_v35 = vpop.eup %4701  ;;  %v3923_v22 = vsel %vm9570_vm12, %v9434_v31, %v3919_v48 }
 0x863   : > { %v3933_v55 = vmul.f32 %v9496_v60, %v3932_v33  ;;  %v3972_v18 = vor.u32 1.1754944e-38, %v3971_v58  ;;  %v9584_v57 = vadd.f32 1.0, %v4700_v3  ;;  %v4704_v9 = vpop.eup %4703  ;;  %v3963_v49 = vmul.f32 %v9503_v21, %v3962_v2 }
 0x864   : > { %vm3950_vm2 = vweird.f32 %v9448_v26  ;;  %v3954_v17 = vand.u32 2147483647, %v9448_v26  ;;  %v4586_v7 = vmul.f32 -1.442695, %v3625_v8  ;;  %v4706_v39 = vpop.eup %4705  ;;  %v3898_v42 = vsel %vm9522_vm4, %v9500_v29, %v3893_v13 }
 0x865   : > { %vm3936_vm3 = vweird.f32 %v9496_v60  ;;  %vm9601_vm10 = vcmp.eq.f32.partialorder %v3939_v5, 8.507059e+37  ;;  %v3948_v31 = vmul.f32 %v9513_v24, %v3947_v54  ;;  %v3956_v58 = vand.u32 2147483648, %v9448_v26 }
 0x866   : > { %v3928_v33 = vsel %vm9531_vm5, %v9509_v40, %v3923_v22  ;;  %v3908_v37 = vsel %vm9596_vm13, %v9468_v38, %v3904_v1  ;;  %vm3966_vm14 = vweird.f32 %v9503_v21  ;;  %vm9614_vm9 = vcmp.eq.f32.partialorder %v3969_v62, 8.507059e+37  ;;  %v3583_v38 = vpop.xlane.xlu1 %3582  ;;  %vm9648_vm7 = vmor %vm3935_vm8, %vm3936_vm3 }
 0x867   : > { %v3627_v5 = vadd.f32 %v9188_v25, %v3585_v47  ;;  %v9619_v41 = vpop.eup %4707  ;;  %v3934_v48 = vadd.f32 %v9496_v60, %v3933_v55  ;;  %v3976_v59 = vmul.f32 %v9578_v35, %v9511_v10  ;;  %4711 = vrcp.f32 %v9584_v57  ;;  %vm9662_vm5 = vmor %vm3965_vm0, %vm3966_vm14 }
 0x868   : > { %v9625_v40 = vadd.f32 1.0, %v4704_v9  ;;  %v4710_v8 = vpop.eup %4709  ;;  %v9628_v62 = vmul.f32 %v3898_v42, %v8896_v30  ;;  %v3964_v54 = vadd.f32 %v9503_v21, %v3963_v49  ;;  %v9631_v13 = vadd.f32 1.0, %v4706_v39 }
 0x869   : > { %4713 = vpow2.f32 %v4586_v7  ;;  %v9634_v1 = vmul.f32 %v3928_v33, %v8920_v34  ;;  %v3949_v22 = vadd.f32 %v9513_v24, %v3948_v31  ;;  %vm3951_vm4 = vweird.f32 %v9513_v24 }
 0x86a   : > { %vm9638_vm1 = vcmp.eq.f32.partialorder %v3954_v17, 8.507059e+37  ;;  %v3913_v47 = vsel %vm9556_vm6, %v3912_v32, %v3908_v37  ;;  %v3986_v49 = vand.u32 2147483648, %v9511_v10  ;;  %v4006_v7 = vmul.f32 %v9619_v41, %v9539_v28  ;;  %vm9674_vm11 = vmor %vm3950_vm2, %vm3951_vm4 }
 0x86b   : > { %v4588_v17 = vmul.f32 -1.442695, %v3627_v5  ;;  %v3938_v39 = vsel %vm9648_vm7, %v9496_v60, %v3934_v48  ;;  %v3977_v32 = vsub.f32 1.0, %v3976_v59  ;;  %4715 = vrcp.f32 %v9625_v40 }
 0x86c   : > { %v9667_v0 = vadd.f32 1.0, %v4710_v8  ;;  %v3968_v42 = vsel %vm9662_vm5, %v9503_v21, %v3964_v54  ;;  %v3957_v53 = vor.u32 1.1754944e-38, %v3956_v58  ;;  %4717 = vrcp.f32 %v9631_v13  ;;  %v3591_v8 = vpop.xlane.xlu2 %3590 }
 0x86d   : > { %v3626_v3 = vadd.f32 %v9188_v25, %v3583_v38  ;;  %v9680_v31 = vpop.eup %4711  ;;  %v9683_v33 = vmul.f32 %v3913_v47, %v8907_v56  ;;  %v3953_v21 = vsel %vm9674_vm11, %v9513_v24, %v3949_v22  ;;  %vm3980_vm15 = vweird.f32 %v9511_v10 }
 0x86e   : > { %v3984_v26 = vand.u32 2147483647, %v9511_v10  ;;  %v3943_v58 = vsel %vm9601_vm10, %v9575_v46, %v3938_v39  ;;  %v9693_v5 = vor.u32 1.1754944e-38, %v3986_v49  ;;  %v4007_v48 = vsub.f32 1.0, %v4006_v7  ;;  %v3589_v49 = vpop.xlane.xlu1 %3588 }
 0x86f   : > { %v4714_v37 = vpop.eup %4713  ;;  %4719 = vpow2.f32 %v4588_v17  ;;  %v3973_v59 = vsel %vm9614_vm9, %v3972_v18, %v3968_v42  ;;  %v3978_v38 = vmul.f32 %v9578_v35, %v3977_v32  ;;  %v4016_v24 = vand.u32 2147483648, %v9539_v28  ;;  %v3593_v32 = vpop.xlane.xlu0 %3592 }
 0x870   : > { %4721 = vrcp.f32 %v9667_v0  ;;  %v3958_v54 = vsel %vm9638_vm1, %v3957_v53, %v3953_v21  ;;  %v4014_v2 = vand.u32 2147483647, %v9539_v28  ;;  %v3991_v46 = vmul.f32 %v9680_v31, %v9584_v57 }
 0x871   : > { %v4587_v22 = vmul.f32 -1.442695, %v3626_v3  ;;  %v9705_v47 = vpop.eup %4715  ;;  %v9708_v18 = vmul.f32 %v3943_v58, %v8932_v12  ;;  %vm4010_vm6 = vweird.f32 %v9539_v28  ;;  %v9711_v29 = vadd.f32 1.0, %v4714_v37 }
 0x872   : > { %v3628_v9 = vadd.f32 %v9188_v25, %v3587_v61  ;;  %v9714_v55 = vpop.eup %4717  ;;  %v9717_v7 = vmul.f32 %v3973_v59, %v8950_v23  ;;  %vm3981_vm8 = vweird.f32 %v9578_v35  ;;  %vm9720_vm12 = vcmp.eq.f32.partialorder %v3984_v26, 8.507059e+37 }
 0x873   : > { %v4008_v39 = vmul.f32 %v9619_v41, %v4007_v48  ;;  %v3630_v20 = vadd.f32 %v9188_v25, %v3591_v8  ;;  %v9727_v42 = vmul.f32 %v3958_v54, %v8939_v19  ;;  %v3979_v61 = vadd.f32 %v9578_v35, %v3978_v38  ;;  %vm9748_vm13 = vmor %vm3980_vm15, %vm3981_vm8 }
 0x874   : > { %11151 = vst [vmem:[#allocation27_spill] sm:$0xff] %v9717_v7  ;;  %vm4011_vm0 = vweird.f32 %v9619_v41  ;;  %v4017_v60 = vor.u32 1.1754944e-38, %v4016_v24  ;;  %vm9731_vm2 = vcmp.eq.f32.partialorder %v4014_v2, 8.507059e+37  ;;  %v3992_v21 = vsub.f32 1.0, %v3991_v46 }
 0x875   : > { %v4720_v53 = vpop.eup %4719  ;;  %v4021_v26 = vmul.f32 %v9705_v47, %v9625_v40  ;;  %4723 = vpow2.f32 %v4587_v22  ;;  %v3629_v37 = vadd.f32 %v9188_v25, %v3589_v49  ;;  %v4051_v48 = vmul.f32 %v9714_v55, %v9631_v13  ;;  %vm9769_vm10 = vmor %vm4010_vm6, %vm4011_vm0 }
 0x876   : > { %v9738_v58 = vpop.eup %4721  ;;  %4725 = vrcp.f32 %v9711_v29  ;;  %v4589_v59 = vmul.f32 -1.442695, %v3628_v9  ;;  %v3631_v38 = vadd.f32 %v9188_v25, %v3593_v32  ;;  %v4009_v8 = vadd.f32 %v9619_v41, %v4008_v39 }
 0x877   : > { %v3999_v54 = vand.u32 2147483647, %v9584_v57  ;;  %v4001_v2 = vand.u32 2147483648, %v9584_v57  ;;  %v4591_v46 = vmul.f32 -1.442695, %v3630_v20  ;;  %v3983_v22 = vsel %vm9748_vm13, %v9578_v35, %v3979_v61 }
 0x878   : > { %vm3995_vm3 = vweird.f32 %v9584_v57  ;;  %v4029_v9 = vand.u32 2147483647, %v9625_v40  ;;  %v9760_v10 = vadd.f32 1.0, %v4720_v53  ;;  %v3993_v49 = vmul.f32 %v9680_v31, %v3992_v21 }
 0x879   : > { %v4022_v32 = vsub.f32 1.0, %v4021_v26  ;;  %v4036_v39 = vmul.f32 %v9738_v58, %v9667_v0  ;;  %v4590_v7 = vmul.f32 -1.442695, %v3629_v37  ;;  %v4031_v35 = vand.u32 2147483648, %v9625_v40 }
 0x87a   : > { %v4052_v61 = vsub.f32 1.0, %v4051_v48  ;;  %4727 = vpow2.f32 %v4589_v59  ;;  %v4592_v53 = vmul.f32 -1.442695, %v3631_v38  ;;  %v4013_v21 = vsel %vm9769_vm10, %v9619_v41, %v4009_v8 }
 0x87b   : > { %v4724_v24 = vpop.eup %4723  ;;  %vm9777_vm14 = vcmp.eq.f32.partialorder %v3999_v54, 8.507059e+37  ;;  %v4002_v37 = vor.u32 1.1754944e-38, %v4001_v2  ;;  %vm4025_vm9 = vweird.f32 %v9625_v40  ;;  %4729 = vpow2.f32 %v4591_v46 }
 0x87c   : > { %v9782_v28 = vpop.eup %4725  ;;  %v3988_v48 = vsel %vm9720_vm12, %v9693_v5, %v3983_v22  ;;  %vm3996_vm4 = vweird.f32 %v9680_v31  ;;  %v4059_v59 = vand.u32 2147483647, %v9631_v13  ;;  %4731 = vrcp.f32 %v9760_v10 }
 0x87d   : > { %v3994_v41 = vadd.f32 %v9680_v31, %v3993_v49  ;;  %v4023_v38 = vmul.f32 %v9705_v47, %v4022_v32  ;;  %v4037_v8 = vsub.f32 1.0, %v4036_v39  ;;  %4733 = vpow2.f32 %v4590_v7  ;;  %vm9811_vm7 = vmor %vm3995_vm3, %vm3996_vm4 }
 0x87e   : > { %v4018_v54 = vsel %vm9731_vm2, %v4017_v60, %v4013_v21  ;;  %v4053_v2 = vmul.f32 %v9714_v55, %v4052_v61  ;;  %v4061_v17 = vand.u32 2147483648, %v9631_v13  ;;  %4735 = vpow2.f32 %v4592_v53  ;;  %v719_v61 = vld [vmem:[%s10451_s4 + $0x5] sm:$0x1] }
 0x87f   : > { %vm9796_vm1 = vcmp.eq.f32.partialorder %v4029_v9, 8.507059e+37  ;;  %v4032_v46 = vor.u32 1.1754944e-38, %v4031_v35  ;;  %v4066_v22 = vmul.f32 %v9782_v28, %v9711_v29  ;;  %v9802_v49 = vadd.f32 1.0, %v4724_v24 }
 0x880   : > { %v4728_v32 = vpop.eup %4727  ;;  %v9805_v7 = vmul.f32 %v3988_v48, %v8963_v45  ;;  %vm4026_vm5 = vweird.f32 %v9705_v47  ;;  %vm4055_vm11 = vweird.f32 %v9631_v13  ;;  %v4044_v3 = vand.u32 2147483647, %v9667_v0  ;;  %v3597_v13 = vpop.xlane.xlu2 %3596 }
 0x881   : > { %v4730_v9 = vpop.eup %4729  ;;  %v9819_v39 = vmul.f32 %v4018_v54, %v8985_v51  ;;  %v3998_v20 = vsel %vm9811_vm7, %v9680_v31, %v3994_v41  ;;  %v4024_v57 = vadd.f32 %v9705_v47, %v4023_v38  ;;  %v4038_v35 = vmul.f32 %v9738_v58, %v4037_v8  ;;  %vm9847_vm8 = vmor %vm4025_vm9, %vm4026_vm5 }
 0x882   : > { %11164 = vst [vmem:[#allocation25_spill] sm:$0xff] %v9805_v7  ;;  %v9829_v53 = vpop.eup %4731  ;;  %v4054_v24 = vadd.f32 %v9714_v55, %v4053_v2  ;;  %vm4056_vm15 = vweird.f32 %v9714_v55  ;;  %vm9833_vm6 = vcmp.eq.f32.partialorder %v4059_v59, 8.507059e+37  ;;  %v4062_v48 = vor.u32 1.1754944e-38, %v4061_v17 }
 0x883   : > { %11167 = vst [vmem:[#allocation29_spill] sm:$0xff] %v9819_v39  ;;  %v4734_v31 = vpop.eup %4733  ;;  %v4046_v41 = vand.u32 2147483648, %v9667_v0  ;;  %v4067_v38 = vsub.f32 1.0, %v4066_v22  ;;  %4737 = vrcp.f32 %v9802_v49  ;;  %v9839_v8 = vadd.f32 1.0, %v4728_v32  ;;  %vm9863_vm2 = vmor %vm4055_vm11, %vm4056_vm15 }
 0x884   : > { %v4736_v60 = vpop.eup %4735  ;;  %v4003_v2 = vsel %vm9777_vm14, %v4002_v37, %v3998_v20  ;;  %vm4040_vm12 = vweird.f32 %v9667_v0  ;;  %vm9852_vm0 = vcmp.eq.f32.partialorder %v4044_v3, 8.507059e+37  ;;  %v4028_v26 = vsel %vm9847_vm8, %v9705_v47, %v4024_v57  ;;  %v3595_v3 = vpop.xlane.xlu1 %3594 }
 0x885   : > { %v4039_v37 = vadd.f32 %v9738_v58, %v4038_v35  ;;  %vm4041_vm13 = vweird.f32 %v9738_v58  ;;  %v9869_v32 = vadd.f32 1.0, %v4730_v9  ;;  %v4058_v20 = vsel %vm9863_vm2, %v9714_v55, %v4054_v24  ;;  %v3599_v24 = vpop.xlane.xlu0 %3598 }
 0x886   : > { %v4096_v47 = vmul.f32 %v9829_v53, %v9760_v10  ;;  %v9876_v57 = vadd.f32 1.0, %v4734_v31  ;;  %v4068_v59 = vmul.f32 %v9782_v28, %v4067_v38  ;;  %4739 = vrcp.f32 %v9839_v8  ;;  %vm9889_vm3 = vmor %vm4040_vm12, %vm4041_vm13 }
 0x887   : > { %v9880_v35 = vadd.f32 1.0, %v4736_v60  ;;  %v9883_v9 = vmul.f32 %v4003_v2, %v8975_v43  ;;  %v4033_v55 = vsel %vm9796_vm1, %v4032_v46, %v4028_v26  ;;  %v4074_v31 = vand.u32 2147483647, %v9711_v29 }
 0x888   : > { %v4063_v38 = vsel %vm9833_vm6, %v4062_v48, %v4058_v20  ;;  %v4043_v60 = vsel %vm9889_vm3, %v9738_v58, %v4039_v37  ;;  %v4076_v5 = vand.u32 2147483648, %v9711_v29  ;;  %v4097_v0 = vsub.f32 1.0, %v4096_v47 }
 0x889   : > { %11176 = vst [vmem:[#allocation30_spill] sm:$0xff] %v9883_v9  ;;  %v4106_v46 = vand.u32 2147483648, %v9760_v10  ;;  %v4091_v2 = vand.u32 2147483648, %v9802_v49  ;;  %v4069_v21 = vadd.f32 %v9782_v28, %v4068_v59  ;;  %vm4071_vm10 = vweird.f32 %v9782_v28 }
 0x88a   : > { %vm4070_vm14 = vweird.f32 %v9711_v29  ;;  %vm9915_vm9 = vcmp.eq.f32.partialorder %v4074_v31, 8.507059e+37  ;;  %v9924_v37 = vmul.f32 %v4063_v38, %v9021_v50  ;;  %v4077_v20 = vor.u32 1.1754944e-38, %v4076_v5 }
 0x88b   : > { %vm4100_vm4 = vweird.f32 %v9760_v10  ;;  %v4104_v17 = vand.u32 2147483647, %v9760_v10  ;;  %vm9928_vm1 = vmor %vm4070_vm14, %vm4071_vm10  ;;  %v4089_v59 = vand.u32 2147483647, %v9802_v49  ;;  %v3632_v5 = vadd.f32 %v9188_v25, %v3595_v3 }
 0x88c   : > { %11182 = vst [vmem:[#allocation32_spill] sm:$0xff] %v9924_v37  ;;  %v3601_v37 = vpop.xlane.xlu1 %3600  ;;  %vm4101_vm7 = vweird.f32 %v9829_v53  ;;  %v3633_v39 = vadd.f32 %v9188_v25, %v3597_v13  ;;  %v3634_v3 = vadd.f32 %v9188_v25, %v3599_v24  ;;  %vm4085_vm15 = vweird.f32 %v9802_v49 }
 0x88d   : > { %vm9954_vm5 = vcmp.eq.f32.partialorder %v4104_v17, 8.507059e+37  ;;  %v3635_v17 = vadd.f32 %v9188_v25, %v3601_v37  ;;  %v4593_v9 = vmul.f32 -1.442695, %v3632_v5  ;;  %vm9986_vm6 = vmor %vm4100_vm4, %vm4101_vm7  ;;  %v4151_v5 = vand.u32 2147483648, %v9869_v32 }
 0x88e   : > { %vm4115_vm12 = vweird.f32 %v9839_v8  ;;  %vm4145_vm2 = vweird.f32 %v9869_v32  ;;  %vm4130_vm13 = vweird.f32 %v9876_v57 }
 0x8ad   : > { %v3452_v54 = vpop.f32.mrf.mxu1 }
 0x8ae   : > { %v3453_v22 = vadd.f32 %v3452_v54, %v719_v61  ;;  %v4047_v54 = vor.u32 1.1754944e-38, %v4046_v41  ;;  %v9894_v41 = vpop.eup %4737 }
 0x8af   : > { %v4081_v26 = vmul.f32 %v9894_v41, %v9802_v49  ;;  %v9921_v40 = vpop.eup %4739  ;;  %vm4086_vm11 = vweird.f32 %v9894_v41 }
 0x8b0   : > { %v4565_v61 = vmul.f32 -1.442695, %v3453_v22  ;;  %v9907_v22 = vmul.f32 %v4033_v55, %v8996_v14  ;;  %v4048_v58 = vsel %vm9852_vm0, %v4047_v54, %v4043_v60  ;;  %v4107_v54 = vor.u32 1.1754944e-38, %v4106_v46  ;;  %vm10018_vm3 = vmor %vm4085_vm15, %vm4086_vm11  ;;  %v11211_v14 = vld [vmem:[#allocation20_spill] sm:$0xff] }
 0x8b1   : > { %v9934_v55 = vor.u32 1.1754944e-38, %v4091_v2  ;;  %v9939_v38 = vmul.f32 %v4048_v58, %v9009_v16  ;;  %v4073_v60 = vsel %vm9928_vm1, %v9782_v28, %v4069_v21  ;;  %v4082_v46 = vsub.f32 1.0, %v4081_v26  ;;  %v3603_v58 = vpop.xlane.xlu2 %3602 }
 0x8b2   : > { %4741 = vpow2.f32 %v4565_v61  ;;  %11179 = vst [vmem:[#allocation28_spill] sm:$0xff] %v9907_v22  ;;  %v4098_v61 = vmul.f32 %v9829_v53, %v4097_v0  ;;  %v4121_v2 = vand.u32 2147483648, %v9839_v8  ;;  %v4119_v28 = vand.u32 2147483647, %v9839_v8 }
 0x8b3   : > { %4743 = vrcp.f32 %v9869_v32  ;;  %11185 = vst [vmem:[#allocation33_spill] sm:$0xff] %v9939_v38  ;;  %v4078_v21 = vsel %vm9915_vm9, %v4077_v20, %v4073_v60  ;;  %v4111_v26 = vmul.f32 %v9921_v40, %v9839_v8  ;;  %v3636_v50 = vadd.f32 %v9188_v25, %v3603_v58 }
 0x8b4   : > { %4745 = vrcp.f32 %v9876_v57  ;;  %v4099_v13 = vadd.f32 %v9829_v53, %v4098_v61  ;;  %v4083_v48 = vmul.f32 %v9894_v41, %v4082_v46  ;;  %v9975_v20 = vor.u32 1.1754944e-38, %v4121_v2 }
 0x8b5   : > { %4747 = vrcp.f32 %v9880_v35  ;;  %v4594_v60 = vmul.f32 -1.442695, %v3633_v39  ;;  %v9980_v37 = vmul.f32 %v4078_v21, %v9031_v36  ;;  %v4149_v25 = vand.u32 2147483647, %v9869_v32 }
 0x8b6   : > { %v4595_v46 = vmul.f32 -1.442695, %v3634_v3  ;;  %v4103_v39 = vsel %vm9986_vm6, %v9829_v53, %v4099_v13  ;;  %v4112_v2 = vsub.f32 1.0, %v4111_v26  ;;  %vm4116_vm8 = vweird.f32 %v9921_v40 }
 0x8b7   : > { %11188 = vst [vmem:[#allocation31_spill] sm:$0xff] %v9980_v37  ;;  %v4596_v58 = vmul.f32 -1.442695, %v3635_v17  ;;  %v4597_v36 = vmul.f32 -1.442695, %v3636_v50  ;;  %v4084_v16 = vadd.f32 %v9894_v41, %v4083_v48  ;;  %vm9998_vm0 = vcmp.eq.f32.partialorder %v4089_v59, 8.507059e+37  ;;  %vm10051_vm15 = vmor %vm4115_vm12, %vm4116_vm8 }
 0x8b8   : > { %v4742_v47 = vpop.eup %4741  ;;  %v10004_v3 = vor.u32 1.1754944e-38, %v4151_v5  ;;  %v4134_v13 = vand.u32 2147483647, %v9876_v57  ;;  %v4108_v50 = vsel %vm9954_vm5, %v4107_v54, %v4103_v39  ;;  %vm10022_vm10 = vcmp.eq.f32.partialorder %v4119_v28, 8.507059e+37  ;;  %v11205_v28 = vld [vmem:[#allocation7_spill] sm:$0xff] }
 0x8b9   : > { %v9936_v31 = vpop.eup %4743  ;;  %v9945_v22 = vadd.f32 1.0, %v4742_v47  ;;  %v4088_v49 = vsel %vm10018_vm3, %v9894_v41, %v4084_v16  ;;  %vm10035_vm4 = vcmp.eq.f32.partialorder %v4149_v25, 8.507059e+37  ;;  %vm4160_vm12 = vweird.f32 %v9880_v35 }
 0x8ba   : > { %v9947_v0 = vpop.eup %4745  ;;  %v4141_v47 = vmul.f32 %v9936_v31, %v9869_v32  ;;  %vm4146_vm9 = vweird.f32 %v9936_v31  ;;  %v4164_v32 = vand.u32 2147483647, %v9880_v35 }
 0x8bb   : > { %v9952_v38 = vpop.eup %4747  ;;  %4749 = vrcp.f32 %v9945_v22  ;;  %v4126_v24 = vmul.f32 %v9947_v0, %v9876_v57  ;;  %vm4131_vm1 = vweird.f32 %v9947_v0  ;;  %vm3464_vm7 = vweird.f32 %v9945_v22  ;;  %vm10065_vm3 = vmor %vm4145_vm2, %vm4146_vm9 }
 0x8bc   : > { %v4156_v61 = vmul.f32 %v9952_v38, %v9880_v35  ;;  %v4142_v10 = vsub.f32 1.0, %v4141_v47  ;;  %4751 = vpow2.f32 %v4593_v9  ;;  %v4113_v9 = vmul.f32 %v9921_v40, %v4112_v2  ;;  %vm10079_vm8 = vmor %vm4130_vm13, %vm4131_vm1 }
 0x8bd   : > { %v4127_v37 = vsub.f32 1.0, %v4126_v24  ;;  %4753 = vpow2.f32 %v4594_v60  ;;  %v3470_v47 = vand.u32 2147483648, %v9945_v22  ;;  %v10029_v60 = vmul.f32 %v4108_v50, %v9055_v52 }
 0x8be   : > { %v4157_v7 = vsub.f32 1.0, %v4156_v61  ;;  %4755 = vpow2.f32 %v4595_v46  ;;  %v4143_v26 = vmul.f32 %v9936_v31, %v4142_v10  ;;  %v4114_v46 = vadd.f32 %v9921_v40, %v4113_v9 }
 0x8bf   : > { %4757 = vpow2.f32 %v4596_v58  ;;  %v4128_v17 = vmul.f32 %v9947_v0, %v4127_v37  ;;  %v4136_v37 = vand.u32 2147483648, %v9876_v57  ;;  %vm4161_vm5 = vweird.f32 %v9952_v38 }
 0x8c0   : > { %4759 = vpow2.f32 %v4597_v36  ;;  %v4158_v29 = vmul.f32 %v9952_v38, %v4157_v7  ;;  %v3468_v36 = vand.u32 2147483647, %v9945_v22  ;;  %v4144_v58 = vadd.f32 %v9936_v31, %v4143_v26 }
 0x8c1   : > { %v4750_v21 = vpop.eup %4749  ;;  %v4129_v16 = vadd.f32 %v9947_v0, %v4128_v17  ;;  %v3471_v41 = vor.u32 1.1754944e-38, %v3470_v47  ;;  %v4093_v9 = vsel %vm9998_vm0, %v9934_v55, %v4088_v49  ;;  %v4137_v24 = vor.u32 1.1754944e-38, %v4136_v37  ;;  %vm4162_vm0 = vmor %vm4160_vm12, %vm4161_vm5 }
 0x8c2   : > { %v3460_v53 = vmul.f32 %v4750_v21, %v9945_v22  ;;  %vm3465_vm14 = vweird.f32 %v4750_v21  ;;  %v4752_v61 = vpop.eup %4751  ;;  %v4159_v22 = vadd.f32 %v9952_v38, %v4158_v29  ;;  %vm3469_vm6 = vcmp.eq.f32.partialorder %v3468_v36, 8.507059e+37 }
 0x8c3   : > { %v4754_v5 = vpop.eup %4753  ;;  %vm3466_vm11 = vmor %vm3464_vm7, %vm3465_vm14  ;;  %v10056_v7 = vadd.f32 1.0, %v4752_v61  ;;  %v4148_v47 = vsel %vm10065_vm3, %v9936_v31, %v4144_v58  ;;  %vm4135_vm2 = vcmp.eq.f32.partialorder %v4134_v13, 8.507059e+37  ;;  %vm4165_vm13 = vcmp.eq.f32.partialorder %v4164_v32, 8.507059e+37 }
 0x8c4   : > { %v3461_v59 = vsub.f32 1.0, %v3460_v53  ;;  %v4756_v2 = vpop.eup %4755  ;;  %v10070_v26 = vadd.f32 1.0, %v4754_v5  ;;  %v4163_v29 = vsel %vm4162_vm0, %v9952_v38, %v4159_v22  ;;  %v4153_v36 = vsel %vm10035_vm4, %v10004_v3, %v4148_v47  ;;  %v11209_v22 = vld [vmem:[#allocation10_spill] sm:$0xff]  ;;  %v11212_v47 = vld [vmem:[#allocation23_spill] sm:$0xff] }
 0x8c5   : > { %v4758_v25 = vpop.eup %4757  ;;  %v10085_v55 = vadd.f32 1.0, %v4756_v2  ;;  %4761 = vrcp.f32 %v10056_v7  ;;  %v4181_v37 = vand.u32 2147483648, %v10056_v7  ;;  %v10122_v54 = vmul.f32 %v4093_v9, %v9042_v6  ;;  %v11207_v2 = vld [vmem:[#allocation3_spill] sm:$0xff] }
 0x8c6   : > { %v3462_v48 = vmul.f32 %v4750_v21, %v3461_v59  ;;  %v4760_v50 = vpop.eup %4759  ;;  %v4166_v59 = vand.u32 2147483648, %v9880_v35  ;;  %v10095_v57 = vadd.f32 1.0, %v4758_v25  ;;  %4763 = vrcp.f32 %v10070_v26 }
 0x8c7   : > { %v10099_v35 = vadd.f32 1.0, %v4760_v50  ;;  %4765 = vrcp.f32 %v10085_v55  ;;  %v4196_v49 = vand.u32 2147483648, %v10070_v26  ;;  %v10155_v9 = vor.u32 1.1754944e-38, %v4181_v37 }
 0x8c8   : > { %v3463_v39 = vadd.f32 %v4750_v21, %v3462_v48  ;;  %4767 = vrcp.f32 %v10095_v57  ;;  %vm4175_vm5 = vweird.f32 %v10056_v7 }
 0x8c9   : > { %4769 = vrcp.f32 %v10099_v35  ;;  %v10153_v50 = vor.u32 1.1754944e-38, %v4196_v49  ;;  %v4211_v49 = vand.u32 2147483648, %v10085_v55 }
 0x8ca   : > { %v3467_v53 = vsel %vm3466_vm11, %v4750_v21, %v3463_v39  ;;  %v4118_v21 = vsel %vm10051_vm15, %v9921_v40, %v4114_v46  ;;  %v4133_v40 = vsel %vm10079_vm8, %v9947_v0, %v4129_v16  ;;  %v4167_v0 = vor.u32 1.1754944e-38, %v4166_v59  ;;  %v11206_v46 = vld [vmem:[#allocation12_spill] sm:$0xff] }
 0x8cb   : > { %v3472_v17 = vsel %vm3469_vm6, %v3471_v41, %v3467_v53  ;;  %v4123_v31 = vsel %vm10022_vm10, %v9975_v20, %v4118_v21  ;;  %v4138_v61 = vsel %vm4135_vm2, %v4137_v24, %v4133_v40  ;;  %v10128_v39 = vmul.f32 %v4153_v36, %v11206_v46  ;;  %v10132_v16 = vpop.eup %4761  ;;  %v11214_v36 = vld [vmem:[#allocation16_spill] sm:$0xff] }
 0x8cc   : > { %v10101_v48 = vperm.slane %v3472_v17, 0  ;;  %v4168_v38 = vsel %vm4165_vm13, %v4167_v0, %v4163_v29  ;;  %v10125_v5 = vmul.f32 %v4123_v31, %v11205_v28  ;;  %v10141_v10 = vpop.eup %4763  ;;  %v11210_v17 = vld [vmem:[#allocation21_spill] sm:$0xff]  ;;  %v4171_v29 = vmul.f32 %v10132_v16, %v10056_v7 }
 0x8cd   : > { %v10151_v53 = vmul.f32 %v4168_v38, %v11209_v22  ;;  %v11213_v31 = vld [vmem:[#allocation5_spill] sm:$0xff]  ;;  %v4186_v38 = vmul.f32 %v10141_v10, %v10070_v26  ;;  %vm11216_vm10 = vcmask 64512   ;;  %vm4191_vm1 = vweird.f32 %v10141_v10 }
 0x8ce   : > { %v3475_v20 = vmul.f32 %v10101_v48, %v8839_v15  ;;  %v3476_v3 = vmul.f32 %v10101_v48, %v8842_v11  ;;  %v3477_v13 = vmul.f32 %v10101_v48, %v8847_v44  ;;  %v3478_v58 = vmul.f32 %v10101_v48, %v11207_v2  ;;  %v11208_v15 = vld [vmem:[#allocation11_spill] sm:$0xff]  ;;  %vm11218_vm14 = vmmov %vm11216_vm10 }
 0x8cf   : > { %v10135_v41 = vmul.f32 %v4138_v61, %v11208_v15  ;;  %v4194_v11 = vand.u32 2147483647, %v10070_v26  ;;  %v4179_v44 = vand.u32 2147483647, %v10056_v7  ;;  %v3479_v25 = vmul.f32 %v10101_v48, %v8854_v4  ;;  %v10159_v4 = vpop.eup %4765  ;;  %vm11220_vm9 = vmmov %vm11216_vm10 }
 0x8d0   : > { %v3480_v8 = vmul.f32 %v10101_v48, %v8874_v63  ;;  %v3481_v59 = vmul.f32 %v10101_v48, %v8880_v27  ;;  %v4277_v21 = vmax.f32 %v3475_v20, %v11210_v17  ;;  %v4278_v32 = vmax.f32 %v3476_v3, %v11211_v14  ;;  %v10166_v24 = vpop.eup %4767  ;;  %v11215_v20 = vld [vmem:[#allocation19_spill] sm:$0xff]  ;;  %v11217_v17 = vld [vmem:[#allocation24_spill] sm:$0xff]  ;;  %vm11222_vm4 = vmmov %vm11220_vm9 }
 0x8d1   : > { %v4279_v40 = vmax.f32 %v3477_v13, %v11212_v47  ;;  %v4209_v63 = vand.u32 2147483647, %v10085_v55  ;;  %v3482_v0 = vmul.f32 %v10101_v48, %v11213_v31  ;;  %v4280_v61 = vmax.f32 %v3478_v58, %v11214_v36  ;;  %v10174_v27 = vpop.eup %4769  ;;  %v11219_v47 = vld [vmem:[#allocation26_spill] sm:$0xff]  ;;  %vm11223_vm7 = vmmov %vm11222_vm4 }
 0x8d2   : > { %v3483_v37 = vmul.f32 %v10101_v48, %v8896_v30  ;;  %v4281_v3 = vmax.f32 %v3479_v25, %v11215_v20  ;;  %4309 = vst.msk [vmem:[%s10148_s13] sm:$0xff] %vm11216_vm10, %v4277_v21  ;;  %v4201_v13 = vmul.f32 %v10159_v4, %v10085_v55  ;;  %v4239_v2 = vand.u32 2147483647, %v10099_v35  ;;  %vm11224_vm11 = vmmov %vm11222_vm4 }
 0x8d3   : > { %v3484_v58 = vmul.f32 %v10101_v48, %v8907_v56  ;;  %v4282_v14 = vmax.f32 %v3480_v8, %v11217_v17  ;;  %4310 = vst.msk [vmem:[%s10148_s13 + $0x8] sm:$0xff] %vm11218_vm14, %v4278_v32  ;;  %v4241_v30 = vand.u32 2147483648, %v10099_v35  ;;  %v4216_v25 = vmul.f32 %v10166_v24, %v10095_v57  ;;  %v11221_v32 = vld [vmem:[#allocation22_spill] sm:$0xff]  ;;  %vm11225_vm3 = vmmov %vm11222_vm4 }
 0x8d4   : > { %v3485_v21 = vmul.f32 %v10101_v48, %v8920_v34  ;;  %v4283_v31 = vmax.f32 %v3481_v59, %v11219_v47  ;;  %4311 = vst.msk [vmem:[%s10148_s13 + $0x10] sm:$0xff] %vm11220_vm9, %v4279_v40  ;;  %v4172_v36 = vsub.f32 1.0, %v4171_v29  ;;  %v4231_v56 = vmul.f32 %v10174_v27, %v10099_v35  ;;  %vm11226_vm12 = vmmov %vm11225_vm3  ;;  %v11236_v47 = vld [vmem:[#allocation25_spill] sm:$0xff] }
 0x8d5   : > { %v3486_v8 = vmul.f32 %v10101_v48, %v8932_v12  ;;  %v4284_v20 = vmax.f32 %v3482_v0, %v11221_v32  ;;  %4312 = vst.msk [vmem:[%s10148_s13 + $0x18] sm:$0xff] %vm11222_vm4, %v4280_v61  ;;  %v4187_v17 = vsub.f32 1.0, %v4186_v38  ;;  %v3487_v34 = vmul.f32 %v10101_v48, %v8939_v19  ;;  %vm11227_vm0 = vmmov %vm11225_vm3 }
 0x8d6   : > { %v4285_v59 = vmax.f32 %v3483_v37, %v9628_v62  ;;  %4313 = vst.msk [vmem:[%s10148_s13 + $0x20] sm:$0xff] %vm11223_vm7, %v4281_v3  ;;  %v4202_v40 = vsub.f32 1.0, %v4201_v13  ;;  %v10214_v12 = vor.u32 1.1754944e-38, %v4211_v49  ;;  %v3488_v29 = vmul.f32 %v10101_v48, %v8950_v23  ;;  %v11230_v13 = vld [vmem:[#allocation6_spill] sm:$0xff]  ;;  %vm11232_vm14 = vmmov %vm11227_vm0 }
 0x8d7   : > { %v4286_v0 = vmax.f32 %v3484_v58, %v9683_v33  ;;  %4314 = vst.msk [vmem:[%s10148_s13 + $0x28] sm:$0xff] %vm11224_vm11, %v4282_v14  ;;  %vm4190_vm15 = vweird.f32 %v10070_v26  ;;  %vm4176_vm6 = vweird.f32 %v10132_v16  ;;  %v4217_v19 = vsub.f32 1.0, %v4216_v25  ;;  %v11231_v58 = vld [vmem:[#allocation27_spill] sm:$0xff]  ;;  %v11235_v25 = vld [vmem:[#allocation4_spill] sm:$0xff]  ;;  %vm11237_vm4 = vmmov %vm11227_vm0 }
 0x8d8   : > { %v3489_v62 = vmul.f32 %v10101_v48, %v8963_v45  ;;  %v4287_v61 = vmax.f32 %v3485_v21, %v9634_v1  ;;  %4315 = vst.msk [vmem:[%s10148_s13 + $0x30] sm:$0xff] %vm11225_vm3, %v4283_v31  ;;  %v4173_v38 = vmul.f32 %v10132_v16, %v4172_v36  ;;  %vm4205_vm8 = vweird.f32 %v10085_v55  ;;  %vm11242_vm11 = vmmov %vm11227_vm0 }
 0x8d9   : > { %v4232_v23 = vsub.f32 1.0, %v4231_v56  ;;  %v3490_v33 = vmul.f32 %v10101_v48, %v8975_v43  ;;  %v4288_v49 = vmax.f32 %v3486_v8, %v9708_v18  ;;  %4316 = vst.msk [vmem:[%s10148_s13 + $0x38] sm:$0xff] %vm11226_vm12, %v4284_v20  ;;  %v4188_v37 = vmul.f32 %v10141_v10, %v4187_v17  ;;  %v11240_v8 = vld [vmem:[#allocation8_spill] sm:$0xff]  ;;  %v11241_v20 = vld [vmem:[#allocation30_spill] sm:$0xff]  ;;  %vm11245_vm12 = vmmov %vm11227_vm0 }
 0x8da   : > { %v10236_v45 = vor.u32 1.1754944e-38, %v4241_v30  ;;  %v3491_v1 = vmul.f32 %v10101_v48, %v8985_v51  ;;  %v4289_v3 = vmax.f32 %v3487_v34, %v9727_v42  ;;  %4317 = vst.msk [vmem:[%s10148_s13 + $0x40] sm:$0xff] %vm11227_vm0, %v4285_v59  ;;  %vm10245_vm2 = vcmp.eq.f32.partialorder %v4179_v44, 8.507059e+37  ;;  %v11243_v59 = vld [vmem:[#allocation9_spill] sm:$0xff]  ;;  %vm11252_vm13 = vmmov %vm11237_vm4  ;;  %v11267_v43 = vld [vmem:[#allocation14_spill] sm:$0xff] }
 0x8db   : > { %v4203_v18 = vmul.f32 %v10159_v4, %v4202_v40  ;;  %vm4220_vm10 = vweird.f32 %v10095_v57  ;;  %v3492_v51 = vmul.f32 %v10101_v48, %v11230_v13  ;;  %v4290_v42 = vmax.f32 %v3488_v29, %v11231_v58  ;;  %4318 = vst.msk [vmem:[%s10148_s13 + $0x48] sm:$0xff] %vm11232_vm14, %v4286_v0  ;;  %v11244_v40 = vld [vmem:[#allocation29_spill] sm:$0xff] }
 0x8dc   : > { %vm10259_vm9 = vcmp.eq.f32.partialorder %v4194_v11, 8.507059e+37  ;;  %v4218_v14 = vmul.f32 %v10166_v24, %v4217_v19  ;;  %v4226_v30 = vand.u32 2147483648, %v10095_v57  ;;  %v3493_v21 = vmul.f32 %v10101_v48, %v11235_v25  ;;  %4319 = vst.msk [vmem:[%s10148_s13 + $0x50] sm:$0xff] %vm11237_vm4, %v4287_v61  ;;  %v11248_v61 = vld [vmem:[#allocation28_spill] sm:$0xff] }
 0x8dd   : > { %v4291_v31 = vmax.f32 %v3489_v62, %v11236_v47  ;;  %v4174_v36 = vadd.f32 %v10132_v16, %v4173_v38  ;;  %vm10273_vm7 = vcmp.eq.f32.partialorder %v4209_v63, 8.507059e+37  ;;  %v4233_v56 = vmul.f32 %v10174_v27, %v4232_v23  ;;  %4320 = vst.msk [vmem:[%s10148_s13 + $0x58] sm:$0xff] %vm11242_vm11, %v4288_v49  ;;  %vm10307_vm11 = vmor %vm4175_vm5, %vm4176_vm6 }
 0x8de   : > { %v3494_v32 = vmul.f32 %v10101_v48, %v11240_v8  ;;  %v4292_v17 = vmax.f32 %v3490_v33, %v11241_v20  ;;  %v4189_v34 = vadd.f32 %v10141_v10, %v4188_v37  ;;  %vm4206_vm3 = vweird.f32 %v10159_v4  ;;  %4321 = vst.msk [vmem:[%s10148_s13 + $0x60] sm:$0xff] %vm11245_vm12, %v4289_v3  ;;  %v11251_v33 = vld [vmem:[#allocation33_spill] sm:$0xff]  ;;  %vm10322_vm5 = vmor %vm4190_vm15, %vm4191_vm1  ;;  %v11255_v3 = vld [vmem:[#allocation32_spill] sm:$0xff] }
 0x8df   : > { %v3495_v63 = vmul.f32 %v10101_v48, %v11243_v59  ;;  %v4293_v29 = vmax.f32 %v3491_v1, %v11244_v40  ;;  %v4204_v0 = vadd.f32 %v10159_v4, %v4203_v18  ;;  %vm4236_vm0 = vweird.f32 %v10174_v27  ;;  %4322 = vst.msk [vmem:[%s10148_s13 + $0x68] sm:$0xff] %vm11237_vm4, %v4290_v42  ;;  %vm11256_vm6 = vmmov %vm11237_vm4  ;;  %v11275_v8 = vld [vmem:[#allocation18_spill] sm:$0xff] }
 0x8e0   : > { %vm10294_vm14 = vcmp.eq.f32.partialorder %v4239_v2, 8.507059e+37  ;;  %v3496_v62 = vmul.f32 %v10101_v48, %v9042_v6  ;;  %v4294_v38 = vmax.f32 %v3492_v51, %v11248_v61  ;;  %v4219_v2 = vadd.f32 %v10166_v24, %v4218_v14  ;;  %4323 = vst.msk [vmem:[%s10148_s13 + $0x70] sm:$0xff] %vm11252_vm13, %v4291_v31  ;;  %vm10342_vm1 = vmor %vm4205_vm8, %vm4206_vm3  ;;  %v11259_v51 = vld [vmem:[#allocation31_spill] sm:$0xff] }
 0x8e1   : > { %vm4221_vm12 = vweird.f32 %v10166_v24  ;;  %v3497_v6 = vmul.f32 %v10101_v48, %v9055_v52  ;;  %v4295_v49 = vmax.f32 %v3493_v21, %v11251_v33  ;;  %v4178_v37 = vsel %vm10307_vm11, %v10132_v16, %v4174_v36  ;;  %4324 = vst.msk [vmem:[%s10148_s13 + $0x78] sm:$0xff] %vm11256_vm6, %v4292_v17  ;;  %vm11260_vm15 = vmmov %vm11237_vm4  ;;  %v11271_v21 = vld [vmem:[#allocation13_spill] sm:$0xff] }
 0x8e2   : > { %v4234_v1 = vadd.f32 %v10174_v27, %v4233_v56  ;;  %v3498_v52 = vmul.f32 %v10101_v48, %v11205_v28  ;;  %v4296_v18 = vmax.f32 %v3494_v32, %v11255_v3  ;;  %v4193_v26 = vsel %vm10322_vm5, %v10141_v10, %v4189_v34  ;;  %4325 = vst.msk [vmem:[%s10148_s13 + $0x80] sm:$0xff] %vm11260_vm15, %v4293_v29  ;;  %vm10359_vm8 = vmor %vm4220_vm10, %vm4221_vm12  ;;  %v11273_v36 = vld [vmem:[#allocation17_spill] sm:$0xff] }
 0x8e3   : > { %v4224_v13 = vand.u32 2147483647, %v10095_v57  ;;  %v3499_v28 = vmul.f32 %v10101_v48, %v11208_v15  ;;  %v4297_v58 = vmax.f32 %v3495_v63, %v11259_v51  ;;  %v4208_v10 = vsel %vm10342_vm1, %v10159_v4, %v4204_v0  ;;  %vm11263_vm13 = vmmov %vm11237_vm4  ;;  %4327 = vst.msk [vmem:[%s10148_s13 + $0x90] sm:$0xff] %vm11237_vm4, %v4295_v49 }
 0x8e4   : > { %v4227_v42 = vor.u32 1.1754944e-38, %v4226_v30  ;;  %v3500_v15 = vmul.f32 %v10101_v48, %v11206_v46  ;;  %v4298_v14 = vmax.f32 %v3496_v62, %v10122_v54  ;;  %4326 = vst.msk [vmem:[%s10148_s13 + $0x88] sm:$0xff] %vm11263_vm13, %v4294_v38  ;;  %v4183_v4 = vsel %vm10245_vm2, %v10155_v9, %v4178_v37  ;;  %vm11268_vm2 = vmmov %vm11237_vm4 }
 0x8e5   : > { %vm11264_vm10 = vweird.f32 %v10099_v35  ;;  %v4223_v46 = vsel %vm10359_vm8, %v10166_v24, %v4219_v2  ;;  %v3501_v54 = vmul.f32 %v10101_v48, %v11209_v22  ;;  %v4299_v30 = vmax.f32 %v3497_v6, %v10029_v60  ;;  %4328 = vst.msk [vmem:[%s10148_s13 + $0x98] sm:$0xff] %vm11268_vm2, %v4296_v18  ;;  %v11269_v22 = vld [vmem:[#allocation15_spill] sm:$0xff]  ;;  %vm11272_vm11 = vmmov %vm11268_vm2 }
 0x8e6   : > { %vm10375_vm3 = vmor %vm11264_vm10, %vm4236_vm0  ;;  %v4198_v35 = vsel %vm10259_vm9, %v10153_v50, %v4193_v26  ;;  %v3502_v25 = vmul.f32 %v10101_v48, %v11267_v43  ;;  %v4300_v24 = vmax.f32 %v3498_v52, %v10125_v5  ;;  %v4213_v60 = vsel %vm10273_vm7, %v10214_v12, %v4208_v10  ;;  %4330 = vst.msk [vmem:[%s10148_s13 + $0xa8] sm:$0xff] %vm11272_vm11, %v4298_v14 }
 0x8e7   : > { %v4238_v9 = vsel %vm10375_vm3, %v10174_v27, %v4234_v1  ;;  %vm4225_vm0 = vcmp.eq.f32.partialorder %v4224_v13, 8.507059e+37  ;;  %v3503_v50 = vmul.f32 %v10101_v48, %v11269_v22  ;;  %v4301_v44 = vmax.f32 %v3499_v28, %v10135_v41  ;;  %vm11270_vm9 = vmmov %vm11268_vm2 }
 0x8e8   : > { %4329 = vst.msk [vmem:[%s10148_s13 + $0xa0] sm:$0xff] %vm11270_vm9, %v4297_v58  ;;  %v4272_v27 = vmul.f32 %v4183_v4, %v11267_v43  ;;  %v4228_v5 = vsel %vm4225_vm0, %v4227_v42, %v4223_v46  ;;  %v3504_v47 = vmul.f32 %v10101_v48, %v11271_v21  ;;  %v4302_v31 = vmax.f32 %v3500_v15, %v10128_v39  ;;  %vm11274_vm7 = vmmov %vm11268_vm2 }
 0x8e9   : > { %v4273_v12 = vmul.f32 %v4198_v35, %v11269_v22  ;;  %v4243_v41 = vsel %vm10294_vm14, %v10236_v45, %v4238_v9  ;;  %v3505_v11 = vmul.f32 %v10101_v48, %v11273_v36  ;;  %v4303_v56 = vmax.f32 %v3501_v54, %v10151_v53  ;;  %4331 = vst.msk [vmem:[%s10148_s13 + $0xb0] sm:$0xff] %vm11274_vm7, %v4299_v30  ;;  %vm11276_vm12 = vmmov %vm11268_vm2 }
 0x8ea   : > { %v4274_v39 = vmul.f32 %v4213_v60, %v11271_v21  ;;  %v3506_v32 = vmul.f32 %v10101_v48, %v11275_v8  ;;  %v4304_v20 = vmax.f32 %v3502_v25, %v4272_v27  ;;  %4332 = vst.msk [vmem:[%s10148_s13 + $0xb8] sm:$0xff] %vm11276_vm12, %v4300_v24  ;;  %v4275_v45 = vmul.f32 %v4228_v5, %v11273_v36  ;;  %vm11277_vm14 = vmmov %vm11268_vm2 }
 0x8eb   : > { %v4305_v17 = vmax.f32 %v3503_v50, %v4273_v12  ;;  %4333 = vst.msk [vmem:[%s10148_s13 + $0xc0] sm:$0xff] %vm11277_vm14, %v4301_v44  ;;  %v4276_v53 = vmul.f32 %v4243_v41, %v11275_v8  ;;  %vm11278_vm5 = vmmov %vm11268_vm2 }
 0x8ec   : > { %v4306_v34 = vmax.f32 %v3504_v47, %v4274_v39  ;;  %4334 = vst.msk [vmem:[%s10148_s13 + $0xc8] sm:$0xff] %vm11278_vm5, %v4302_v31  ;;  %v4307_v59 = vmax.f32 %v3505_v11, %v4275_v45  ;;  %vm11279_vm6 = vmmov %vm11268_vm2 }
 0x8ed   : > { %4335 = vst.msk [vmem:[%s10148_s13 + $0xd0] sm:$0xff] %vm11279_vm6, %v4303_v56  ;;  %v4308_v63 = vmax.f32 %v3506_v32, %v4276_v53  ;;  %vm11280_vm1 = vmmov %vm11268_vm2 }
 0x8ee   : > { %4336 = vst.msk [vmem:[%s10148_s13 + $0xd8] sm:$0xff] %vm11280_vm1, %v4304_v20  ;;  %vm11281_vm15 = vmmov %vm11280_vm1 }
 0x8ef   : > { %4337 = vst.msk [vmem:[%s10148_s13 + $0xe0] sm:$0xff] %vm11281_vm15, %v4305_v17  ;;  %vm11282_vm8 = vmmov %vm11280_vm1 }
 0x8f0   : > { %4338 = vst.msk [vmem:[%s10148_s13 + $0xe8] sm:$0xff] %vm11282_vm8, %v4306_v34  ;;  %vm11283_vm13 = vmmov %vm11280_vm1 }
 0x8f1   : > { %4339 = vst.msk [vmem:[%s10148_s13 + $0xf0] sm:$0xff] %vm11283_vm13, %v4307_v59  ;;  %vm11284_vm10 = vmmov %vm11280_vm1 }
 0x8f2   : > { %4340 = vst.msk [vmem:[%s10148_s13 + $0xf8] sm:$0xff] %vm11284_vm10, %v4308_v63 }
 0x8f3 PF: > { %s15_s18 = sadd.s32 1, %s4779_s18  }
 0x8f4   : > { %p12_p4 = scmp.ge.s32.totalorder %s15_s18, 4  }
 0x8f6   :  { %14 = sbr.rel (!%p12_p4) target bundleno = 1 (0x1), region = 74 }

</bundles_post_ra>
